<compile_context>
chip_gen: v7x
topology: tpu7x:2x2x1
jax: 0.10.0
libtpu: 0.0.40
codegen_flags: <defaults>
</compile_context>

<pallas_src>
import jax
import jax.numpy as jnp
from jax.experimental import pallas as pl
from jax.experimental.pallas import tpu as pltpu  # noqa: F401  (TPU backend)

DIM = 512             # per-backbone feature dim
N_BACKBONES = 3
CAT_DIM = N_BACKBONES * DIM   # 1536 after (implicit) concatenation
HID2 = 256            # second MLP hidden dim
NUM_CLASSES = 2
PAD_CLASSES = 128     # lane-dense padded logits width
NEG_INF = -1e30       # padded-lane bias -> exp underflows to exactly 0


# ----------------------------- fused Pallas kernel ---------------------------

def fused_forward_kernel(x1_ref, x2_ref, x3_ref, wf_ref, bf_ref,
                         w1_ref, b1_ref, w2_ref, b2_ref, w3p_ref, b3p_ref,
                         o_ref):
    """Fused forward (eval mode):
      3x stand-in backbone (spatial GAP + Linear(C->512)),
      concat-free Linear(1536->512) via split-w1 accumulation, ReLU,
      Linear(512->256), ReLU, Dropout(p=0.3) [eval => identity],
      Linear(256->PAD_CLASSES) (zero-padded) + softmax over 128 lanes.

    x*_ref: [B, C, H*W]   wf_ref: [C, 512]   bf_ref: [1, 512]
    w1_ref: [1536, 512]   b1_ref: [1, 512]
    w2_ref: [512, 256]    b2_ref: [1, 256]
    w3p_ref: [256, 128]   b3p_ref: [1, 128]   o_ref: [B, 128]
    """
    inv_hw = jnp.float32(1.0 / x1_ref.shape[2])

    def backbone_feat(x_ref):
        pooled = jnp.sum(x_ref[...], axis=2) * inv_hw                 # [B, C]  (GAP)
        return (jnp.dot(pooled, wf_ref[...],
                        preferred_element_type=jnp.float32)
                + bf_ref[...])                                        # [B, 512]

    # torch.cat((f1,f2,f3), dim=1) followed by Linear(1536,512) == accumulation of
    # three 512x512 partial matmuls; no concatenated feature is ever materialized.
    h = b1_ref[...]                                                   # [1, 512] -> bcast
    for g, x_ref in enumerate((x1_ref, x2_ref, x3_ref)):
        f_g = backbone_feat(x_ref)                                    # [B, 512]
        h = h + jnp.dot(f_g, w1_ref[g * DIM:(g + 1) * DIM, :],
                        preferred_element_type=jnp.float32)
    h = jnp.maximum(h, 0.0)                                           # ReLU

    h = jnp.dot(h, w2_ref[...], preferred_element_type=jnp.float32) + b2_ref[...]
    h = jnp.maximum(h, 0.0)                                           # ReLU
    # nn.Dropout(p=0.3): identity in eval mode.

    # Lane-dense logits: valid classes in lanes [0, NUM_CLASSES); padded lanes carry
    # a NEG_INF bias so exp(logit - max) == 0 there and softmax stays exact.
    logits = jnp.dot(h, w3p_ref[...], preferred_element_type=jnp.float32) + b3p_ref[...]
    m = jnp.max(logits, axis=-1, keepdims=True)                       # softmax(dim=-1)
    e = jnp.exp(logits - m)
    o_ref[...] = e / jnp.sum(e, axis=-1, keepdims=True)               # full 128-lane store


# --------------------------------- wrapper -----------------------------------

def classifier_comparision_concat_forward(x1, x2, x3, backbone_params, head_params):
    """Full forward matching the PyTorch module semantics (eval mode)."""
    w_feat, b_feat = backbone_params
    w1, b1, w2, b2, w3, b3 = head_params

    B, C, H, W = x1.shape
    HW = H * W
    x1r = x1.reshape(B, C, HW).astype(jnp.float32)
    x2r = x2.reshape(B, C, HW).astype(jnp.float32)
    x3r = x3.reshape(B, C, HW).astype(jnp.float32)

    # Pad the final Linear(256,2) to a lane-dense 128-wide output.  Zero weights +
    # NEG_INF bias on the padded lanes keep the softmax exact on the 2 valid lanes;
    # the wrapper slices them back out.
    w3p = jnp.zeros((HID2, PAD_CLASSES), jnp.float32).at[:, :NUM_CLASSES].set(w3)
    b3p = jnp.full((1, PAD_CLASSES), NEG_INF, jnp.float32).at[:, :NUM_CLASSES].set(b3)

    flops = 2 * B * (N_BACKBONES * C * DIM + CAT_DIM * DIM + DIM * HID2
                     + HID2 * PAD_CLASSES)
    transcendentals = B * PAD_CLASSES
    bytes_accessed = 4 * (N_BACKBONES * B * C * HW
                          + C * DIM + DIM
                          + CAT_DIM * DIM + DIM
                          + DIM * HID2 + HID2
                          + HID2 * PAD_CLASSES + PAD_CLASSES
                          + B * PAD_CLASSES)

    probs_padded = pl.pallas_call(
        fused_forward_kernel,
        out_shape=jax.ShapeDtypeStruct((B, PAD_CLASSES), jnp.float32),
        cost_estimate=pl.CostEstimate(flops=flops,
                                      transcendentals=transcendentals,
                                      bytes_accessed=bytes_accessed),
    )(x1r, x2r, x3r, w_feat, b_feat, w1, b1, w2, b2, w3p, b3p)

    return probs_padded[:, :NUM_CLASSES]                              # [B, 2]


# ------------------------------- param init ----------------------------------

def init_params(key, in_channels):
    ks = jax.random.split(key, 8)
    scale = 0.05
    w_feat = scale * jax.random.normal(ks[0], (in_channels, DIM), jnp.float32)
    b_feat = scale * jax.random.normal(ks[1], (1, DIM), jnp.float32)
    w1 = scale * jax.random.normal(ks[2], (CAT_DIM, DIM), jnp.float32)
    b1 = scale * jax.random.normal(ks[3], (1, DIM), jnp.float32)
    w2 = scale * jax.random.normal(ks[4], (DIM, HID2), jnp.float32)
    b2 = scale * jax.random.normal(ks[5], (1, HID2), jnp.float32)
    w3 = scale * jax.random.normal(ks[6], (HID2, NUM_CLASSES), jnp.float32)
    b3 = scale * jax.random.normal(ks[7], (1, NUM_CLASSES), jnp.float32)
    return (w_feat, b_feat), (w1, b1, w2, b2, w3, b3)


# ----------------------------------- main -------------------------------------

if __name__ == "__main__":
    key = jax.random.PRNGKey(0)
    k_in, k_par = jax.random.split(key)

    B, C, H, W = 2, 3, 16, 16     # small NCHW image inputs
    kx1, kx2, kx3 = jax.random.split(k_in, 3)
    x1 = jax.random.normal(kx1, (B, C, H, W), jnp.float32)
    x2 = jax.random.normal(kx2, (B, C, H, W), jnp.float32)
    x3 = jax.random.normal(kx3, (B, C, H, W), jnp.float32)

    backbone_params, head_params = init_params(k_par, C)

    fwd = jax.jit(classifier_comparision_concat_forward)
    out = fwd(x1, x2, x3, backbone_params, head_params)
    out = jax.block_until_ready(out)

    assert out.shape == (B, NUM_CLASSES), out.shape
    row_sums = jnp.sum(out, axis=-1)
    assert bool(jnp.all(jnp.abs(row_sums - 1.0) < 1e-5)), row_sums
    assert bool(jnp.all(out >= 0.0)), out

    print("KERNEL_OK")
</pallas_src>

<mosaic_0001>
module attributes {stable_mosaic.version = 11 : i64} {
  func.func @fused_forward_kernel(%arg0: memref<2x3x256xf32, #tpu.memory_space<vmem>>, %arg1: memref<2x3x256xf32, #tpu.memory_space<vmem>>, %arg2: memref<2x3x256xf32, #tpu.memory_space<vmem>>, %arg3: memref<3x512xf32, #tpu.memory_space<vmem>>, %arg4: memref<1x512xf32, #tpu.memory_space<vmem>>, %arg5: memref<1536x512xf32, #tpu.memory_space<vmem>>, %arg6: memref<1x512xf32, #tpu.memory_space<vmem>>, %arg7: memref<512x256xf32, #tpu.memory_space<vmem>>, %arg8: memref<1x256xf32, #tpu.memory_space<vmem>>, %arg9: memref<256x128xf32, #tpu.memory_space<vmem>>, %arg10: memref<1x128xf32, #tpu.memory_space<vmem>>, %arg11: memref<2x128xf32, #tpu.memory_space<vmem>>) attributes {dimension_semantics = [], scalar_prefetch = 0 : i64, scratch_operands = 0 : i64, tpu.core_type = #tpu.core_type<tc>} {
    %c0 = arith.constant 0 : index
    %c0_0 = arith.constant 0 : index
    %0 = vector.load %arg6[%c0, %c0_0] : memref<1x512xf32, #tpu.memory_space<vmem>>, vector<1x512xf32>
    %c0_1 = arith.constant 0 : index
    %c0_2 = arith.constant 0 : index
    %c0_3 = arith.constant 0 : index
    %1 = vector.load %arg0[%c0_1, %c0_2, %c0_3] : memref<2x3x256xf32, #tpu.memory_space<vmem>>, vector<2x3x256xf32>
    %cst = arith.constant dense<0.000000e+00> : vector<2x3xf32>
    %2 = vector.multi_reduction <add>, %1, %cst [2] : vector<2x3x256xf32> to vector<2x3xf32>
    %cst_4 = arith.constant 3.906250e-03 : f32
    %3 = vector.broadcast %cst_4 : f32 to vector<2x3xf32>
    %4 = arith.mulf %2, %3 : vector<2x3xf32>
    %c0_5 = arith.constant 0 : index
    %c0_6 = arith.constant 0 : index
    %5 = vector.load %arg3[%c0_5, %c0_6] : memref<3x512xf32, #tpu.memory_space<vmem>>, vector<3x512xf32>
    %cst_7 = arith.constant dense<0.000000e+00> : vector<2x512xf32>
    %6 = tpu.matmul %4, %5, %cst_7 {dimension_numbers = #tpu.dot_dimension_numbers<[1], [0], [0], [1], [0, 0, 1, 1], [], []>} : vector<2x3xf32>, vector<3x512xf32>, vector<2x512xf32> -> vector<2x512xf32>
    %c0_8 = arith.constant 0 : index
    %c0_9 = arith.constant 0 : index
    %7 = vector.load %arg4[%c0_8, %c0_9] : memref<1x512xf32, #tpu.memory_space<vmem>>, vector<1x512xf32>
    %8 = vector.broadcast %7 : vector<1x512xf32> to vector<2x512xf32>
    %9 = arith.addf %6, %8 : vector<2x512xf32>
    %c0_10 = arith.constant 0 : index
    %c0_11 = arith.constant 0 : index
    %10 = vector.load %arg5[%c0_10, %c0_11] : memref<1536x512xf32, #tpu.memory_space<vmem>>, vector<512x512xf32>
    %cst_12 = arith.constant dense<0.000000e+00> : vector<2x512xf32>
    %11 = tpu.matmul %9, %10, %cst_12 {dimension_numbers = #tpu.dot_dimension_numbers<[1], [0], [0], [1], [0, 0, 1, 1], [], []>} : vector<2x512xf32>, vector<512x512xf32>, vector<2x512xf32> -> vector<2x512xf32>
    %12 = vector.broadcast %0 : vector<1x512xf32> to vector<2x512xf32>
    %13 = arith.addf %12, %11 : vector<2x512xf32>
    %c0_13 = arith.constant 0 : index
    %c0_14 = arith.constant 0 : index
    %c0_15 = arith.constant 0 : index
    %14 = vector.load %arg1[%c0_13, %c0_14, %c0_15] : memref<2x3x256xf32, #tpu.memory_space<vmem>>, vector<2x3x256xf32>
    %cst_16 = arith.constant dense<0.000000e+00> : vector<2x3xf32>
    %15 = vector.multi_reduction <add>, %14, %cst_16 [2] : vector<2x3x256xf32> to vector<2x3xf32>
    %cst_17 = arith.constant 3.906250e-03 : f32
    %16 = vector.broadcast %cst_17 : f32 to vector<2x3xf32>
    %17 = arith.mulf %15, %16 : vector<2x3xf32>
    %c0_18 = arith.constant 0 : index
    %c0_19 = arith.constant 0 : index
    %18 = vector.load %arg3[%c0_18, %c0_19] : memref<3x512xf32, #tpu.memory_space<vmem>>, vector<3x512xf32>
    %cst_20 = arith.constant dense<0.000000e+00> : vector<2x512xf32>
    %19 = tpu.matmul %17, %18, %cst_20 {dimension_numbers = #tpu.dot_dimension_numbers<[1], [0], [0], [1], [0, 0, 1, 1], [], []>} : vector<2x3xf32>, vector<3x512xf32>, vector<2x512xf32> -> vector<2x512xf32>
    %c0_21 = arith.constant 0 : index
    %c0_22 = arith.constant 0 : index
    %20 = vector.load %arg4[%c0_21, %c0_22] : memref<1x512xf32, #tpu.memory_space<vmem>>, vector<1x512xf32>
    %21 = vector.broadcast %20 : vector<1x512xf32> to vector<2x512xf32>
    %22 = arith.addf %19, %21 : vector<2x512xf32>
    %c512 = arith.constant 512 : index
    %c0_23 = arith.constant 0 : index
    %23 = vector.load %arg5[%c512, %c0_23] : memref<1536x512xf32, #tpu.memory_space<vmem>>, vector<512x512xf32>
    %cst_24 = arith.constant dense<0.000000e+00> : vector<2x512xf32>
    %24 = tpu.matmul %22, %23, %cst_24 {dimension_numbers = #tpu.dot_dimension_numbers<[1], [0], [0], [1], [0, 0, 1, 1], [], []>} : vector<2x512xf32>, vector<512x512xf32>, vector<2x512xf32> -> vector<2x512xf32>
    %25 = arith.addf %13, %24 : vector<2x512xf32>
    %c0_25 = arith.constant 0 : index
    %c0_26 = arith.constant 0 : index
    %c0_27 = arith.constant 0 : index
    %26 = vector.load %arg2[%c0_25, %c0_26, %c0_27] : memref<2x3x256xf32, #tpu.memory_space<vmem>>, vector<2x3x256xf32>
    %cst_28 = arith.constant dense<0.000000e+00> : vector<2x3xf32>
    %27 = vector.multi_reduction <add>, %26, %cst_28 [2] : vector<2x3x256xf32> to vector<2x3xf32>
    %cst_29 = arith.constant 3.906250e-03 : f32
    %28 = vector.broadcast %cst_29 : f32 to vector<2x3xf32>
    %29 = arith.mulf %27, %28 : vector<2x3xf32>
    %c0_30 = arith.constant 0 : index
    %c0_31 = arith.constant 0 : index
    %30 = vector.load %arg3[%c0_30, %c0_31] : memref<3x512xf32, #tpu.memory_space<vmem>>, vector<3x512xf32>
    %cst_32 = arith.constant dense<0.000000e+00> : vector<2x512xf32>
    %31 = tpu.matmul %29, %30, %cst_32 {dimension_numbers = #tpu.dot_dimension_numbers<[1], [0], [0], [1], [0, 0, 1, 1], [], []>} : vector<2x3xf32>, vector<3x512xf32>, vector<2x512xf32> -> vector<2x512xf32>
    %c0_33 = arith.constant 0 : index
    %c0_34 = arith.constant 0 : index
    %32 = vector.load %arg4[%c0_33, %c0_34] : memref<1x512xf32, #tpu.memory_space<vmem>>, vector<1x512xf32>
    %33 = vector.broadcast %32 : vector<1x512xf32> to vector<2x512xf32>
    %34 = arith.addf %31, %33 : vector<2x512xf32>
    %c1024 = arith.constant 1024 : index
    %c0_35 = arith.constant 0 : index
    %35 = vector.load %arg5[%c1024, %c0_35] : memref<1536x512xf32, #tpu.memory_space<vmem>>, vector<512x512xf32>
    %cst_36 = arith.constant dense<0.000000e+00> : vector<2x512xf32>
    %36 = tpu.matmul %34, %35, %cst_36 {dimension_numbers = #tpu.dot_dimension_numbers<[1], [0], [0], [1], [0, 0, 1, 1], [], []>} : vector<2x512xf32>, vector<512x512xf32>, vector<2x512xf32> -> vector<2x512xf32>
    %37 = arith.addf %25, %36 : vector<2x512xf32>
    %cst_37 = arith.constant 0.000000e+00 : f32
    %38 = vector.broadcast %cst_37 : f32 to vector<2x512xf32>
    %39 = arith.maximumf %37, %38 : vector<2x512xf32>
    %c0_38 = arith.constant 0 : index
    %c0_39 = arith.constant 0 : index
    %40 = vector.load %arg7[%c0_38, %c0_39] : memref<512x256xf32, #tpu.memory_space<vmem>>, vector<512x256xf32>
    %cst_40 = arith.constant dense<0.000000e+00> : vector<2x256xf32>
    %41 = tpu.matmul %39, %40, %cst_40 {dimension_numbers = #tpu.dot_dimension_numbers<[1], [0], [0], [1], [0, 0, 1, 1], [], []>} : vector<2x512xf32>, vector<512x256xf32>, vector<2x256xf32> -> vector<2x256xf32>
    %c0_41 = arith.constant 0 : index
    %c0_42 = arith.constant 0 : index
    %42 = vector.load %arg8[%c0_41, %c0_42] : memref<1x256xf32, #tpu.memory_space<vmem>>, vector<1x256xf32>
    %43 = vector.broadcast %42 : vector<1x256xf32> to vector<2x256xf32>
    %44 = arith.addf %41, %43 : vector<2x256xf32>
    %cst_43 = arith.constant 0.000000e+00 : f32
    %45 = vector.broadcast %cst_43 : f32 to vector<2x256xf32>
    %46 = arith.maximumf %44, %45 : vector<2x256xf32>
    %c0_44 = arith.constant 0 : index
    %c0_45 = arith.constant 0 : index
    %47 = vector.load %arg9[%c0_44, %c0_45] : memref<256x128xf32, #tpu.memory_space<vmem>>, vector<256x128xf32>
    %cst_46 = arith.constant dense<0.000000e+00> : vector<2x128xf32>
    %48 = tpu.matmul %46, %47, %cst_46 {dimension_numbers = #tpu.dot_dimension_numbers<[1], [0], [0], [1], [0, 0, 1, 1], [], []>} : vector<2x256xf32>, vector<256x128xf32>, vector<2x128xf32> -> vector<2x128xf32>
    %c0_47 = arith.constant 0 : index
    %c0_48 = arith.constant 0 : index
    %49 = vector.load %arg10[%c0_47, %c0_48] : memref<1x128xf32, #tpu.memory_space<vmem>>, vector<1x128xf32>
    %50 = vector.broadcast %49 : vector<1x128xf32> to vector<2x128xf32>
    %51 = arith.addf %48, %50 : vector<2x128xf32>
    %cst_49 = arith.constant dense<0xFF800000> : vector<2xf32>
    %52 = vector.multi_reduction <maximumf>, %51, %cst_49 [1] : vector<2x128xf32> to vector<2xf32>
    %53 = vector.shape_cast %52 : vector<2xf32> to vector<2x1xf32>
    %54 = vector.broadcast %53 : vector<2x1xf32> to vector<2x128xf32>
    %55 = arith.subf %51, %54 : vector<2x128xf32>
    %56 = math.exp %55 : vector<2x128xf32>
    %cst_50 = arith.constant dense<0.000000e+00> : vector<2xf32>
    %57 = vector.multi_reduction <add>, %56, %cst_50 [1] : vector<2x128xf32> to vector<2xf32>
    %58 = vector.shape_cast %57 : vector<2xf32> to vector<2x1xf32>
    %59 = vector.broadcast %58 : vector<2x1xf32> to vector<2x128xf32>
    %60 = arith.divf %56, %59 : vector<2x128xf32>
    %c0_51 = arith.constant 0 : index
    %c0_52 = arith.constant 0 : index
    %61 = vector.load %arg11[%c0_51, %c0_52] : memref<2x128xf32, #tpu.memory_space<vmem>>, vector<2x128xf32>
    tpu.vector_store %arg11[%c0_51, %c0_52], %60 {strides = array<i32>} : memref<2x128xf32, #tpu.memory_space<vmem>>, vector<2x128xf32>,
    return
  }
}

</mosaic_0001>

<bundles_post_ra>
// kernel: classifier_comparision_concat_forward.1
= control target key start
LH: loop header
LB: loop body
LE: loop exit
PB: predicated region body
PF: predicated region fallthrough
CT: control target
= control target key end

     0   :  { %16 = vsyncpa [#allocation3], 0  ;;  %s4388_s0 = inlined_call_operand.vmem [shape: f32[2,3,256], index: 0, kind: input, shape index: {}]   ;;  %s4389_s1 = inlined_call_operand.vmem [shape: f32[2,3,256], index: 1, kind: input, shape index: {}]   ;;  %s4390_s2 = inlined_call_operand.vmem [shape: f32[2,3,256], index: 2, kind: input, shape index: {}]   ;;  %s4391_s3 = inlined_call_operand.hbm [shape: f32[3,512], index: 3, kind: input, shape index: {}]   ;;  %s4392_s4 = inlined_call_operand.hbm [shape: f32[1,512], index: 4, kind: input, shape index: {}]   ;;  %s4393_s5 = inlined_call_operand.hbm [shape: f32[1536,512], index: 5, kind: input, shape index: {}]   ;;  %s4394_s6 = inlined_call_operand.hbm [shape: f32[1,512], index: 6, kind: input, shape index: {}]   ;;  %s4395_s7 = inlined_call_operand.hbm [shape: f32[512,256], index: 7, kind: input, shape index: {}]   ;;  %s4396_s8 = inlined_call_operand.hbm [shape: f32[1,256], index: 8, kind: input, shape index: {}]   ;;  %s4397_s9 = inlined_call_operand.vmem [shape: f32[256,128], index: 9, kind: input, shape index: {}]   ;;  %s4398_s10 = inlined_call_operand.vmem [shape: f32[1,128], index: 10, kind: input, shape index: {}]   ;;  %s4399_s11 = inlined_call_operand.hbm [shape: f32[2,128], index: 11, kind: output, shape index: {}]  }
   0x1   :  { %17 = vsyncpa [#allocation6], 0 }
   0x2   :  { %18 = vsyncpa [#allocation9], 0 }
   0x3   :  { %19 = vsyncpa [#allocation12], 0 }
   0x4   :  { %20 = vsyncpa [#allocation4], 0  ;;  %s3961_s17 = smov [#allocation5]   ;;  %s3962_s19 = smov [#allocation8]  }
   0x5   :  { %s43_s18 = sshll.u32 %s3961_s17, 4  ;;  %s65_s20 = sshll.u32 %s3962_s19, 4  ;;  %s44_s18 = int_to_ptr.vmem [resolvable:$true] %s43_s18  ;;  %s66_s20 = int_to_ptr.vmem [resolvable:$true] %s65_s20 }
   0x6   :  { %s3797_s23 = scalar_lea.hbm %s4392_s4, 64 }
   0x7   :  { %p3798_p0 = scmp.ne.s32.totalorder %s4392_s4, %s3797_s23  ;;  %p3801_p1 = scmp.lt.u32.totalorder %s3797_s23, %s4392_s4 }
   0x9   :  { %p3803_p2 = pnand %p3801_p1, %p3798_p0 }
   0xb   :  { %3806 = shalt.err (!%p3803_p2)
}
   0xc   :  { %s3807_s28 = scalar_lea.vmem %s44_s18, 64  ;;  %p3812_p4 = scmp.lt.s32.totalorder %s44_s18, %s44_s18 }
   0xd   :  { %p3808_p3 = scmp.ne.s32.totalorder %s44_s18, %s3807_s28  ;;  %p3813_p5 = scmp.lt.s32.totalorder %s3807_s28, %s3807_s28 }
   0xf   :  { %p3814_p6 = por %p3813_p5, %p3812_p4 }
  0x11   :  { %p3815_p7 = pnand %p3814_p6, %p3808_p3 }
  0x13   :  { %3818 = shalt.err (!%p3815_p7)
}
  0x14   :  { %46 = dma.hbm_to_vmem [thread:$0]  %s4392_s4, 64, %s44_s18, [#allocation6]  }
  0x15   :  { %s3819_s14 = scalar_lea.hbm %s4394_s6, 64 }
  0x16   :  { %p3820_p8 = scmp.ne.s32.totalorder %s4394_s6, %s3819_s14  ;;  %p3823_p9 = scmp.lt.u32.totalorder %s3819_s14, %s4394_s6 }
  0x18   :  { %p3825_p10 = pnand %p3823_p9, %p3820_p8 }
  0x1a   :  { %3828 = shalt.err (!%p3825_p10)
}
  0x1b   :  { %s3829_s21 = scalar_lea.vmem %s66_s20, 64  ;;  %p3834_p12 = scmp.lt.s32.totalorder %s66_s20, %s66_s20 }
  0x1c   :  { %p3830_p11 = scmp.ne.s32.totalorder %s66_s20, %s3829_s21  ;;  %p3835_p13 = scmp.lt.s32.totalorder %s3829_s21, %s3829_s21 }
  0x1e   :  { %p3836_p0 = por %p3835_p13, %p3834_p12 }
  0x20   :  { %p3837_p1 = pnand %p3836_p0, %p3830_p11 }
  0x22   :  { %3840 = shalt.err (!%p3837_p1)
}
  0x23   :  { %68 = dma.hbm_to_vmem [thread:$0]  %s4394_s6, 64, %s66_s20, [#allocation9]  }
  0x24   :  { %s3963_s22 = smov [#allocation2]   ;;  %s3964_s24 = smov [#allocation7]  }
  0x25   :  { %s33_s23 = sshll.u32 %s3963_s22, 4  ;;  %s52_s25 = sshll.u32 %s3964_s24, 4  ;;  %s34_s23 = int_to_ptr.vmem [resolvable:$true] %s33_s23  ;;  %s4057_s25 = int_to_ptr.vmem [resolvable:$true] %s52_s25 }
  0x26   :  { %s3841_s28 = scalar_lea.hbm %s4391_s3, 256 }
  0x27   :  { %p3842_p2 = scmp.ne.s32.totalorder %s4391_s3, %s3841_s28  ;;  %p3845_p3 = scmp.lt.u32.totalorder %s3841_s28, %s4391_s3 }
  0x29   :  { %p3847_p4 = pnand %p3845_p3, %p3842_p2 }
  0x2b   :  { %3850 = shalt.err (!%p3847_p4)
}
  0x2c   :  { %s3851_s6 = scalar_lea.vmem %s34_s23, 256  ;;  %p3856_p6 = scmp.lt.s32.totalorder %s34_s23, %s34_s23 }
  0x2d   :  { %p3852_p5 = scmp.ne.s32.totalorder %s34_s23, %s3851_s6  ;;  %p3857_p7 = scmp.lt.s32.totalorder %s3851_s6, %s3851_s6 }
  0x2f   :  { %p3858_p8 = por %p3857_p7, %p3856_p6 }
  0x31   :  { %p3859_p9 = pnand %p3858_p8, %p3852_p5 }
  0x33   :  { %3862 = shalt.err (!%p3859_p9)
}
  0x34   :  { %36 = dma.hbm_to_vmem [thread:$0]  %s4391_s3, 256, %s34_s23, [#allocation3]  }
  0x35   :  { %s3863_s17 = scalar_lea.hbm %s4393_s5, 98304 }
  0x36   :  { %p3864_p10 = scmp.ne.s32.totalorder %s4393_s5, %s3863_s17  ;;  %p3867_p11 = scmp.lt.u32.totalorder %s3863_s17, %s4393_s5 }
  0x38   :  { %p3869_p12 = pnand %p3867_p11, %p3864_p10 }
  0x3a   :  { %3872 = shalt.err (!%p3869_p12)
}
  0x3b   :  { %s3873_s22 = scalar_lea.vmem %s4057_s25, 98304  ;;  %p3878_p0 = scmp.lt.s32.totalorder %s4057_s25, %s4057_s25 }
  0x3c   :  { %p3874_p13 = scmp.ne.s32.totalorder %s4057_s25, %s3873_s22  ;;  %p3879_p1 = scmp.lt.s32.totalorder %s3873_s22, %s3873_s22 }
  0x3e   :  { %p3880_p2 = por %p3879_p1, %p3878_p0 }
  0x40   :  { %p3881_p3 = pnand %p3880_p2, %p3874_p13 }
  0x42   :  { %3884 = shalt.err (!%p3881_p3)
}
  0x43   :  { %s3965_s3 = smov 512   ;;  %s3966_s23 = smov 32  }
  0x44   :  { %58 = dma.hbm_to_vmem [thread:$0]  %s4393_s5, 98304, %s4057_s25, [#allocation6], %s3965_s3, %s3965_s3, %s3966_s23  }
  0x45   :  { %s3967_s27 = smov [#allocation10]   ;;  %s3885_s12 = scalar_lea.hbm %s4395_s7, 16384 }
  0x46   :  { %s74_s28 = sshll.u32 %s3967_s27, 4  ;;  %p3886_p4 = scmp.ne.s32.totalorder %s4395_s7, %s3885_s12  ;;  %s75_s28 = int_to_ptr.vmem [resolvable:$true] %s74_s28 }
  0x47   :  { %p3889_p5 = scmp.lt.u32.totalorder %s3885_s12, %s4395_s7 }
  0x49   :  { %p3891_p6 = pnand %p3889_p5, %p3886_p4 }
  0x4b   :  { %3894 = shalt.err (!%p3891_p6)
}
  0x4c   :  { %s3895_s15 = scalar_lea.vmem %s75_s28, 16384  ;;  %p3900_p8 = scmp.lt.s32.totalorder %s75_s28, %s75_s28 }
  0x4d   :  { %p3896_p7 = scmp.ne.s32.totalorder %s75_s28, %s3895_s15  ;;  %p3901_p9 = scmp.lt.s32.totalorder %s3895_s15, %s3895_s15 }
  0x4f   :  { %p3902_p10 = por %p3901_p9, %p3900_p8 }
  0x51   :  { %p3903_p11 = pnand %p3902_p10, %p3896_p7 }
  0x53   :  { %3906 = shalt.err (!%p3903_p11)
}
  0x54   :  { %s3968_s5 = smov 256   ;;  %s3969_s25 = smov 16  }
  0x55   :  { %80 = dma.hbm_to_vmem [thread:$0]  %s4395_s7, 16384, %s75_s28, [#allocation9], %s3968_s5, %s3968_s5, %s3969_s25  }
  0x56   :  { %s3970_s19 = smov [#allocation11]   ;;  %s3907_s22 = scalar_lea.hbm %s4396_s8, 32 }
  0x57   :  { %s87_s21 = sshll.u32 %s3970_s19, 4  ;;  %p3908_p12 = scmp.ne.s32.totalorder %s4396_s8, %s3907_s22  ;;  %s88_s21 = int_to_ptr.vmem [resolvable:$true] %s87_s21 }
  0x58   :  { %p3911_p13 = scmp.lt.u32.totalorder %s3907_s22, %s4396_s8 }
  0x5a   :  { %p3913_p0 = pnand %p3911_p13, %p3908_p12 }
  0x5c   :  { %3916 = shalt.err (!%p3913_p0)
}
  0x5d   :  { %s3917_s27 = scalar_lea.vmem %s88_s21, 32  ;;  %p3922_p2 = scmp.lt.s32.totalorder %s88_s21, %s88_s21 }
  0x5e   :  { %p3918_p1 = scmp.ne.s32.totalorder %s88_s21, %s3917_s27  ;;  %p3923_p3 = scmp.lt.s32.totalorder %s3917_s27, %s3917_s27 }
  0x60   :  { %p3924_p4 = por %p3923_p3, %p3922_p2 }
  0x62   :  { %p3925_p5 = pnand %p3924_p4, %p3918_p1 }
  0x64   :  { %3928 = shalt.err (!%p3925_p5)
}
  0x65   :  { %90 = dma.hbm_to_vmem [thread:$0]  %s4396_s8, 32, %s88_s21, [#allocation12]  }
  0x66   :  { %3951 = dma.done.wait [#allocation3], 256  }
  0x67   :  { %3952 = vsyncadd [#allocation3], 4294967040 }
  0x68   :  { %3953 = dma.done.wait [#allocation6], 98368  }
  0x69   :  { %3954 = vsyncadd [#allocation6], 4294868928 }
  0x6a   :  { %3955 = dma.done.wait [#allocation9], 16448  }
  0x6b   :  { %3956 = vsyncadd [#allocation9], 4294950848 }
  0x6c   :  { %3957 = dma.done.wait [#allocation12], 32  }
  0x6d   :  { %3958 = vsyncadd [#allocation12], 4294967264  ;;  %vm122_vm0 = vcmask 1042432   ;;  %v114_v0 = vld [vmem:[%s4388_s0] sm:$0x77]  ;;  %v3971_v12 = vmov 0.0  }
  0x6e   :  { %v115_v1 = vld [vmem:[%s4388_s0 + $0x8] sm:$0x77]  ;;  %v118_v2 = vcombine.high %v114_v0, %v114_v0  ;;  %v123_v3 = vsel %vm122_vm0, %v114_v0, 0.0  ;;  %v4122_v10 = vld [vmem:[#allocation2] sm:$0x77]  ;;  %252 = vmatprep.mubr.f32.mxu0 %v3971_v12  ;;  %v330_v22 = vld [vmem:[#allocation7] sm:$0xff] }
  0x6f   :  { %v119_v4 = vcombine.high %v115_v1, %v115_v1  ;;  %v128_v6 = vsel %vm122_vm0, %v115_v1, 0.0  ;;  %v4126_v11 = vcombine.high %v4122_v10, %v4122_v10  ;;  %v4133_v13 = vld [vmem:[#allocation2 + $0x8] sm:$0x77]  ;;  %v895_v15 = vld [vmem:[%s4389_s1] sm:$0x77]  ;;  %v334_v23 = vld [vmem:[#allocation7 + $0x20] sm:$0xff] }
  0x70   :  { %v124_v5 = vsel %vm122_vm0, %v118_v2, 0.0  ;;  %v4137_v14 = vcombine.high %v4133_v13, %v4133_v13  ;;  %v896_v16 = vld [vmem:[%s4389_s1 + $0x8] sm:$0x77]  ;;  %v331_v17 = vld [vmem:[#allocation7 + $0x8] sm:$0xff]  ;;  %v899_v18 = vcombine.high %v895_v15, %v895_v15  ;;  %v903_v19 = vsel %vm122_vm0, %v895_v15, 0.0  ;;  %v338_v28 = vld [vmem:[#allocation7 + $0x40] sm:$0xff] }
  0x71   :  { %v129_v7 = vsel %vm122_vm0, %v119_v4, 0.0  ;;  %v125_v8 = vadd.f32 %v124_v5, %v123_v3  ;;  %2761 = vmatprep.subr.msk.mxu0 %vm122_vm0, %v4126_v11  ;;  %v900_v20 = vcombine.high %v896_v16, %v896_v16  ;;  %v335_v21 = vld [vmem:[#allocation7 + $0x28] sm:$0xff]  ;;  %v2817_v25 = vpack.c.bf16 %v334_v23, %v330_v22  ;;  %v342_v33 = vld [vmem:[#allocation7 + $0x60] sm:$0xff]  ;;  %s3972_s3 = smov [#allocation13]  }
  0x72   :  { %v130_v9 = vadd.f32 %v129_v7, %v128_v6  ;;  %2762 = vmatpush1.msk.msra.mxu0 %vm122_vm0, %v4122_v10  ;;  %v2815_v24 = vpack.c.bf16 %v335_v21, %v331_v17  ;;  %v339_v26 = vld [vmem:[#allocation7 + $0x48] sm:$0xff]  ;;  %v904_v29 = vsel %vm122_vm0, %v899_v18, 0.0  ;;  %v908_v30 = vsel %vm122_vm0, %v896_v16, 0.0  ;;  %v346_v40 = vld [vmem:[#allocation7 + $0x80] sm:$0xff]  ;;  %s2749_s23 = sshll.u32 %s3972_s3, 4  ;;  %s2750_s23 = int_to_ptr.vmem [resolvable:$true] %s2749_s23 }
  0x73   :  { %126 = vadd.xlane.f32.xlu0 %v125_v8  ;;  %2764 = vmatprep.subr.msk.mxu0 %vm122_vm0, %v4137_v14  ;;  %v343_v27 = vld [vmem:[#allocation7 + $0x68] sm:$0xff]  ;;  %v909_v31 = vsel %vm122_vm0, %v900_v20, 0.0  ;;  %v905_v34 = vadd.f32 %v904_v29, %v903_v19  ;;  %v2821_v36 = vpack.c.bf16 %v342_v33, %v338_v28  ;;  %v350_v41 = vld [vmem:[#allocation7 + $0xa0] sm:$0xff]  ;;  %vm171_vm1 = vcmask 1041409   ;;  %p3934_p7 = scmp.lt.s32.totalorder %s2750_s23, %s2750_s23 }
  0x74   :  { %v2819_v32 = vpack.c.bf16 %v343_v27, %v339_v26  ;;  %2816 = vmatprep.subr.bf16.mxu1 %v2815_v24  ;;  %v347_v35 = vld [vmem:[#allocation7 + $0x88] sm:$0xff]  ;;  %v910_v38 = vadd.f32 %v909_v31, %v908_v30  ;;  %v2825_v44 = vpack.c.bf16 %v350_v41, %v346_v40  ;;  %v354_v46 = vld [vmem:[#allocation7 + $0xc0] sm:$0xff]  ;;  %vm177_vm2 = vcmask 23552  }
  0x75   :  { %2818 = vmatpush1.bf16.msra.mxu1 %v2817_v25  ;;  %v351_v37 = vld [vmem:[#allocation7 + $0xa8] sm:$0xff]  ;;  %906 = vadd.xlane.f32.xlu1 %v905_v34  ;;  %v358_v47 = vld [vmem:[#allocation7 + $0xe0] sm:$0xff]  ;;  %vm2730_vm3 = vcmask 1041408  }
  0x76   :  { %2820 = vmatprep.subr.bf16.mxu1 %v2819_v32  ;;  %v2823_v39 = vpack.c.bf16 %v351_v37, %v347_v35  ;;  %v355_v42 = vld [vmem:[#allocation7 + $0xc8] sm:$0xff]  ;;  %v2829_v50 = vpack.c.bf16 %v358_v47, %v354_v46  ;;  %v362_v52 = vld [vmem:[#allocation7 + $0x100] sm:$0xff] }
  0x77   :  { %131 = vadd.xlane.f32.xlu0 %v130_v9  ;;  %v359_v43 = vld [vmem:[#allocation7 + $0xe8] sm:$0xff]  ;;  %v366_v53 = vld [vmem:[#allocation7 + $0x120] sm:$0xff] }
  0x78   :  { %v2827_v45 = vpack.c.bf16 %v359_v43, %v355_v42  ;;  %v363_v48 = vld [vmem:[#allocation7 + $0x108] sm:$0xff]  ;;  %v2833_v56 = vpack.c.bf16 %v366_v53, %v362_v52  ;;  %v370_v58 = vld [vmem:[#allocation7 + $0x140] sm:$0xff] }
  0x79   :  { %2822 = vmatpush1.bf16.msra.mxu1 %v2821_v36  ;;  %911 = vadd.xlane.f32.xlu1 %v910_v38  ;;  %v367_v49 = vld [vmem:[#allocation7 + $0x128] sm:$0xff]  ;;  %v374_v59 = vld [vmem:[#allocation7 + $0x160] sm:$0xff] }
  0x7a   :  { %2824 = vmatprep.subr.bf16.mxu1 %v2823_v39  ;;  %v2831_v51 = vpack.c.bf16 %v367_v49, %v363_v48  ;;  %v371_v54 = vld [vmem:[#allocation7 + $0x148] sm:$0xff]  ;;  %v2837_v62 = vpack.c.bf16 %v374_v59, %v370_v58  ;;  %v378_v0 = vld [vmem:[#allocation7 + $0x180] sm:$0xff] }
  0x7b   :  { %v375_v55 = vld [vmem:[#allocation7 + $0x168] sm:$0xff]  ;;  %v382_v1 = vld [vmem:[#allocation7 + $0x1a0] sm:$0xff] }
  0x7c   :  { %v2835_v57 = vpack.c.bf16 %v375_v55, %v371_v54  ;;  %v379_v60 = vld [vmem:[#allocation7 + $0x188] sm:$0xff]  ;;  %v2841_v4 = vpack.c.bf16 %v382_v1, %v378_v0  ;;  %v386_v6 = vld [vmem:[#allocation7 + $0x1c0] sm:$0xff] }
  0x7d   :  { %2826 = vmatpush1.bf16.msra.mxu1 %v2825_v44  ;;  %v383_v61 = vld [vmem:[#allocation7 + $0x1a8] sm:$0xff]  ;;  %v390_v7 = vld [vmem:[#allocation7 + $0x1e0] sm:$0xff] }
  0x7e   :  { %2828 = vmatprep.subr.bf16.mxu1 %v2827_v45  ;;  %v2839_v63 = vpack.c.bf16 %v383_v61, %v379_v60  ;;  %v387_v2 = vld [vmem:[#allocation7 + $0x1c8] sm:$0xff]  ;;  %v2845_v15 = vpack.c.bf16 %v390_v7, %v386_v6  ;;  %v394_v17 = vld [vmem:[#allocation7 + $0x200] sm:$0xff] }
  0x7f   :  { %v391_v3 = vld [vmem:[#allocation7 + $0x1e8] sm:$0xff]  ;;  %v398_v18 = vld [vmem:[#allocation7 + $0x220] sm:$0xff] }
  0x80   :  { %v2843_v5 = vpack.c.bf16 %v391_v3, %v387_v2  ;;  %v395_v8 = vld [vmem:[#allocation7 + $0x208] sm:$0xff]  ;;  %v2849_v21 = vpack.c.bf16 %v398_v18, %v394_v17  ;;  %v402_v23 = vld [vmem:[#allocation7 + $0x240] sm:$0xff] }
  0x81   :  { %2830 = vmatpush1.bf16.msra.mxu1 %v2829_v50  ;;  %v399_v9 = vld [vmem:[#allocation7 + $0x228] sm:$0xff]  ;;  %v406_v24 = vld [vmem:[#allocation7 + $0x260] sm:$0xff] }
  0x82   :  { %2832 = vmatprep.subr.bf16.mxu1 %v2831_v51  ;;  %v2847_v16 = vpack.c.bf16 %v399_v9, %v395_v8  ;;  %v403_v19 = vld [vmem:[#allocation7 + $0x248] sm:$0xff]  ;;  %v2853_v27 = vpack.c.bf16 %v406_v24, %v402_v23  ;;  %v410_v29 = vld [vmem:[#allocation7 + $0x280] sm:$0xff] }
  0x83   :  { %v407_v20 = vld [vmem:[#allocation7 + $0x268] sm:$0xff]  ;;  %v414_v30 = vld [vmem:[#allocation7 + $0x2a0] sm:$0xff] }
  0x84   :  { %v2851_v22 = vpack.c.bf16 %v407_v20, %v403_v19  ;;  %v411_v25 = vld [vmem:[#allocation7 + $0x288] sm:$0xff]  ;;  %v2857_v33 = vpack.c.bf16 %v414_v30, %v410_v29  ;;  %v418_v35 = vld [vmem:[#allocation7 + $0x2c0] sm:$0xff] }
  0x85   :  { %2834 = vmatpush1.bf16.msra.mxu1 %v2833_v56  ;;  %v415_v26 = vld [vmem:[#allocation7 + $0x2a8] sm:$0xff]  ;;  %v422_v36 = vld [vmem:[#allocation7 + $0x2e0] sm:$0xff]  ;;  %v139_v56 = vlaneseq }
  0x86   :  { %2836 = vmatprep.subr.bf16.mxu1 %v2835_v57  ;;  %v2855_v28 = vpack.c.bf16 %v415_v26, %v411_v25  ;;  %v419_v31 = vld [vmem:[#allocation7 + $0x2c8] sm:$0xff]  ;;  %v2861_v39 = vpack.c.bf16 %v422_v36, %v418_v35  ;;  %v426_v41 = vld [vmem:[#allocation7 + $0x300] sm:$0xff] }
  0x87   :  { %v423_v32 = vld [vmem:[#allocation7 + $0x2e8] sm:$0xff]  ;;  %v430_v42 = vld [vmem:[#allocation7 + $0x320] sm:$0xff]  ;;  %v4151_v57 = vshrl.u32 %v139_v56, 7  ;;  %v162_v58 = vand.u32 127, %v139_v56 }
  0x88   :  { %v2859_v34 = vpack.c.bf16 %v423_v32, %v419_v31  ;;  %v427_v37 = vld [vmem:[#allocation7 + $0x308] sm:$0xff]  ;;  %v2865_v45 = vpack.c.bf16 %v430_v42, %v426_v41  ;;  %v434_v47 = vld [vmem:[#allocation7 + $0x340] sm:$0xff] }
  0x89   :  { %2838 = vmatpush1.bf16.msra.mxu1 %v2837_v62  ;;  %v431_v38 = vld [vmem:[#allocation7 + $0x328] sm:$0xff]  ;;  %v438_v48 = vld [vmem:[#allocation7 + $0x360] sm:$0xff]  ;;  %v4154_v60 = vsub.s32 %v162_v58, %v4151_v57 }
  0x8a   :  { %2840 = vmatprep.subr.bf16.mxu1 %v2839_v63  ;;  %v2863_v40 = vpack.c.bf16 %v431_v38, %v427_v37  ;;  %v435_v43 = vld [vmem:[#allocation7 + $0x348] sm:$0xff]  ;;  %v2869_v51 = vpack.c.bf16 %v438_v48, %v434_v47  ;;  %v442_v53 = vld [vmem:[#allocation7 + $0x380] sm:$0xff] }
  0x8b   :  { %v439_v44 = vld [vmem:[#allocation7 + $0x368] sm:$0xff]  ;;  %v446_v54 = vld [vmem:[#allocation7 + $0x3a0] sm:$0xff] }
  0x8c   :  { %v2867_v46 = vpack.c.bf16 %v439_v44, %v435_v43  ;;  %v443_v49 = vld [vmem:[#allocation7 + $0x388] sm:$0xff]  ;;  %v2873_v55 = vpack.c.bf16 %v446_v54, %v442_v53  ;;  %v462_v6 = vld [vmem:[#allocation7 + $0x420] sm:$0xff] }
  0x8d   :  { %2842 = vmatpush1.bf16.msra.mxu1 %v2841_v4  ;;  %v447_v50 = vld [vmem:[#allocation7 + $0x3a8] sm:$0xff]  ;;  %v466_v17 = vld [vmem:[#allocation7 + $0x440] sm:$0xff] }
  0x8e   :  { %2844 = vmatprep.subr.bf16.mxu1 %v2843_v5  ;;  %v2871_v52 = vpack.c.bf16 %v447_v50, %v443_v49  ;;  %v459_v0 = vld [vmem:[#allocation7 + $0x408] sm:$0xff]  ;;  %v458_v5 = vld [vmem:[#allocation7 + $0x400] sm:$0xff] }
  0x8f   :  { %v463_v1 = vld [vmem:[#allocation7 + $0x428] sm:$0xff]  ;;  %v470_v18 = vld [vmem:[#allocation7 + $0x460] sm:$0xff] }
  0x90   :  { %v2879_v4 = vpack.c.bf16 %v463_v1, %v459_v0  ;;  %v467_v8 = vld [vmem:[#allocation7 + $0x448] sm:$0xff]  ;;  %v474_v23 = vld [vmem:[#allocation7 + $0x480] sm:$0xff] }
  0x91   :  { %2846 = vmatpush1.bf16.msra.mxu1 %v2845_v15  ;;  %v471_v9 = vld [vmem:[#allocation7 + $0x468] sm:$0xff]  ;;  %v2881_v15 = vpack.c.bf16 %v462_v6, %v458_v5  ;;  %v478_v24 = vld [vmem:[#allocation7 + $0x4a0] sm:$0xff] }
  0x92   :  { %2848 = vmatprep.subr.bf16.mxu1 %v2847_v16  ;;  %v2883_v16 = vpack.c.bf16 %v471_v9, %v467_v8  ;;  %v475_v19 = vld [vmem:[#allocation7 + $0x488] sm:$0xff]  ;;  %v482_v29 = vld [vmem:[#allocation7 + $0x4c0] sm:$0xff] }
  0x93   :  { %v479_v20 = vld [vmem:[#allocation7 + $0x4a8] sm:$0xff]  ;;  %v486_v30 = vld [vmem:[#allocation7 + $0x4e0] sm:$0xff] }
  0x94   :  { %v483_v25 = vld [vmem:[#allocation7 + $0x4c8] sm:$0xff]  ;;  %v490_v35 = vld [vmem:[#allocation7 + $0x500] sm:$0xff] }
  0x95   :  { %2850 = vmatpush1.bf16.msra.mxu1 %v2849_v21  ;;  %v2885_v21 = vpack.c.bf16 %v470_v18, %v466_v17  ;;  %v487_v26 = vld [vmem:[#allocation7 + $0x4e8] sm:$0xff]  ;;  %v494_v36 = vld [vmem:[#allocation7 + $0x520] sm:$0xff] }
  0x96   :  { %2852 = vmatprep.subr.bf16.mxu1 %v2851_v22  ;;  %v2887_v22 = vpack.c.bf16 %v479_v20, %v475_v19  ;;  %v491_v31 = vld [vmem:[#allocation7 + $0x508] sm:$0xff]  ;;  %v498_v41 = vld [vmem:[#allocation7 + $0x540] sm:$0xff] }
  0x97   :  { %v495_v32 = vld [vmem:[#allocation7 + $0x528] sm:$0xff]  ;;  %v502_v42 = vld [vmem:[#allocation7 + $0x560] sm:$0xff] }
  0x98   :  { %v499_v37 = vld [vmem:[#allocation7 + $0x548] sm:$0xff]  ;;  %v506_v47 = vld [vmem:[#allocation7 + $0x580] sm:$0xff] }
  0x99   :  { %2854 = vmatpush1.bf16.msra.mxu1 %v2853_v27  ;;  %v2889_v27 = vpack.c.bf16 %v478_v24, %v474_v23  ;;  %v503_v38 = vld [vmem:[#allocation7 + $0x568] sm:$0xff]  ;;  %v510_v48 = vld [vmem:[#allocation7 + $0x5a0] sm:$0xff] }
  0x9a   :  { %2856 = vmatprep.subr.bf16.mxu1 %v2855_v28  ;;  %v2891_v28 = vpack.c.bf16 %v487_v26, %v483_v25  ;;  %v507_v43 = vld [vmem:[#allocation7 + $0x588] sm:$0xff]  ;;  %v514_v53 = vld [vmem:[#allocation7 + $0x5c0] sm:$0xff] }
  0x9b   :  { %v511_v44 = vld [vmem:[#allocation7 + $0x5a8] sm:$0xff]  ;;  %v518_v54 = vld [vmem:[#allocation7 + $0x5e0] sm:$0xff] }
  0x9c   :  { %v515_v49 = vld [vmem:[#allocation7 + $0x5c8] sm:$0xff]  ;;  %v2909_v58 = vpack.c.bf16 %v518_v54, %v514_v53  ;;  %v538_v9 = vld [vmem:[#allocation7 + $0x680] sm:$0xff] }
  0x9d   :  { %2858 = vmatpush1.bf16.msra.mxu1 %v2857_v33  ;;  %v2893_v33 = vpack.c.bf16 %v486_v30, %v482_v29  ;;  %v519_v50 = vld [vmem:[#allocation7 + $0x5e8] sm:$0xff]  ;;  %v546_v20 = vld [vmem:[#allocation7 + $0x6c0] sm:$0xff] }
  0x9e   :  { %2860 = vmatprep.subr.bf16.mxu1 %v2859_v34  ;;  %v2895_v34 = vpack.c.bf16 %v495_v32, %v491_v31  ;;  %v527_v56 = vld [vmem:[#allocation7 + $0x628] sm:$0xff]  ;;  %v554_v26 = vld [vmem:[#allocation7 + $0x700] sm:$0xff] }
  0x9f   :  { %v535_v0 = vld [vmem:[#allocation7 + $0x668] sm:$0xff]  ;;  %v562_v32 = vld [vmem:[#allocation7 + $0x740] sm:$0xff] }
  0xa0   :  { %v539_v5 = vld [vmem:[#allocation7 + $0x688] sm:$0xff]  ;;  %v578_v53 = vld [vmem:[#allocation7 + $0x7c0] sm:$0xff] }
  0xa1   :  { %2862 = vmatpush1.bf16.msra.mxu1 %v2861_v39  ;;  %v2897_v39 = vpack.c.bf16 %v494_v36, %v490_v35  ;;  %v543_v6 = vld [vmem:[#allocation7 + $0x6a8] sm:$0xff]  ;;  %v582_v54 = vld [vmem:[#allocation7 + $0x7e0] sm:$0xff] }
  0xa2   :  { %2864 = vmatprep.subr.bf16.mxu1 %v2863_v40  ;;  %v2899_v40 = vpack.c.bf16 %v503_v38, %v499_v37  ;;  %v2919_v8 = vpack.c.bf16 %v543_v6, %v539_v5  ;;  %v551_v17 = vld [vmem:[#allocation7 + $0x6e8] sm:$0xff]  ;;  %v450_v38 = vld [vmem:[#allocation7 + $0x3c0] sm:$0xff]  ;;  %v341_v5 = vld [vmem:[#allocation7 + $0x58] sm:$0xff] }
  0xa3   :  { %v559_v23 = vld [vmem:[#allocation7 + $0x728] sm:$0xff]  ;;  %v345_v6 = vld [vmem:[#allocation7 + $0x78] sm:$0xff] }
  0xa4   :  { %v567_v29 = vld [vmem:[#allocation7 + $0x768] sm:$0xff] }
  0xa5   :  { %2866 = vmatpush1.bf16.msra.mxu1 %v2865_v45  ;;  %v2901_v45 = vpack.c.bf16 %v502_v42, %v498_v41  ;;  %v451_v35 = vld [vmem:[#allocation7 + $0x3c8] sm:$0xff] }
  0xa6   :  { %2868 = vmatprep.subr.bf16.mxu1 %v2867_v46  ;;  %v2903_v46 = vpack.c.bf16 %v511_v44, %v507_v43  ;;  %v455_v36 = vld [vmem:[#allocation7 + $0x3e8] sm:$0xff]  ;;  %v570_v43 = vld [vmem:[#allocation7 + $0x780] sm:$0xff] }
  0xa7   :  { %v2875_v37 = vpack.c.bf16 %v455_v36, %v451_v35  ;;  %v575_v42 = vld [vmem:[#allocation7 + $0x7a8] sm:$0xff]  ;;  %v574_v44 = vld [vmem:[#allocation7 + $0x7a0] sm:$0xff] }
  0xa9   :  { %2870 = vmatpush1.bf16.msra.mxu1 %v2869_v51  ;;  %v2905_v51 = vpack.c.bf16 %v510_v48, %v506_v47  ;;  %v333_v47 = vld [vmem:[#allocation7 + $0x18] sm:$0xff] }
  0xaa   :  { %2872 = vmatprep.subr.bf16.mxu1 %v2871_v52  ;;  %v2907_v52 = vpack.c.bf16 %v519_v50, %v515_v49  ;;  %v337_v48 = vld [vmem:[#allocation7 + $0x38] sm:$0xff]  ;;  %v579_v50 = vld [vmem:[#allocation7 + $0x7c8] sm:$0xff] }
  0xab   :  { %v2943_v49 = vpack.c.bf16 %v337_v48, %v333_v47  ;;  %v1071_v48 = vld [vmem:[#allocation7 + $0x808] sm:$0xff] }
  0xad   :  { %2874 = vmatpush1.bf16.msra.mxu1 %v2873_v55  ;;  %v523_v55 = vld [vmem:[#allocation7 + $0x608] sm:$0xff] }
  0xae   :  { %2876 = vmatprep.subr.bf16.mxu1 %v2875_v37  ;;  %v348_v37 = vld [vmem:[#allocation7 + $0x90] sm:$0xff] }
 0x100   :  { %v127_v59 = vpop.xlane.xlu0 %126 }
 0x101   :  { %v133_v61 = vmul.f32 0.00390625, %v127_v59  ;;  %v2911_v59 = vpack.c.bf16 %v527_v56, %v523_v55  ;;  %v2941_v55 = vpack.c.bf16 %v582_v54, %v578_v53  ;;  %v4167_v56 = vsub.s32 1, %v4151_v57  ;;  %v365_v54 = vld [vmem:[#allocation7 + $0x118] sm:$0xff] }
 0x103   :  { %v166_v2 = vrot.slane %v133_v61, %v4154_v60  ;;  %v522_v61 = vld [vmem:[#allocation7 + $0x600] sm:$0xff] }
 0x104   :  { %v132_v62 = vpop.xlane.xlu0 %131 }
 0x105   :  { %v134_v63 = vmul.f32 0.00390625, %v132_v62  ;;  %v526_v62 = vld [vmem:[#allocation7 + $0x620] sm:$0xff] }
 0x106   :  { %v2913_v1 = vpack.c.bf16 %v526_v62, %v522_v61  ;;  %v4170_v61 = vsub.s32 0, %v4151_v57 }
 0x107   :  { %v170_v3 = vrot.slane %v134_v63, %v4154_v60  ;;  %v531_v63 = vld [vmem:[#allocation7 + $0x648] sm:$0xff] }
 0x109   :  { %v172_v7 = vsel %vm171_vm1, %v170_v3, %v166_v2  ;;  %v2915_v2 = vpack.c.bf16 %v535_v0, %v531_v63  ;;  %v530_v3 = vld [vmem:[#allocation7 + $0x640] sm:$0xff]  ;;  %v153_v63 = vsub.s32 3, %v4151_v57 }
 0x10a   :  { %2763 = vmatmul.mubr.msk.f32.vlgmr.msra.gmra.mrb[0].mxu0 %vm177_vm2, %v172_v7 }
 0x10b   :  { %2765 = vmatpush1.msk.msra.mxu0 %vm122_vm0, %v4133_v13  ;;  %323 = vmatprep.mubr.f32.mxu0 %v3971_v12 }
 0x10c   :  { %2880 = vmatprep.subr.bf16.mxu0 %v2879_v4  ;;  %v534_v4 = vld [vmem:[#allocation7 + $0x660] sm:$0xff] }
 0x10e   :  { %2766 = vmatmul.mubr.msk.f32.vlgmr.msra.gmra.mrb[2].mxu0 %vm177_vm2, %v172_v7  ;;  %v2917_v7 = vpack.c.bf16 %v534_v4, %v530_v3  ;;  %v336_v3 = vld [vmem:[#allocation7 + $0x30] sm:$0xff] }
 0x10f   :  { %2882 = vmatpush1.bf16.msra.mxu0 %v2881_v15  ;;  %v542_v15 = vld [vmem:[#allocation7 + $0x6a0] sm:$0xff] }
 0x110   :  { %2884 = vmatprep.subr.bf16.mxu0 %v2883_v16  ;;  %v547_v16 = vld [vmem:[#allocation7 + $0x6c8] sm:$0xff]  ;;  %v2921_v18 = vpack.c.bf16 %v542_v15, %v538_v9 }
 0x111   :  { %v2923_v19 = vpack.c.bf16 %v551_v17, %v547_v16  ;;  %v340_v17 = vld [vmem:[#allocation7 + $0x50] sm:$0xff] }
 0x113   :  { %2886 = vmatpush1.bf16.msra.mxu0 %v2885_v21  ;;  %v550_v21 = vld [vmem:[#allocation7 + $0x6e0] sm:$0xff] }
 0x114   :  { %2888 = vmatprep.subr.bf16.mxu0 %v2887_v22  ;;  %v555_v22 = vld [vmem:[#allocation7 + $0x708] sm:$0xff]  ;;  %v2925_v24 = vpack.c.bf16 %v550_v21, %v546_v20  ;;  %v2947_v21 = vpack.c.bf16 %v345_v6, %v341_v5  ;;  %v364_v6 = vld [vmem:[#allocation7 + $0x110] sm:$0xff] }
 0x115   :  { %v2927_v25 = vpack.c.bf16 %v559_v23, %v555_v22 }
 0x117   :  { %2890 = vmatpush1.bf16.msra.mxu0 %v2889_v27  ;;  %v558_v27 = vld [vmem:[#allocation7 + $0x720] sm:$0xff] }
 0x118   :  { %2892 = vmatprep.subr.bf16.mxu0 %v2891_v28  ;;  %v563_v28 = vld [vmem:[#allocation7 + $0x748] sm:$0xff]  ;;  %v2929_v30 = vpack.c.bf16 %v558_v27, %v554_v26  ;;  %v353_v26 = vld [vmem:[#allocation7 + $0xb8] sm:$0xff] }
 0x119   :  { %v2931_v31 = vpack.c.bf16 %v567_v29, %v563_v28  ;;  %v1615_v29 = vld [vmem:[%s4390_s2 + $0x8] sm:$0x77] }
 0x11b   :  { %2894 = vmatpush1.bf16.msra.mxu0 %v2893_v33  ;;  %v566_v33 = vld [vmem:[#allocation7 + $0x760] sm:$0xff] }
 0x11c   :  { %2896 = vmatprep.subr.bf16.mxu0 %v2895_v34  ;;  %v2933_v34 = vpack.c.bf16 %v566_v33, %v562_v32  ;;  %v1619_v32 = vcombine.high %v1615_v29, %v1615_v29  ;;  %v1627_v33 = vsel %vm122_vm0, %v1615_v29, 0.0  ;;  %v381_v29 = vld [vmem:[#allocation7 + $0x198] sm:$0xff] }
 0x11f   :  { %2898 = vmatpush1.bf16.msra.mxu0 %v2897_v39  ;;  %v454_v39 = vld [vmem:[#allocation7 + $0x3e0] sm:$0xff] }
 0x120   :  { %2900 = vmatprep.subr.bf16.mxu0 %v2899_v40  ;;  %v571_v40 = vld [vmem:[#allocation7 + $0x788] sm:$0xff]  ;;  %v2877_v41 = vpack.c.bf16 %v454_v39, %v450_v38  ;;  %v352_v38 = vld [vmem:[#allocation7 + $0xb0] sm:$0xff] }
 0x122   :  { %2878 = vmatpush1.bf16.msra.mxu1 %v2877_v41 }
 0x123   :  { %2902 = vmatpush1.bf16.msra.mxu0 %v2901_v45  ;;  %v2935_v45 = vpack.c.bf16 %v575_v42, %v571_v40  ;;  %2944 = vmatprep.subr.bf16.mxu1 %v2943_v49  ;;  %v357_v42 = vld [vmem:[#allocation7 + $0xd8] sm:$0xff]  ;;  %v1075_v49 = vld [vmem:[#allocation7 + $0x828] sm:$0xff] }
 0x124   :  { %2904 = vmatprep.subr.bf16.mxu0 %v2903_v46  ;;  %v2937_v46 = vpack.c.bf16 %v574_v44, %v570_v43  ;;  %v361_v43 = vld [vmem:[#allocation7 + $0xf8] sm:$0xff]  ;;  %v1628_v44 = vsel %vm122_vm0, %v1619_v32, 0.0  ;;  %v1086_v32 = vld [vmem:[#allocation7 + $0x880] sm:$0xff] }
 0x125   :  { %v2955_v53 = vpack.c.bf16 %v361_v43, %v357_v42  ;;  %v389_v43 = vld [vmem:[#allocation7 + $0x1d8] sm:$0xff] }
 0x127   :  { %2906 = vmatpush1.bf16.msra.mxu0 %v2905_v51  ;;  %v583_v51 = vld [vmem:[#allocation7 + $0x7e8] sm:$0xff] }
 0x128   :  { %2908 = vmatprep.subr.bf16.mxu0 %v2907_v52  ;;  %v2939_v52 = vpack.c.bf16 %v583_v51, %v579_v50  ;;  %v2953_v50 = vpack.c.bf16 %v352_v38, %v348_v37  ;;  %v356_v51 = vld [vmem:[#allocation7 + $0xd0] sm:$0xff]  ;;  %v1099_v37 = vld [vmem:[#allocation7 + $0x8e8] sm:$0xff] }
 0x12b   :  { %2910 = vmatpush1.bf16.msra.mxu0 %v2909_v58  ;;  %v907_v58 = vpop.xlane.xlu1 %906 }
 0x12c   :  { %2912 = vmatprep.subr.bf16.mxu0 %v2911_v59  ;;  %v137_v59 = vld [vmem:[#allocation5] sm:$0xf]  ;;  %v913_v22 = vmul.f32 0.00390625, %v907_v58  ;;  %v1074_v58 = vld [vmem:[#allocation7 + $0x820] sm:$0xff] }
 0x12d   :  { %v4173_v62 = vrot.slane %v137_v59, %v4167_v56  ;;  %v4177_v0 = vrot.slane %v137_v59, %v4170_v61  ;;  %v4183_v15 = vrot.slane %v137_v59, %v153_v63 }
 0x12e   :  { %v920_v40 = vrot.slane %v913_v22, %v4154_v60  ;;  %v377_v22 = vld [vmem:[#allocation7 + $0x178] sm:$0xff] }
 0x12f   :  { %2914 = vmatpush1.bf16.msra.mxu0 %v2913_v1  ;;  %v149_v1 = vsub.s32 2, %v4151_v57  ;;  %v2634_v57 = vld [vmem:[%s4397_s9 + $0x68] sm:$0xff] }
 0x130   :  { %2916 = vmatprep.subr.bf16.mxu0 %v2915_v2  ;;  %v332_v2 = vld [vmem:[#allocation7 + $0x10] sm:$0xff] }
 0x131   :  { %v2945_v16 = vpack.c.bf16 %v336_v3, %v332_v2  ;;  %v4190_v20 = vrot.slane %v137_v59, %v149_v1  ;;  %v369_v2 = vld [vmem:[#allocation7 + $0x138] sm:$0xff]  ;;  %v3071_v3 = vpack.c.bf16 %v1075_v49, %v1071_v48  ;;  %v1103_v48 = vld [vmem:[#allocation7 + $0x908] sm:$0xff] }
 0x132   :  { %v1107_v49 = vld [vmem:[#allocation7 + $0x928] sm:$0xff] }
 0x133   :  { %2918 = vmatpush1.bf16.msra.mxu0 %v2917_v7 }
 0x134   :  { %2920 = vmatprep.subr.bf16.mxu0 %v2919_v8  ;;  %v912_v8 = vpop.xlane.xlu1 %911 }
 0x135   :  { %v914_v23 = vmul.f32 0.00390625, %v912_v8 }
 0x137   :  { %2922 = vmatpush1.bf16.msra.mxu0 %v2921_v18  ;;  %v344_v18 = vld [vmem:[#allocation7 + $0x70] sm:$0xff]  ;;  %v924_v41 = vrot.slane %v914_v23, %v4154_v60  ;;  %v1087_v23 = vld [vmem:[#allocation7 + $0x888] sm:$0xff] }
 0x138   :  { %2924 = vmatprep.subr.bf16.mxu0 %v2923_v19  ;;  %v2949_v28 = vpack.c.bf16 %v344_v18, %v340_v17  ;;  %v1078_v18 = vld [vmem:[#allocation7 + $0x840] sm:$0xff] }
 0x139   :  { %v925_v59 = vsel %vm171_vm1, %v924_v41, %v920_v40  ;;  %v384_v40 = vld [vmem:[#allocation7 + $0x1b0] sm:$0xff] }
 0x13b   :  { %2926 = vmatpush1.bf16.msra.mxu0 %v2925_v24 }
 0x13c   :  { %2928 = vmatprep.subr.bf16.mxu0 %v2927_v25  ;;  %v349_v25 = vld [vmem:[#allocation7 + $0x98] sm:$0xff] }
 0x13d   :  { %v2951_v36 = vpack.c.bf16 %v353_v26, %v349_v25  ;;  %v372_v25 = vld [vmem:[#allocation7 + $0x150] sm:$0xff] }
 0x13e   :  { %v376_v26 = vld [vmem:[#allocation7 + $0x170] sm:$0xff] }
 0x13f   :  { %2930 = vmatpush1.bf16.msra.mxu0 %v2929_v30  ;;  %v1614_v30 = vld [vmem:[%s4390_s2] sm:$0x77]  ;;  %v2965_v38 = vpack.c.bf16 %v376_v26, %v372_v25 }
 0x140   :  { %2932 = vmatprep.subr.bf16.mxu0 %v2931_v31  ;;  %v1622_v39 = vsel %vm122_vm0, %v1614_v30, 0.0  ;;  %v404_v25 = vld [vmem:[#allocation7 + $0x250] sm:$0xff] }
 0x141   :  { %v408_v26 = vld [vmem:[#allocation7 + $0x270] sm:$0xff] }
 0x143   :  { %2934 = vmatpush1.bf16.msra.mxu0 %v2933_v34  ;;  %v1618_v34 = vcombine.high %v1614_v30, %v1614_v30 }
 0x144   :  { %2936 = vmatprep.subr.bf16.mxu0 %v2935_v45 }
 0x145   :  { %v1623_v45 = vsel %vm122_vm0, %v1618_v34, 0.0  ;;  %v385_v34 = vld [vmem:[#allocation7 + $0x1b8] sm:$0xff] }
 0x146   :  { %v1624_v47 = vadd.f32 %v1623_v45, %v1622_v39  ;;  %v380_v39 = vld [vmem:[#allocation7 + $0x190] sm:$0xff]  ;;  %v2967_v42 = vpack.c.bf16 %v385_v34, %v381_v29  ;;  %v1094_v45 = vld [vmem:[#allocation7 + $0x8c0] sm:$0xff]  ;;  %v413_v29 = vld [vmem:[#allocation7 + $0x298] sm:$0xff] }
 0x147   :  { %2938 = vmatpush1.bf16.msra.mxu0 %v2937_v46  ;;  %v1629_v46 = vadd.f32 %v1628_v44, %v1627_v33  ;;  %v1090_v33 = vld [vmem:[#allocation7 + $0x8a0] sm:$0xff]  ;;  %v417_v34 = vld [vmem:[#allocation7 + $0x2b8] sm:$0xff] }
 0x148   :  { %2940 = vmatprep.subr.bf16.mxu0 %v2939_v52  ;;  %v360_v52 = vld [vmem:[#allocation7 + $0xf0] sm:$0xff]  ;;  %1625 = vadd.xlane.f32.xlu0 %v1624_v47  ;;  %v3081_v41 = vpack.c.bf16 %v1090_v33, %v1086_v32  ;;  %v393_v47 = vld [vmem:[#allocation7 + $0x1f8] sm:$0xff]  ;;  %v1118_v32 = vld [vmem:[#allocation7 + $0x980] sm:$0xff] }
 0x149   :  { %1630 = vadd.xlane.f32.xlu1 %v1629_v46  ;;  %v2957_v5 = vpack.c.bf16 %v360_v52, %v356_v51  ;;  %v1098_v46 = vld [vmem:[#allocation7 + $0x8e0] sm:$0xff]  ;;  %v388_v51 = vld [vmem:[#allocation7 + $0x1d0] sm:$0xff] }
 0x14a   :  { %v392_v52 = vld [vmem:[#allocation7 + $0x1f0] sm:$0xff]  ;;  %v1122_v33 = vld [vmem:[#allocation7 + $0x9a0] sm:$0xff] }
 0x14b   :  { %2942 = vmatpush1.bf16.msra.mxu0 %v2941_v55  ;;  %v1070_v55 = vld [vmem:[#allocation7 + $0x800] sm:$0xff] }
 0x14c   :  { %2767 = vmatprep.subr.msk.mxu0 %vm122_vm0, %v4126_v11  ;;  %v3073_v8 = vpack.c.bf16 %v1074_v58, %v1070_v55  ;;  %v397_v55 = vld [vmem:[#allocation7 + $0x218] sm:$0xff]  ;;  %v3087_v58 = vpack.c.bf16 %v1107_v49, %v1103_v48  ;;  %v1135_v48 = vld [vmem:[#allocation7 + $0xa08] sm:$0xff] }
 0x14d   :  { %v1139_v49 = vld [vmem:[#allocation7 + $0xa28] sm:$0xff] }
 0x1dd   :  { %v254_v4 = vpop.f32.mrb[0].mxu0 }
 0x1de   :  { %v256_v7 = vpop.f32.mrb[1].mxu0  ;;  %v4186_v19 = vadd.f32 %v254_v4, %v4177_v0  ;;  %v1079_v4 = vld [vmem:[#allocation7 + $0x848] sm:$0xff] }
 0x1df   :  { %v257_v9 = vadd.f32 %v256_v7, %v4173_v62  ;;  %v368_v7 = vld [vmem:[#allocation7 + $0x130] sm:$0xff] }
 0x1e1   :  { %v325_v24 = vpop.f32.mrb[2].mxu0  ;;  %650 = vmatprep.mubr.f32.mxu1 %v257_v9 }
 0x1e2   :  { %v327_v27 = vpop.f32.mrb[3].mxu0  ;;  %651 = vmatmul.mubr.f32.vlgmr.msra.gmra.mrb[0].mxu1 %v4186_v19  ;;  %v4204_v35 = vadd.f32 %v325_v24, %v4190_v20  ;;  %v1091_v24 = vld [vmem:[#allocation7 + $0x8a8] sm:$0xff] }
 0x1e3   :  { %v4200_v31 = vadd.f32 %v327_v27, %v4183_v15  ;;  %2946 = vmatpush1.bf16.msra.mxu1 %v2945_v16  ;;  %792 = vmatprep.mubr.f32.mxu1 %v257_v9  ;;  %v2959_v9 = vpack.c.bf16 %v369_v2, %v365_v54  ;;  %v373_v16 = vld [vmem:[#allocation7 + $0x158] sm:$0xff]  ;;  %v3079_v30 = vpack.c.bf16 %v1091_v24, %v1087_v23  ;;  %v1106_v2 = vld [vmem:[#allocation7 + $0x920] sm:$0xff]  ;;  %v1119_v23 = vld [vmem:[#allocation7 + $0x988] sm:$0xff] }
 0x1e4   :  { %2948 = vmatprep.subr.bf16.mxu1 %v2947_v21  ;;  %v1082_v21 = vld [vmem:[#allocation7 + $0x860] sm:$0xff]  ;;  %v2971_v54 = vpack.c.bf16 %v393_v47, %v389_v43  ;;  %v1123_v24 = vld [vmem:[#allocation7 + $0x9a8] sm:$0xff]  ;;  %v421_v43 = vld [vmem:[#allocation7 + $0x2d8] sm:$0xff] }
 0x1e5   :  { %721 = vmatprep.mubr.f32.mxu0 %v4200_v31  ;;  %v3077_v27 = vpack.c.bf16 %v1082_v21, %v1078_v18  ;;  %v1110_v18 = vld [vmem:[#allocation7 + $0x940] sm:$0xff]  ;;  %v425_v47 = vld [vmem:[#allocation7 + $0x2f8] sm:$0xff] }
 0x1e6   :  { %722 = vmatmul.mubr.f32.vlgmr.msra.gmra.mrb[4].mxu0 %v4204_v35  ;;  %v1114_v21 = vld [vmem:[#allocation7 + $0x960] sm:$0xff] }
 0x1e7   :  { %2950 = vmatpush1.bf16.msra.mxu1 %v2949_v28  ;;  %2768 = vmatpush1.msk.msra.mxu0 %vm122_vm0, %v4122_v10  ;;  %v1083_v10 = vld [vmem:[#allocation7 + $0x868] sm:$0xff]  ;;  %v2963_v28 = vpack.c.bf16 %v377_v22, %v373_v16  ;;  %v405_v16 = vld [vmem:[#allocation7 + $0x258] sm:$0xff] }
 0x1e8   :  { %2952 = vmatprep.subr.bf16.mxu1 %v2951_v36  ;;  %992 = vmatprep.mubr.f32.mxu0 %v3971_v12  ;;  %v3075_v17 = vpack.c.bf16 %v1083_v10, %v1079_v4  ;;  %v1095_v36 = vld [vmem:[#allocation7 + $0x8c8] sm:$0xff]  ;;  %v409_v22 = vld [vmem:[#allocation7 + $0x278] sm:$0xff] }
 0x1e9   :  { %2770 = vmatprep.subr.msk.mxu0 %vm122_vm0, %v4137_v14  ;;  %v3083_v44 = vpack.c.bf16 %v1099_v37, %v1095_v36  ;;  %v1111_v4 = vld [vmem:[#allocation7 + $0x948] sm:$0xff] }
 0x1ea   :  { %2769 = vmatmul.mubr.msk.f32.vlgmr.msra.gmra.mrb[6].mxu0 %vm177_vm2, %v925_v59  ;;  %v1115_v10 = vld [vmem:[#allocation7 + $0x968] sm:$0xff] }
 0x1eb   :  { %2954 = vmatpush1.bf16.msra.mxu1 %v2953_v50  ;;  %2771 = vmatpush1.msk.msra.mxu0 %vm122_vm0, %v4133_v13  ;;  %v2961_v13 = vpack.c.bf16 %v368_v7, %v364_v6  ;;  %v2969_v50 = vpack.c.bf16 %v384_v40, %v380_v39  ;;  %v396_v6 = vld [vmem:[#allocation7 + $0x210] sm:$0xff]  ;;  %v1127_v36 = vld [vmem:[#allocation7 + $0x9c8] sm:$0xff] }
 0x1ec   :  { %2956 = vmatprep.subr.bf16.mxu1 %v2955_v53  ;;  %1063 = vmatprep.mubr.f32.mxu0 %v3971_v12  ;;  %v3085_v53 = vpack.c.bf16 %v1098_v46, %v1094_v45  ;;  %v400_v7 = vld [vmem:[#allocation7 + $0x230] sm:$0xff]  ;;  %v1131_v37 = vld [vmem:[#allocation7 + $0x9e8] sm:$0xff]  ;;  %v1126_v45 = vld [vmem:[#allocation7 + $0x9c0] sm:$0xff] }
 0x1ed   :  { %3072 = vmatprep.subr.bf16.mxu0 %v3071_v3  ;;  %v401_v3 = vld [vmem:[#allocation7 + $0x238] sm:$0xff]  ;;  %v412_v39 = vld [vmem:[#allocation7 + $0x290] sm:$0xff]  ;;  %v1130_v46 = vld [vmem:[#allocation7 + $0x9e0] sm:$0xff] }
 0x1ee   :  { %2772 = vmatmul.mubr.msk.f32.vlgmr.msra.gmra.mrb[8].mxu0 %vm177_vm2, %v925_v59  ;;  %v1102_v59 = vld [vmem:[#allocation7 + $0x900] sm:$0xff]  ;;  %v416_v40 = vld [vmem:[#allocation7 + $0x2b0] sm:$0xff] }
 0x1ef   :  { %2958 = vmatpush1.bf16.msra.mxu1 %v2957_v5  ;;  %3074 = vmatpush1.bf16.msra.mxu0 %v3073_v8  ;;  %v2973_v5 = vpack.c.bf16 %v392_v52, %v388_v51  ;;  %v3089_v8 = vpack.c.bf16 %v1106_v2, %v1102_v59  ;;  %v420_v51 = vld [vmem:[#allocation7 + $0x2d0] sm:$0xff]  ;;  %v1134_v59 = vld [vmem:[#allocation7 + $0xa00] sm:$0xff] }
 0x1f0   :  { %2960 = vmatprep.subr.bf16.mxu1 %v2959_v9  ;;  %3076 = vmatprep.subr.bf16.mxu0 %v3075_v17  ;;  %v2975_v9 = vpack.c.bf16 %v401_v3, %v397_v55  ;;  %v3091_v17 = vpack.c.bf16 %v1115_v10, %v1111_v4  ;;  %v424_v52 = vld [vmem:[#allocation7 + $0x2f0] sm:$0xff]  ;;  %v429_v55 = vld [vmem:[#allocation7 + $0x318] sm:$0xff]  ;;  %v1138_v2 = vld [vmem:[#allocation7 + $0xa20] sm:$0xff] }
 0x1f1   :  { %v433_v3 = vld [vmem:[#allocation7 + $0x338] sm:$0xff]  ;;  %v1143_v4 = vld [vmem:[#allocation7 + $0xa48] sm:$0xff] }
 0x1f2   :  { %v1147_v10 = vld [vmem:[#allocation7 + $0xa68] sm:$0xff] }
 0x1f3   :  { %2962 = vmatpush1.bf16.msra.mxu1 %v2961_v13  ;;  %3078 = vmatpush1.bf16.msra.mxu0 %v3077_v27  ;;  %v2977_v13 = vpack.c.bf16 %v400_v7, %v396_v6  ;;  %v3093_v27 = vpack.c.bf16 %v1114_v21, %v1110_v18  ;;  %v428_v6 = vld [vmem:[#allocation7 + $0x310] sm:$0xff]  ;;  %v1142_v18 = vld [vmem:[#allocation7 + $0xa40] sm:$0xff] }
 0x1f4   :  { %2964 = vmatprep.subr.bf16.mxu1 %v2963_v28  ;;  %3080 = vmatprep.subr.bf16.mxu0 %v3079_v30  ;;  %v2979_v28 = vpack.c.bf16 %v409_v22, %v405_v16  ;;  %v3095_v30 = vpack.c.bf16 %v1123_v24, %v1119_v23  ;;  %v432_v7 = vld [vmem:[#allocation7 + $0x330] sm:$0xff]  ;;  %v437_v16 = vld [vmem:[#allocation7 + $0x358] sm:$0xff]  ;;  %v1146_v21 = vld [vmem:[#allocation7 + $0xa60] sm:$0xff] }
 0x1f5   :  { %v441_v22 = vld [vmem:[#allocation7 + $0x378] sm:$0xff]  ;;  %v1151_v23 = vld [vmem:[#allocation7 + $0xa88] sm:$0xff] }
 0x1f6   :  { %v1155_v24 = vld [vmem:[#allocation7 + $0xaa8] sm:$0xff] }
 0x1f7   :  { %2966 = vmatpush1.bf16.msra.mxu1 %v2965_v38  ;;  %3082 = vmatpush1.bf16.msra.mxu0 %v3081_v41  ;;  %v2981_v38 = vpack.c.bf16 %v408_v26, %v404_v25  ;;  %v3097_v41 = vpack.c.bf16 %v1122_v33, %v1118_v32  ;;  %v436_v25 = vld [vmem:[#allocation7 + $0x350] sm:$0xff]  ;;  %v1150_v32 = vld [vmem:[#allocation7 + $0xa80] sm:$0xff] }
 0x1f8   :  { %2968 = vmatprep.subr.bf16.mxu1 %v2967_v42  ;;  %3084 = vmatprep.subr.bf16.mxu0 %v3083_v44  ;;  %v2983_v42 = vpack.c.bf16 %v417_v34, %v413_v29  ;;  %v3099_v44 = vpack.c.bf16 %v1131_v37, %v1127_v36  ;;  %v440_v26 = vld [vmem:[#allocation7 + $0x370] sm:$0xff]  ;;  %v445_v29 = vld [vmem:[#allocation7 + $0x398] sm:$0xff]  ;;  %v1154_v33 = vld [vmem:[#allocation7 + $0xaa0] sm:$0xff] }
 0x1f9   :  { %v449_v34 = vld [vmem:[#allocation7 + $0x3b8] sm:$0xff]  ;;  %v1159_v36 = vld [vmem:[#allocation7 + $0xac8] sm:$0xff] }
 0x1fa   :  { %v1163_v37 = vld [vmem:[#allocation7 + $0xae8] sm:$0xff] }
 0x1fb   :  { %2970 = vmatpush1.bf16.msra.mxu1 %v2969_v50  ;;  %3086 = vmatpush1.bf16.msra.mxu0 %v3085_v53  ;;  %v2985_v50 = vpack.c.bf16 %v416_v40, %v412_v39  ;;  %v3101_v53 = vpack.c.bf16 %v1130_v46, %v1126_v45  ;;  %v444_v39 = vld [vmem:[#allocation7 + $0x390] sm:$0xff]  ;;  %v1158_v45 = vld [vmem:[#allocation7 + $0xac0] sm:$0xff] }
 0x1fc   :  { %2972 = vmatprep.subr.bf16.mxu1 %v2971_v54  ;;  %3088 = vmatprep.subr.bf16.mxu0 %v3087_v58  ;;  %v2987_v54 = vpack.c.bf16 %v425_v47, %v421_v43  ;;  %v3103_v58 = vpack.c.bf16 %v1139_v49, %v1135_v48  ;;  %v448_v40 = vld [vmem:[#allocation7 + $0x3b0] sm:$0xff]  ;;  %v453_v43 = vld [vmem:[#allocation7 + $0x3d8] sm:$0xff]  ;;  %v1162_v46 = vld [vmem:[#allocation7 + $0xae0] sm:$0xff] }
 0x1fd   :  { %v457_v47 = vld [vmem:[#allocation7 + $0x3f8] sm:$0xff]  ;;  %v1167_v48 = vld [vmem:[#allocation7 + $0xb08] sm:$0xff] }
 0x1fe   :  { %v1171_v49 = vld [vmem:[#allocation7 + $0xb28] sm:$0xff] }
 0x1ff   :  { %2974 = vmatpush1.bf16.msra.mxu1 %v2973_v5  ;;  %3090 = vmatpush1.bf16.msra.mxu0 %v3089_v8  ;;  %v2989_v5 = vpack.c.bf16 %v424_v52, %v420_v51  ;;  %v3105_v8 = vpack.c.bf16 %v1138_v2, %v1134_v59  ;;  %v452_v51 = vld [vmem:[#allocation7 + $0x3d0] sm:$0xff]  ;;  %v3117_v52 = vpack.c.bf16 %v1162_v46, %v1158_v45  ;;  %v1170_v59 = vld [vmem:[#allocation7 + $0xb20] sm:$0xff]  ;;  %v461_v2 = vld [vmem:[#allocation7 + $0x418] sm:$0xff] }
 0x200   :  { %2976 = vmatprep.subr.bf16.mxu1 %v2975_v9  ;;  %3092 = vmatprep.subr.bf16.mxu0 %v3091_v17  ;;  %v2991_v9 = vpack.c.bf16 %v433_v3, %v429_v55  ;;  %v3107_v17 = vpack.c.bf16 %v1147_v10, %v1143_v4  ;;  %v3119_v55 = vpack.c.bf16 %v1171_v49, %v1167_v48  ;;  %v465_v3 = vld [vmem:[#allocation7 + $0x438] sm:$0xff]  ;;  %v508_v48 = vld [vmem:[#allocation7 + $0x590] sm:$0xff]  ;;  %v1175_v49 = vld [vmem:[#allocation7 + $0xb48] sm:$0xff] }
 0x201   :  { %v509_v45 = vld [vmem:[#allocation7 + $0x598] sm:$0xff] }
 0x202   :  { %v513_v46 = vld [vmem:[#allocation7 + $0x5b8] sm:$0xff] }
 0x203   :  { %2978 = vmatpush1.bf16.msra.mxu1 %v2977_v13  ;;  %3094 = vmatpush1.bf16.msra.mxu0 %v3093_v27  ;;  %v2993_v13 = vpack.c.bf16 %v432_v7, %v428_v6  ;;  %v3109_v27 = vpack.c.bf16 %v1146_v21, %v1142_v18  ;;  %v460_v6 = vld [vmem:[#allocation7 + $0x410] sm:$0xff] }
 0x204   :  { %2980 = vmatprep.subr.bf16.mxu1 %v2979_v28  ;;  %3096 = vmatprep.subr.bf16.mxu0 %v3095_v30  ;;  %v2995_v28 = vpack.c.bf16 %v441_v22, %v437_v16  ;;  %v3111_v30 = vpack.c.bf16 %v1155_v24, %v1151_v23  ;;  %v464_v7 = vld [vmem:[#allocation7 + $0x430] sm:$0xff]  ;;  %v477_v22 = vld [vmem:[#allocation7 + $0x498] sm:$0xff] }
 0x205   :  { %v3009_v16 = vpack.c.bf16 %v464_v7, %v460_v6  ;;  %v468_v18 = vld [vmem:[#allocation7 + $0x450] sm:$0xff]  ;;  %v481_v23 = vld [vmem:[#allocation7 + $0x4b8] sm:$0xff] }
 0x206   :  { %v472_v21 = vld [vmem:[#allocation7 + $0x470] sm:$0xff] }
 0x207   :  { %2982 = vmatpush1.bf16.msra.mxu1 %v2981_v38  ;;  %3098 = vmatpush1.bf16.msra.mxu0 %v3097_v41  ;;  %v2997_v38 = vpack.c.bf16 %v440_v26, %v436_v25  ;;  %v3113_v41 = vpack.c.bf16 %v1154_v33, %v1150_v32  ;;  %v3013_v24 = vpack.c.bf16 %v472_v21, %v468_v18  ;;  %v476_v25 = vld [vmem:[#allocation7 + $0x490] sm:$0xff]  ;;  %v529_v18 = vld [vmem:[#allocation7 + $0x638] sm:$0xff] }
 0x208   :  { %2984 = vmatprep.subr.bf16.mxu1 %v2983_v42  ;;  %3100 = vmatprep.subr.bf16.mxu0 %v3099_v44  ;;  %v2999_v42 = vpack.c.bf16 %v449_v34, %v445_v29  ;;  %v3115_v44 = vpack.c.bf16 %v1163_v37, %v1159_v36  ;;  %v480_v26 = vld [vmem:[#allocation7 + $0x4b0] sm:$0xff]  ;;  %v493_v34 = vld [vmem:[#allocation7 + $0x518] sm:$0xff] }
 0x209   :  { %v3017_v29 = vpack.c.bf16 %v480_v26, %v476_v25  ;;  %v484_v32 = vld [vmem:[#allocation7 + $0x4d0] sm:$0xff]  ;;  %v497_v36 = vld [vmem:[#allocation7 + $0x538] sm:$0xff] }
 0x20a   :  { %v488_v33 = vld [vmem:[#allocation7 + $0x4f0] sm:$0xff]  ;;  %v3023_v37 = vpack.c.bf16 %v497_v36, %v493_v34  ;;  %v1199_v36 = vld [vmem:[#allocation7 + $0xc08] sm:$0xff] }
 0x20b   :  { %2986 = vmatpush1.bf16.msra.mxu1 %v2985_v50  ;;  %3102 = vmatpush1.bf16.msra.mxu0 %v3101_v53  ;;  %v3001_v50 = vpack.c.bf16 %v448_v40, %v444_v39  ;;  %v3003_v53 = vpack.c.bf16 %v457_v47, %v453_v43  ;;  %v501_v39 = vld [vmem:[#allocation7 + $0x558] sm:$0xff]  ;;  %v500_v43 = vld [vmem:[#allocation7 + $0x550] sm:$0xff] }
 0x20c   :  { %2988 = vmatprep.subr.bf16.mxu1 %v2987_v54  ;;  %3104 = vmatprep.subr.bf16.mxu0 %v3103_v58  ;;  %v456_v54 = vld [vmem:[#allocation7 + $0x3f0] sm:$0xff]  ;;  %v1166_v58 = vld [vmem:[#allocation7 + $0xb00] sm:$0xff]  ;;  %v505_v40 = vld [vmem:[#allocation7 + $0x578] sm:$0xff] }
 0x20d   :  { %v3005_v4 = vpack.c.bf16 %v456_v54, %v452_v51  ;;  %v3121_v10 = vpack.c.bf16 %v1170_v59, %v1166_v58  ;;  %v3031_v51 = vpack.c.bf16 %v513_v46, %v509_v45  ;;  %v1174_v54 = vld [vmem:[#allocation7 + $0xb40] sm:$0xff]  ;;  %v517_v58 = vld [vmem:[#allocation7 + $0x5d8] sm:$0xff]  ;;  %v520_v7 = vld [vmem:[#allocation7 + $0x5f0] sm:$0xff] }
 0x20e   :  { %v521_v59 = vld [vmem:[#allocation7 + $0x5f8] sm:$0xff]  ;;  %v528_v26 = vld [vmem:[#allocation7 + $0x630] sm:$0xff] }
 0x20f   :  { %2990 = vmatpush1.bf16.msra.mxu1 %v2989_v5  ;;  %3106 = vmatpush1.bf16.msra.mxu0 %v3105_v8  ;;  %v3007_v5 = vpack.c.bf16 %v465_v3, %v461_v2  ;;  %v469_v8 = vld [vmem:[#allocation7 + $0x458] sm:$0xff]  ;;  %v3035_v6 = vpack.c.bf16 %v521_v59, %v517_v58  ;;  %v544_v45 = vld [vmem:[#allocation7 + $0x6b0] sm:$0xff] }
 0x210   :  { %2992 = vmatprep.subr.bf16.mxu1 %v2991_v9  ;;  %3108 = vmatprep.subr.bf16.mxu0 %v3107_v17  ;;  %v473_v9 = vld [vmem:[#allocation7 + $0x478] sm:$0xff]  ;;  %v556_v58 = vld [vmem:[#allocation7 + $0x710] sm:$0xff] }
 0x211   :  { %v3011_v17 = vpack.c.bf16 %v473_v9, %v469_v8  ;;  %v1182_v9 = vld [vmem:[#allocation7 + $0xb80] sm:$0xff]  ;;  %v549_v46 = vld [vmem:[#allocation7 + $0x6d8] sm:$0xff]  ;;  %v560_v59 = vld [vmem:[#allocation7 + $0x730] sm:$0xff] }
 0x213   :  { %2994 = vmatpush1.bf16.msra.mxu1 %v2993_v13  ;;  %3110 = vmatpush1.bf16.msra.mxu0 %v3109_v27  ;;  %v3015_v13 = vpack.c.bf16 %v481_v23, %v477_v22  ;;  %v485_v27 = vld [vmem:[#allocation7 + $0x4d8] sm:$0xff]  ;;  %v524_v23 = vld [vmem:[#allocation7 + $0x610] sm:$0xff] }
 0x214   :  { %2996 = vmatprep.subr.bf16.mxu1 %v2995_v28  ;;  %3112 = vmatprep.subr.bf16.mxu0 %v3111_v30  ;;  %v489_v28 = vld [vmem:[#allocation7 + $0x4f8] sm:$0xff]  ;;  %v3041_v34 = vpack.c.bf16 %v528_v26, %v524_v23 }
 0x215   :  { %v3019_v30 = vpack.c.bf16 %v489_v28, %v485_v27  ;;  %v1190_v28 = vld [vmem:[#allocation7 + $0xbc0] sm:$0xff]  ;;  %v1073_v26 = vld [vmem:[#allocation7 + $0x818] sm:$0xff] }
 0x217   :  { %2998 = vmatpush1.bf16.msra.mxu1 %v2997_v38  ;;  %3114 = vmatpush1.bf16.msra.mxu0 %v3113_v41  ;;  %v496_v38 = vld [vmem:[#allocation7 + $0x530] sm:$0xff] }
 0x218   :  { %3000 = vmatprep.subr.bf16.mxu1 %v2999_v42  ;;  %3116 = vmatprep.subr.bf16.mxu0 %v3115_v44  ;;  %v3027_v42 = vpack.c.bf16 %v505_v40, %v501_v39  ;;  %v504_v44 = vld [vmem:[#allocation7 + $0x570] sm:$0xff]  ;;  %v541_v40 = vld [vmem:[#allocation7 + $0x698] sm:$0xff] }
 0x219   :  { %v3029_v47 = vpack.c.bf16 %v504_v44, %v500_v43  ;;  %v540_v44 = vld [vmem:[#allocation7 + $0x690] sm:$0xff] }
 0x21b   :  { %3002 = vmatpush1.bf16.msra.mxu1 %v3001_v50  ;;  %3118 = vmatpush1.bf16.msra.mxu0 %v3117_v52  ;;  %v1179_v50 = vld [vmem:[#allocation7 + $0xb68] sm:$0xff]  ;;  %v512_v52 = vld [vmem:[#allocation7 + $0x5b0] sm:$0xff] }
 0x21c   :  { %3004 = vmatprep.subr.bf16.mxu1 %v3003_v53  ;;  %3120 = vmatprep.subr.bf16.mxu0 %v3119_v55  ;;  %v3123_v53 = vpack.c.bf16 %v1179_v50, %v1175_v49  ;;  %v1178_v55 = vld [vmem:[#allocation7 + $0xb60] sm:$0xff]  ;;  %v3033_v3 = vpack.c.bf16 %v512_v52, %v508_v48  ;;  %v3049_v48 = vpack.c.bf16 %v544_v45, %v540_v44  ;;  %v548_v50 = vld [vmem:[#allocation7 + $0x6d0] sm:$0xff]  ;;  %v557_v52 = vld [vmem:[#allocation7 + $0x718] sm:$0xff] }
 0x21d   :  { %v3125_v2 = vpack.c.bf16 %v1178_v55, %v1174_v54  ;;  %v1097_v44 = vld [vmem:[#allocation7 + $0x8d8] sm:$0xff] }
 0x21e   :  { %v1101_v45 = vld [vmem:[#allocation7 + $0x8f8] sm:$0xff] }
 0x21f   :  { %3006 = vmatpush1.bf16.msra.mxu1 %v3005_v4  ;;  %3122 = vmatpush1.bf16.msra.mxu0 %v3121_v10  ;;  %v516_v4 = vld [vmem:[#allocation7 + $0x5d0] sm:$0xff]  ;;  %v1183_v10 = vld [vmem:[#allocation7 + $0xb88] sm:$0xff] }
 0x220   :  { %3008 = vmatprep.subr.bf16.mxu1 %v3007_v5  ;;  %3124 = vmatprep.subr.bf16.mxu0 %v3123_v53  ;;  %v1187_v5 = vld [vmem:[#allocation7 + $0xba8] sm:$0xff]  ;;  %v3037_v22 = vpack.c.bf16 %v520_v7, %v516_v4  ;;  %v561_v53 = vld [vmem:[#allocation7 + $0x738] sm:$0xff]  ;;  %v3057_v4 = vpack.c.bf16 %v560_v59, %v556_v58 }
 0x221   :  { %v3127_v8 = vpack.c.bf16 %v1187_v5, %v1183_v10  ;;  %v3055_v55 = vpack.c.bf16 %v561_v53, %v557_v52  ;;  %v564_v5 = vld [vmem:[#allocation7 + $0x750] sm:$0xff]  ;;  %v573_v7 = vld [vmem:[#allocation7 + $0x798] sm:$0xff] }
 0x222   :  { %793 = vmatmul.mubr.f32.vlgmr.msra.gmra.mrb[2].mxu1 %v4186_v19  ;;  %v3021_v19 = vpack.c.bf16 %v488_v33, %v484_v32  ;;  %v537_v32 = vld [vmem:[#allocation7 + $0x678] sm:$0xff]  ;;  %v1104_v53 = vld [vmem:[#allocation7 + $0x910] sm:$0xff] }
 0x223   :  { %3010 = vmatpush1.bf16.msra.mxu1 %v3009_v16  ;;  %863 = vmatprep.mubr.f32.mxu1 %v4200_v31  ;;  %v492_v31 = vld [vmem:[#allocation7 + $0x510] sm:$0xff]  ;;  %v1186_v16 = vld [vmem:[#allocation7 + $0xba0] sm:$0xff]  ;;  %v1117_v58 = vld [vmem:[#allocation7 + $0x978] sm:$0xff] }
 0x224   :  { %3012 = vmatprep.subr.bf16.mxu1 %v3011_v17  ;;  %v3025_v41 = vpack.c.bf16 %v496_v38, %v492_v31  ;;  %3126 = vmatpush1.bf16.msra.mxu0 %v3125_v2  ;;  %v525_v17 = vld [vmem:[#allocation7 + $0x618] sm:$0xff]  ;;  %v3129_v21 = vpack.c.bf16 %v1186_v16, %v1182_v9  ;;  %v532_v31 = vld [vmem:[#allocation7 + $0x650] sm:$0xff] }
 0x225   :  { %3128 = vmatprep.subr.bf16.mxu0 %v3127_v8  ;;  %v3039_v25 = vpack.c.bf16 %v529_v18, %v525_v17  ;;  %v536_v38 = vld [vmem:[#allocation7 + $0x670] sm:$0xff]  ;;  %v565_v2 = vld [vmem:[#allocation7 + $0x758] sm:$0xff] }
 0x226   :  { %v577_v8 = vld [vmem:[#allocation7 + $0x7b8] sm:$0xff]  ;;  %v572_v17 = vld [vmem:[#allocation7 + $0x790] sm:$0xff] }
 0x227   :  { %3014 = vmatpush1.bf16.msra.mxu1 %v3013_v24  ;;  %v1191_v24 = vld [vmem:[#allocation7 + $0xbc8] sm:$0xff]  ;;  %v3063_v16 = vpack.c.bf16 %v577_v8, %v573_v7  ;;  %v576_v18 = vld [vmem:[#allocation7 + $0x7b0] sm:$0xff] }
 0x228   :  { %3016 = vmatprep.subr.bf16.mxu1 %v3015_v13  ;;  %3130 = vmatpush1.bf16.msra.mxu0 %v3129_v21  ;;  %v1195_v13 = vld [vmem:[#allocation7 + $0xbe8] sm:$0xff]  ;;  %v581_v21 = vld [vmem:[#allocation7 + $0x7d8] sm:$0xff]  ;;  %v3065_v23 = vpack.c.bf16 %v576_v18, %v572_v17  ;;  %v1120_v8 = vld [vmem:[#allocation7 + $0x990] sm:$0xff] }
 0x229   :  { %v3131_v27 = vpack.c.bf16 %v1195_v13, %v1191_v24  ;;  %v580_v13 = vld [vmem:[#allocation7 + $0x7d0] sm:$0xff]  ;;  %v1133_v17 = vld [vmem:[#allocation7 + $0x9f8] sm:$0xff] }
 0x22b   :  { %3018 = vmatpush1.bf16.msra.mxu1 %v3017_v29  ;;  %v1194_v29 = vld [vmem:[#allocation7 + $0xbe0] sm:$0xff]  ;;  %3132 = vmatprep.subr.bf16.mxu0 %v3131_v27  ;;  %v1077_v27 = vld [vmem:[#allocation7 + $0x838] sm:$0xff] }
 0x22c   :  { %3020 = vmatprep.subr.bf16.mxu1 %v3019_v30  ;;  %v533_v30 = vld [vmem:[#allocation7 + $0x658] sm:$0xff]  ;;  %v3133_v33 = vpack.c.bf16 %v1194_v29, %v1190_v28  ;;  %v3199_v29 = vpack.c.bf16 %v1077_v27, %v1073_v26  ;;  %v1136_v27 = vld [vmem:[#allocation7 + $0xa10] sm:$0xff] }
 0x22e   :  { %3134 = vmatpush1.bf16.msra.mxu0 %v3133_v33  ;;  %v1081_v33 = vld [vmem:[#allocation7 + $0x858] sm:$0xff] }
 0x22f   :  { %3022 = vmatpush1.bf16.msra.mxu1 %v3021_v19  ;;  %v1203_v19 = vld [vmem:[#allocation7 + $0xc28] sm:$0xff] }
 0x230   :  { %3024 = vmatprep.subr.bf16.mxu1 %v3023_v37  ;;  %v3043_v37 = vpack.c.bf16 %v537_v32, %v533_v30  ;;  %v3135_v39 = vpack.c.bf16 %v1203_v19, %v1199_v36  ;;  %v1072_v30 = vld [vmem:[#allocation7 + $0x810] sm:$0xff] }
 0x231   :  { %v1076_v32 = vld [vmem:[#allocation7 + $0x830] sm:$0xff] }
 0x232   :  { %3136 = vmatprep.subr.bf16.mxu0 %v3135_v39  ;;  %v3201_v36 = vpack.c.bf16 %v1076_v32, %v1072_v30  ;;  %v1093_v39 = vld [vmem:[#allocation7 + $0x8b8] sm:$0xff] }
 0x233   :  { %3026 = vmatpush1.bf16.msra.mxu1 %v3025_v41  ;;  %v545_v41 = vld [vmem:[#allocation7 + $0x6b8] sm:$0xff] }
 0x234   :  { %3028 = vmatprep.subr.bf16.mxu1 %v3027_v42  ;;  %v3045_v42 = vpack.c.bf16 %v536_v38, %v532_v31  ;;  %v3047_v43 = vpack.c.bf16 %v545_v41, %v541_v40  ;;  %v1084_v31 = vld [vmem:[#allocation7 + $0x870] sm:$0xff]  ;;  %v1089_v38 = vld [vmem:[#allocation7 + $0x898] sm:$0xff] }
 0x235   :  { %v3207_v41 = vpack.c.bf16 %v1093_v39, %v1089_v38  ;;  %v1149_v30 = vld [vmem:[#allocation7 + $0xa78] sm:$0xff]  ;;  %v1152_v39 = vld [vmem:[#allocation7 + $0xa90] sm:$0xff] }
 0x237   :  { %3030 = vmatpush1.bf16.msra.mxu1 %v3029_v47  ;;  %v553_v47 = vld [vmem:[#allocation7 + $0x6f8] sm:$0xff] }
 0x238   :  { %3032 = vmatprep.subr.bf16.mxu1 %v3031_v51  ;;  %v3051_v49 = vpack.c.bf16 %v553_v47, %v549_v46  ;;  %v552_v51 = vld [vmem:[#allocation7 + $0x6f0] sm:$0xff]  ;;  %v3211_v47 = vpack.c.bf16 %v1101_v45, %v1097_v44 }
 0x239   :  { %v3053_v54 = vpack.c.bf16 %v552_v51, %v548_v50  ;;  %v1105_v50 = vld [vmem:[#allocation7 + $0x918] sm:$0xff]  ;;  %v1160_v45 = vld [vmem:[#allocation7 + $0xad0] sm:$0xff] }
 0x23a   :  { %v1109_v51 = vld [vmem:[#allocation7 + $0x938] sm:$0xff] }
 0x23b   :  { %3034 = vmatpush1.bf16.msra.mxu1 %v3033_v3  ;;  %v569_v3 = vld [vmem:[#allocation7 + $0x778] sm:$0xff] }
 0x23c   :  { %3036 = vmatprep.subr.bf16.mxu1 %v3035_v6  ;;  %v3059_v10 = vpack.c.bf16 %v569_v3, %v565_v2  ;;  %v568_v6 = vld [vmem:[#allocation7 + $0x770] sm:$0xff] }
 0x23d   :  { %v3061_v9 = vpack.c.bf16 %v568_v6, %v564_v5  ;;  %v1112_v3 = vld [vmem:[#allocation7 + $0x950] sm:$0xff]  ;;  %v1125_v5 = vld [vmem:[#allocation7 + $0x9b8] sm:$0xff] }
 0x23f   :  { %3038 = vmatpush1.bf16.msra.mxu1 %v3037_v22  ;;  %v585_v22 = vld [vmem:[#allocation7 + $0x7f8] sm:$0xff] }
 0x240   :  { %3040 = vmatprep.subr.bf16.mxu1 %v3039_v25  ;;  %v3067_v24 = vpack.c.bf16 %v585_v22, %v581_v21  ;;  %v584_v25 = vld [vmem:[#allocation7 + $0x7f0] sm:$0xff] }
 0x241   :  { %v3069_v28 = vpack.c.bf16 %v584_v25, %v580_v13  ;;  %v1128_v22 = vld [vmem:[#allocation7 + $0x9d0] sm:$0xff]  ;;  %v1141_v13 = vld [vmem:[#allocation7 + $0xa38] sm:$0xff] }
 0x243   :  { %3042 = vmatpush1.bf16.msra.mxu1 %v3041_v34  ;;  %v1085_v34 = vld [vmem:[#allocation7 + $0x878] sm:$0xff] }
 0x244   :  { %3044 = vmatprep.subr.bf16.mxu1 %v3043_v37  ;;  %v3203_v19 = vpack.c.bf16 %v1085_v34, %v1081_v33  ;;  %v1080_v37 = vld [vmem:[#allocation7 + $0x850] sm:$0xff] }
 0x245   :  { %v3205_v40 = vpack.c.bf16 %v1084_v31, %v1080_v37  ;;  %v1144_v34 = vld [vmem:[#allocation7 + $0xa50] sm:$0xff]  ;;  %v1157_v37 = vld [vmem:[#allocation7 + $0xab8] sm:$0xff] }
 0x247   :  { %3046 = vmatpush1.bf16.msra.mxu1 %v3045_v42  ;;  %v1088_v42 = vld [vmem:[#allocation7 + $0x890] sm:$0xff] }
 0x248   :  { %3048 = vmatprep.subr.bf16.mxu1 %v3047_v43  ;;  %v1092_v43 = vld [vmem:[#allocation7 + $0x8b0] sm:$0xff] }
 0x249   :  { %v3209_v46 = vpack.c.bf16 %v1092_v43, %v1088_v42  ;;  %v1165_v42 = vld [vmem:[#allocation7 + $0xaf8] sm:$0xff] }
 0x24b   :  { %3050 = vmatpush1.bf16.msra.mxu1 %v3049_v48  ;;  %v1096_v48 = vld [vmem:[#allocation7 + $0x8d0] sm:$0xff] }
 0x24c   :  { %3052 = vmatprep.subr.bf16.mxu1 %v3051_v49  ;;  %v1100_v49 = vld [vmem:[#allocation7 + $0x8f0] sm:$0xff] }
 0x24d   :  { %v3213_v52 = vpack.c.bf16 %v1100_v49, %v1096_v48  ;;  %v1173_v48 = vld [vmem:[#allocation7 + $0xb38] sm:$0xff] }
 0x24f   :  { %3054 = vmatpush1.bf16.msra.mxu1 %v3053_v54  ;;  %v1108_v54 = vld [vmem:[#allocation7 + $0x930] sm:$0xff] }
 0x250   :  { %3056 = vmatprep.subr.bf16.mxu1 %v3055_v55  ;;  %v1113_v55 = vld [vmem:[#allocation7 + $0x958] sm:$0xff]  ;;  %v3217_v59 = vpack.c.bf16 %v1108_v54, %v1104_v53 }
 0x251   :  { %v3219_v2 = vpack.c.bf16 %v1117_v58, %v1113_v55  ;;  %v1181_v53 = vld [vmem:[#allocation7 + $0xb78] sm:$0xff]  ;;  %v1176_v58 = vld [vmem:[#allocation7 + $0xb50] sm:$0xff] }
 0x253   :  { %3058 = vmatpush1.bf16.msra.mxu1 %v3057_v4  ;;  %v1116_v4 = vld [vmem:[#allocation7 + $0x970] sm:$0xff] }
 0x254   :  { %3060 = vmatprep.subr.bf16.mxu1 %v3059_v10  ;;  %v1121_v10 = vld [vmem:[#allocation7 + $0x998] sm:$0xff]  ;;  %v3221_v6 = vpack.c.bf16 %v1116_v4, %v1112_v3 }
 0x255   :  { %v3223_v7 = vpack.c.bf16 %v1125_v5, %v1121_v10  ;;  %v1189_v3 = vld [vmem:[#allocation7 + $0xbb8] sm:$0xff]  ;;  %v1184_v5 = vld [vmem:[#allocation7 + $0xb90] sm:$0xff] }
 0x257   :  { %3062 = vmatpush1.bf16.msra.mxu1 %v3061_v9  ;;  %v1124_v9 = vld [vmem:[#allocation7 + $0x9b0] sm:$0xff] }
 0x258   :  { %3064 = vmatprep.subr.bf16.mxu1 %v3063_v16  ;;  %v1129_v16 = vld [vmem:[#allocation7 + $0x9d8] sm:$0xff]  ;;  %v3225_v18 = vpack.c.bf16 %v1124_v9, %v1120_v8 }
 0x259   :  { %v3227_v21 = vpack.c.bf16 %v1133_v17, %v1129_v16  ;;  %v1197_v8 = vld [vmem:[#allocation7 + $0xbf8] sm:$0xff]  ;;  %v1192_v17 = vld [vmem:[#allocation7 + $0xbd0] sm:$0xff] }
 0x25b   :  { %3066 = vmatpush1.bf16.msra.mxu1 %v3065_v23  ;;  %v1132_v23 = vld [vmem:[#allocation7 + $0x9f0] sm:$0xff] }
 0x25c   :  { %3068 = vmatprep.subr.bf16.mxu1 %v3067_v24  ;;  %v1137_v24 = vld [vmem:[#allocation7 + $0xa18] sm:$0xff]  ;;  %v3229_v25 = vpack.c.bf16 %v1132_v23, %v1128_v22 }
 0x25d   :  { %v3231_v26 = vpack.c.bf16 %v1141_v13, %v1137_v24  ;;  %v1205_v22 = vld [vmem:[#allocation7 + $0xc38] sm:$0xff] }
 0x25f   :  { %3070 = vmatpush1.bf16.msra.mxu1 %v3069_v28  ;;  %v1140_v28 = vld [vmem:[#allocation7 + $0xa30] sm:$0xff] }
 0x260   :  { %3200 = vmatprep.subr.bf16.mxu1 %v3199_v29  ;;  %v1145_v29 = vld [vmem:[#allocation7 + $0xa58] sm:$0xff]  ;;  %v3233_v32 = vpack.c.bf16 %v1140_v28, %v1136_v27  ;;  %v1202_v27 = vld [vmem:[#allocation7 + $0xc20] sm:$0xff]  ;;  %v1200_v28 = vld [vmem:[#allocation7 + $0xc10] sm:$0xff] }
 0x261   :  { %v3235_v33 = vpack.c.bf16 %v1149_v30, %v1145_v29  ;;  %v1204_v29 = vld [vmem:[#allocation7 + $0xc30] sm:$0xff]  ;;  %v1207_v30 = vld [vmem:[#allocation7 + $0xc48] sm:$0xff] }
 0x262   :  { %864 = vmatmul.mubr.f32.vlgmr.msra.gmra.mrb[2].mxu1 %v4204_v35  ;;  %v3215_v35 = vpack.c.bf16 %v1109_v51, %v1105_v50  ;;  %v1168_v51 = vld [vmem:[#allocation7 + $0xb10] sm:$0xff] }
 0x263   :  { %3202 = vmatpush1.bf16.msra.mxu1 %v3201_v36  ;;  %v1148_v36 = vld [vmem:[#allocation7 + $0xa70] sm:$0xff] }
 0x264   :  { %3204 = vmatprep.subr.bf16.mxu1 %v3203_v19  ;;  %v1153_v19 = vld [vmem:[#allocation7 + $0xa98] sm:$0xff]  ;;  %v3237_v31 = vpack.c.bf16 %v1148_v36, %v1144_v34 }
 0x265   :  { %v3239_v38 = vpack.c.bf16 %v1157_v37, %v1153_v19  ;;  %v1209_v34 = vld [vmem:[#allocation7 + $0xc58] sm:$0xff] }
 0x266   :  { %v1213_v36 = vld [vmem:[#allocation7 + $0xc78] sm:$0xff] }
 0x267   :  { %3206 = vmatpush1.bf16.msra.mxu1 %v3205_v40  ;;  %v1156_v40 = vld [vmem:[#allocation7 + $0xab0] sm:$0xff] }
 0x268   :  { %3208 = vmatprep.subr.bf16.mxu1 %v3207_v41  ;;  %v1161_v41 = vld [vmem:[#allocation7 + $0xad8] sm:$0xff]  ;;  %v3241_v43 = vpack.c.bf16 %v1156_v40, %v1152_v39  ;;  %v1206_v39 = vld [vmem:[#allocation7 + $0xc40] sm:$0xff] }
 0x269   :  { %v3243_v44 = vpack.c.bf16 %v1165_v42, %v1161_v41  ;;  %v1210_v40 = vld [vmem:[#allocation7 + $0xc60] sm:$0xff] }
 0x26b   :  { %3210 = vmatpush1.bf16.msra.mxu1 %v3209_v46  ;;  %v1164_v46 = vld [vmem:[#allocation7 + $0xaf0] sm:$0xff] }
 0x26c   :  { %3212 = vmatprep.subr.bf16.mxu1 %v3211_v47  ;;  %v1169_v47 = vld [vmem:[#allocation7 + $0xb18] sm:$0xff]  ;;  %v3245_v49 = vpack.c.bf16 %v1164_v46, %v1160_v45  ;;  %v1212_v45 = vld [vmem:[#allocation7 + $0xc70] sm:$0xff]  ;;  %v1215_v46 = vld [vmem:[#allocation7 + $0xc88] sm:$0xff] }
 0x26d   :  { %v3247_v50 = vpack.c.bf16 %v1173_v48, %v1169_v47  ;;  %v1219_v48 = vld [vmem:[#allocation7 + $0xca8] sm:$0xff] }
 0x26f   :  { %3214 = vmatpush1.bf16.msra.mxu1 %v3213_v52  ;;  %v1172_v52 = vld [vmem:[#allocation7 + $0xb30] sm:$0xff] }
 0x270   :  { %3216 = vmatprep.subr.bf16.mxu1 %v3215_v35  ;;  %v1177_v35 = vld [vmem:[#allocation7 + $0xb58] sm:$0xff]  ;;  %v3249_v54 = vpack.c.bf16 %v1172_v52, %v1168_v51 }
 0x271   :  { %v3251_v55 = vpack.c.bf16 %v1181_v53, %v1177_v35  ;;  %v3141_v35 = vpack.c.bf16 %v1210_v40, %v1206_v39  ;;  %v1245_v39 = vld [vmem:[#allocation7 + $0xd78] sm:$0xff] }
 0x273   :  { %3218 = vmatpush1.bf16.msra.mxu1 %v3217_v59  ;;  %v1180_v59 = vld [vmem:[#allocation7 + $0xb70] sm:$0xff] }
 0x274   :  { %3220 = vmatprep.subr.bf16.mxu1 %v3219_v2  ;;  %v1185_v2 = vld [vmem:[#allocation7 + $0xb98] sm:$0xff]  ;;  %v3253_v4 = vpack.c.bf16 %v1180_v59, %v1176_v58  ;;  %v3143_v58 = vpack.c.bf16 %v1219_v48, %v1215_v46  ;;  %v1240_v46 = vld [vmem:[#allocation7 + $0xd50] sm:$0xff] }
 0x275   :  { %v3255_v10 = vpack.c.bf16 %v1189_v3, %v1185_v2  ;;  %v1216_v2 = vld [vmem:[#allocation7 + $0xc90] sm:$0xff] }
 0x276   :  { %v1220_v3 = vld [vmem:[#allocation7 + $0xcb0] sm:$0xff] }
 0x277   :  { %3222 = vmatpush1.bf16.msra.mxu1 %v3221_v6  ;;  %v1188_v6 = vld [vmem:[#allocation7 + $0xbb0] sm:$0xff] }
 0x278   :  { %3224 = vmatprep.subr.bf16.mxu1 %v3223_v7  ;;  %v1193_v7 = vld [vmem:[#allocation7 + $0xbd8] sm:$0xff]  ;;  %v3257_v9 = vpack.c.bf16 %v1188_v6, %v1184_v5  ;;  %v1244_v48 = vld [vmem:[#allocation7 + $0xd70] sm:$0xff] }
 0x279   :  { %v3259_v16 = vpack.c.bf16 %v1197_v8, %v1193_v7  ;;  %v1225_v5 = vld [vmem:[#allocation7 + $0xcd8] sm:$0xff]  ;;  %v3273_v8 = vpack.c.bf16 %v1220_v3, %v1216_v2  ;;  %v1248_v2 = vld [vmem:[#allocation7 + $0xd90] sm:$0xff] }
 0x27a   :  { %v1229_v6 = vld [vmem:[#allocation7 + $0xcf8] sm:$0xff]  ;;  %v1252_v3 = vld [vmem:[#allocation7 + $0xdb0] sm:$0xff] }
 0x27b   :  { %3226 = vmatpush1.bf16.msra.mxu1 %v3225_v18  ;;  %v1196_v18 = vld [vmem:[#allocation7 + $0xbf0] sm:$0xff] }
 0x27c   :  { %3228 = vmatprep.subr.bf16.mxu1 %v3227_v21  ;;  %v1201_v21 = vld [vmem:[#allocation7 + $0xc18] sm:$0xff]  ;;  %v3261_v23 = vpack.c.bf16 %v1196_v18, %v1192_v17  ;;  %v3275_v18 = vpack.c.bf16 %v1229_v6, %v1225_v5 }
 0x27d   :  { %v3263_v24 = vpack.c.bf16 %v1205_v22, %v1201_v21  ;;  %v1224_v21 = vld [vmem:[#allocation7 + $0xcd0] sm:$0xff]  ;;  %v1257_v5 = vld [vmem:[#allocation7 + $0xdd8] sm:$0xff] }
 0x27e   :  { %v1228_v22 = vld [vmem:[#allocation7 + $0xcf0] sm:$0xff]  ;;  %v1261_v6 = vld [vmem:[#allocation7 + $0xdf8] sm:$0xff] }
 0x27f   :  { %3230 = vmatpush1.bf16.msra.mxu1 %v3229_v25 }
 0x280   :  { %3232 = vmatprep.subr.bf16.mxu1 %v3231_v26  ;;  %v1198_v26 = vld [vmem:[#allocation7 + $0xc00] sm:$0xff] }
 0x283   :  { %3234 = vmatpush1.bf16.msra.mxu1 %v3233_v32 }
 0x284   :  { %3236 = vmatprep.subr.bf16.mxu1 %v3235_v33  ;;  %v1211_v33 = vld [vmem:[#allocation7 + $0xc68] sm:$0xff] }
 0x285   :  { %v3139_v42 = vpack.c.bf16 %v1211_v33, %v1207_v30  ;;  %v1230_v30 = vld [vmem:[#allocation7 + $0xd00] sm:$0xff] }
 0x287   :  { %3238 = vmatpush1.bf16.msra.mxu1 %v3237_v31  ;;  %v3137_v31 = vpack.c.bf16 %v1202_v27, %v1198_v26  ;;  %v1233_v26 = vld [vmem:[#allocation7 + $0xd18] sm:$0xff] }
 0x288   :  { %3240 = vmatprep.subr.bf16.mxu1 %v3239_v38  ;;  %v3265_v38 = vpack.c.bf16 %v1204_v29, %v1200_v28  ;;  %v1237_v27 = vld [vmem:[#allocation7 + $0xd38] sm:$0xff]  ;;  %v3277_v29 = vpack.c.bf16 %v1228_v22, %v1224_v21  ;;  %v1256_v21 = vld [vmem:[#allocation7 + $0xdd0] sm:$0xff] }
 0x289   :  { %v1260_v22 = vld [vmem:[#allocation7 + $0xdf0] sm:$0xff] }
 0x28b   :  { %3242 = vmatpush1.bf16.msra.mxu1 %v3241_v43  ;;  %v3267_v43 = vpack.c.bf16 %v1213_v36, %v1209_v34  ;;  %v3279_v34 = vpack.c.bf16 %v1237_v27, %v1233_v26  ;;  %v1232_v36 = vld [vmem:[#allocation7 + $0xd10] sm:$0xff]  ;;  %v1265_v26 = vld [vmem:[#allocation7 + $0xe18] sm:$0xff] }
 0x28c   :  { %3244 = vmatprep.subr.bf16.mxu1 %v3243_v44  ;;  %v1208_v44 = vld [vmem:[#allocation7 + $0xc50] sm:$0xff]  ;;  %v1269_v27 = vld [vmem:[#allocation7 + $0xe38] sm:$0xff] }
 0x28d   :  { %v3269_v53 = vpack.c.bf16 %v1212_v45, %v1208_v44 }
 0x28f   :  { %3246 = vmatpush1.bf16.msra.mxu1 %v3245_v49  ;;  %v1217_v49 = vld [vmem:[#allocation7 + $0xc98] sm:$0xff] }
 0x290   :  { %3248 = vmatprep.subr.bf16.mxu1 %v3247_v50  ;;  %v1221_v50 = vld [vmem:[#allocation7 + $0xcb8] sm:$0xff] }
 0x291   :  { %v3271_v59 = vpack.c.bf16 %v1221_v50, %v1217_v49  ;;  %v1247_v49 = vld [vmem:[#allocation7 + $0xd88] sm:$0xff] }
 0x292   :  { %v1251_v50 = vld [vmem:[#allocation7 + $0xda8] sm:$0xff] }
 0x293   :  { %3250 = vmatpush1.bf16.msra.mxu1 %v3249_v54  ;;  %v1214_v54 = vld [vmem:[#allocation7 + $0xc80] sm:$0xff] }
 0x294   :  { %3252 = vmatprep.subr.bf16.mxu1 %v3251_v55  ;;  %v1218_v55 = vld [vmem:[#allocation7 + $0xca0] sm:$0xff] }
 0x295   :  { %v3145_v7 = vpack.c.bf16 %v1218_v55, %v1214_v54  ;;  %v1246_v54 = vld [vmem:[#allocation7 + $0xd80] sm:$0xff] }
 0x296   :  { %v1250_v55 = vld [vmem:[#allocation7 + $0xda0] sm:$0xff] }
 0x297   :  { %3254 = vmatpush1.bf16.msra.mxu1 %v3253_v4  ;;  %v1223_v4 = vld [vmem:[#allocation7 + $0xcc8] sm:$0xff] }
 0x298   :  { %3256 = vmatprep.subr.bf16.mxu1 %v3255_v10  ;;  %v1227_v10 = vld [vmem:[#allocation7 + $0xce8] sm:$0xff] }
 0x299   :  { %v3147_v17 = vpack.c.bf16 %v1227_v10, %v1223_v4  ;;  %v1255_v4 = vld [vmem:[#allocation7 + $0xdc8] sm:$0xff] }
 0x29a   :  { %v1259_v10 = vld [vmem:[#allocation7 + $0xde8] sm:$0xff] }
 0x29b   :  { %3258 = vmatpush1.bf16.msra.mxu1 %v3257_v9  ;;  %v1222_v9 = vld [vmem:[#allocation7 + $0xcc0] sm:$0xff] }
 0x29c   :  { %3260 = vmatprep.subr.bf16.mxu1 %v3259_v16  ;;  %v1226_v16 = vld [vmem:[#allocation7 + $0xce0] sm:$0xff] }
 0x29d   :  { %v3149_v28 = vpack.c.bf16 %v1226_v16, %v1222_v9  ;;  %v1254_v9 = vld [vmem:[#allocation7 + $0xdc0] sm:$0xff] }
 0x29e   :  { %v1258_v16 = vld [vmem:[#allocation7 + $0xde0] sm:$0xff] }
 0x29f   :  { %3262 = vmatpush1.bf16.msra.mxu1 %v3261_v23  ;;  %v1231_v23 = vld [vmem:[#allocation7 + $0xd08] sm:$0xff] }
 0x2a0   :  { %3264 = vmatprep.subr.bf16.mxu1 %v3263_v24  ;;  %v1235_v24 = vld [vmem:[#allocation7 + $0xd28] sm:$0xff] }
 0x2a1   :  { %v3151_v33 = vpack.c.bf16 %v1235_v24, %v1231_v23  ;;  %v1263_v23 = vld [vmem:[#allocation7 + $0xe08] sm:$0xff] }
 0x2a2   :  { %v1267_v24 = vld [vmem:[#allocation7 + $0xe28] sm:$0xff] }
 0x2b5   :  { %v4227_v13 = vpop.f32.mrb[0].mxu1 }
 0x2b6   :  { %v4229_v25 = vpop.f32.mrb[1].mxu1 }
 0x2bd   :  { %v994_v32 = vpop.f32.mrb[6].mxu0 }
 0x2be   :  { %v996_v19 = vpop.f32.mrb[7].mxu0  ;;  %v995_v41 = vadd.f32 %v994_v32, %v4177_v0  ;;  %v1234_v32 = vld [vmem:[#allocation7 + $0xd20] sm:$0xff] }
 0x2bf   :  { %v997_v37 = vadd.f32 %v996_v19, %v4173_v62  ;;  %v1236_v19 = vld [vmem:[#allocation7 + $0xd30] sm:$0xff]  ;;  %v3153_v40 = vpack.c.bf16 %v1234_v32, %v1230_v30  ;;  %v1262_v30 = vld [vmem:[#allocation7 + $0xe00] sm:$0xff] }
 0x2c0   :  { %v1266_v32 = vld [vmem:[#allocation7 + $0xe20] sm:$0xff] }
 0x2c1   :  { %v4233_v47 = vpop.f32.mrb[8].mxu0  ;;  %1390 = vmatprep.mubr.f32.mxu0 %v997_v37  ;;  %1532 = vmatprep.mubr.f32.mxu1 %v997_v37  ;;  %v1239_v37 = vld [vmem:[#allocation7 + $0xd48] sm:$0xff] }
 0x2c2   :  { %v1067_v51 = vpop.f32.mrb[9].mxu0  ;;  %1391 = vmatmul.mubr.f32.vlgmr.msra.gmra.mrb[4].mxu0 %v995_v41  ;;  %1533 = vmatmul.mubr.f32.vlgmr.msra.gmra.mrb[2].mxu1 %v995_v41  ;;  %v3281_v41 = vpack.c.bf16 %v1236_v19, %v1232_v36  ;;  %v1264_v36 = vld [vmem:[#allocation7 + $0xe10] sm:$0xff] }
 0x2c3   :  { %v1068_v52 = vadd.f32 %v1067_v51, %v4183_v15  ;;  %3138 = vmatpush1.bf16.msra.mxu0 %v3137_v31  ;;  %3266 = vmatpush1.bf16.msra.mxu1 %v3265_v38  ;;  %v1243_v31 = vld [vmem:[#allocation7 + $0xd68] sm:$0xff]  ;;  %v1241_v38 = vld [vmem:[#allocation7 + $0xd58] sm:$0xff]  ;;  %v1268_v19 = vld [vmem:[#allocation7 + $0xe30] sm:$0xff] }
 0x2c4   :  { %3140 = vmatprep.subr.bf16.mxu0 %v3139_v42  ;;  %3268 = vmatprep.subr.bf16.mxu1 %v3267_v43  ;;  %v1238_v42 = vld [vmem:[#allocation7 + $0xd40] sm:$0xff]  ;;  %v3155_v44 = vpack.c.bf16 %v1243_v31, %v1239_v37  ;;  %v3283_v45 = vpack.c.bf16 %v1245_v39, %v1241_v38  ;;  %v1249_v51 = vld [vmem:[#allocation7 + $0xd98] sm:$0xff]  ;;  %v1271_v37 = vld [vmem:[#allocation7 + $0xe48] sm:$0xff] }
 0x2c5   :  { %1461 = vmatprep.mubr.f32.mxu0 %v1068_v52  ;;  %1603 = vmatprep.mubr.f32.mxu1 %v1068_v52  ;;  %v1242_v43 = vld [vmem:[#allocation7 + $0xd60] sm:$0xff]  ;;  %v1253_v52 = vld [vmem:[#allocation7 + $0xdb8] sm:$0xff]  ;;  %v1275_v31 = vld [vmem:[#allocation7 + $0xe68] sm:$0xff] }
 0x2c6   :  { %v1273_v38 = vld [vmem:[#allocation7 + $0xe58] sm:$0xff] }
 0x2c7   :  { %3142 = vmatpush1.bf16.msra.mxu0 %v3141_v35  ;;  %3270 = vmatpush1.bf16.msra.mxu1 %v3269_v53  ;;  %v3157_v35 = vpack.c.bf16 %v1242_v43, %v1238_v42  ;;  %v3285_v53 = vpack.c.bf16 %v1244_v48, %v1240_v46  ;;  %v1277_v39 = vld [vmem:[#allocation7 + $0xe78] sm:$0xff]  ;;  %v1270_v42 = vld [vmem:[#allocation7 + $0xe40] sm:$0xff]  ;;  %v1272_v46 = vld [vmem:[#allocation7 + $0xe50] sm:$0xff] }
 0x2c8   :  { %3144 = vmatprep.subr.bf16.mxu0 %v3143_v58  ;;  %3272 = vmatprep.subr.bf16.mxu1 %v3271_v59  ;;  %v3159_v58 = vpack.c.bf16 %v1251_v50, %v1247_v49  ;;  %v3287_v59 = vpack.c.bf16 %v1253_v52, %v1249_v51  ;;  %v1274_v43 = vld [vmem:[#allocation7 + $0xe60] sm:$0xff]  ;;  %v1276_v48 = vld [vmem:[#allocation7 + $0xe70] sm:$0xff]  ;;  %v1279_v49 = vld [vmem:[#allocation7 + $0xe88] sm:$0xff] }
 0x2c9   :  { %v1283_v50 = vld [vmem:[#allocation7 + $0xea8] sm:$0xff]  ;;  %v1281_v51 = vld [vmem:[#allocation7 + $0xe98] sm:$0xff] }
 0x2ca   :  { %v1285_v52 = vld [vmem:[#allocation7 + $0xeb8] sm:$0xff] }
 0x2cb   :  { %3146 = vmatpush1.bf16.msra.mxu0 %v3145_v7  ;;  %3274 = vmatpush1.bf16.msra.mxu1 %v3273_v8  ;;  %v3161_v7 = vpack.c.bf16 %v1250_v55, %v1246_v54  ;;  %v3289_v8 = vpack.c.bf16 %v1252_v3, %v1248_v2  ;;  %v1278_v54 = vld [vmem:[#allocation7 + $0xe80] sm:$0xff]  ;;  %v1280_v2 = vld [vmem:[#allocation7 + $0xe90] sm:$0xff] }
 0x2cc   :  { %3148 = vmatprep.subr.bf16.mxu0 %v3147_v17  ;;  %3276 = vmatprep.subr.bf16.mxu1 %v3275_v18  ;;  %v3163_v17 = vpack.c.bf16 %v1259_v10, %v1255_v4  ;;  %v3291_v18 = vpack.c.bf16 %v1261_v6, %v1257_v5  ;;  %v1282_v55 = vld [vmem:[#allocation7 + $0xea0] sm:$0xff]  ;;  %v1284_v3 = vld [vmem:[#allocation7 + $0xeb0] sm:$0xff]  ;;  %v1287_v4 = vld [vmem:[#allocation7 + $0xec8] sm:$0xff] }
 0x2cd   :  { %v1291_v10 = vld [vmem:[#allocation7 + $0xee8] sm:$0xff]  ;;  %v1289_v5 = vld [vmem:[#allocation7 + $0xed8] sm:$0xff] }
 0x2ce   :  { %v1293_v6 = vld [vmem:[#allocation7 + $0xef8] sm:$0xff] }
 0x2cf   :  { %3150 = vmatpush1.bf16.msra.mxu0 %v3149_v28  ;;  %3278 = vmatpush1.bf16.msra.mxu1 %v3277_v29  ;;  %v3165_v28 = vpack.c.bf16 %v1258_v16, %v1254_v9  ;;  %v3293_v29 = vpack.c.bf16 %v1260_v22, %v1256_v21  ;;  %v1286_v9 = vld [vmem:[#allocation7 + $0xec0] sm:$0xff]  ;;  %v1288_v21 = vld [vmem:[#allocation7 + $0xed0] sm:$0xff] }
 0x2d0   :  { %3152 = vmatprep.subr.bf16.mxu0 %v3151_v33  ;;  %3280 = vmatprep.subr.bf16.mxu1 %v3279_v34  ;;  %v3167_v33 = vpack.c.bf16 %v1267_v24, %v1263_v23  ;;  %v3295_v34 = vpack.c.bf16 %v1269_v27, %v1265_v26  ;;  %v1290_v16 = vld [vmem:[#allocation7 + $0xee0] sm:$0xff]  ;;  %v1292_v22 = vld [vmem:[#allocation7 + $0xef0] sm:$0xff]  ;;  %v1295_v23 = vld [vmem:[#allocation7 + $0xf08] sm:$0xff] }
 0x2d1   :  { %v1299_v24 = vld [vmem:[#allocation7 + $0xf28] sm:$0xff]  ;;  %v1297_v26 = vld [vmem:[#allocation7 + $0xf18] sm:$0xff] }
 0x2d2   :  { %v1301_v27 = vld [vmem:[#allocation7 + $0xf38] sm:$0xff] }
 0x2d3   :  { %3154 = vmatpush1.bf16.msra.mxu0 %v3153_v40  ;;  %3282 = vmatpush1.bf16.msra.mxu1 %v3281_v41  ;;  %v3169_v40 = vpack.c.bf16 %v1266_v32, %v1262_v30  ;;  %v3297_v41 = vpack.c.bf16 %v1268_v19, %v1264_v36  ;;  %v1294_v30 = vld [vmem:[#allocation7 + $0xf00] sm:$0xff]  ;;  %v1296_v36 = vld [vmem:[#allocation7 + $0xf10] sm:$0xff] }
 0x2d4   :  { %3156 = vmatprep.subr.bf16.mxu0 %v3155_v44  ;;  %3284 = vmatprep.subr.bf16.mxu1 %v3283_v45  ;;  %v3171_v44 = vpack.c.bf16 %v1275_v31, %v1271_v37  ;;  %v3299_v45 = vpack.c.bf16 %v1277_v39, %v1273_v38  ;;  %v1298_v32 = vld [vmem:[#allocation7 + $0xf20] sm:$0xff]  ;;  %v1300_v19 = vld [vmem:[#allocation7 + $0xf30] sm:$0xff]  ;;  %v1303_v37 = vld [vmem:[#allocation7 + $0xf48] sm:$0xff] }
 0x2d5   :  { %v1307_v31 = vld [vmem:[#allocation7 + $0xf68] sm:$0xff]  ;;  %v1305_v38 = vld [vmem:[#allocation7 + $0xf58] sm:$0xff] }
 0x2d6   :  { %v1309_v39 = vld [vmem:[#allocation7 + $0xf78] sm:$0xff] }
 0x2d7   :  { %3158 = vmatpush1.bf16.msra.mxu0 %v3157_v35  ;;  %3286 = vmatpush1.bf16.msra.mxu1 %v3285_v53  ;;  %v3173_v35 = vpack.c.bf16 %v1274_v43, %v1270_v42  ;;  %v3301_v53 = vpack.c.bf16 %v1276_v48, %v1272_v46  ;;  %v1302_v42 = vld [vmem:[#allocation7 + $0xf40] sm:$0xff]  ;;  %v1304_v46 = vld [vmem:[#allocation7 + $0xf50] sm:$0xff] }
 0x2d8   :  { %3160 = vmatprep.subr.bf16.mxu0 %v3159_v58  ;;  %3288 = vmatprep.subr.bf16.mxu1 %v3287_v59  ;;  %v3175_v58 = vpack.c.bf16 %v1283_v50, %v1279_v49  ;;  %v3303_v59 = vpack.c.bf16 %v1285_v52, %v1281_v51  ;;  %v1306_v43 = vld [vmem:[#allocation7 + $0xf60] sm:$0xff]  ;;  %v1308_v48 = vld [vmem:[#allocation7 + $0xf70] sm:$0xff]  ;;  %v1311_v49 = vld [vmem:[#allocation7 + $0xf88] sm:$0xff] }
 0x2d9   :  { %v1315_v50 = vld [vmem:[#allocation7 + $0xfa8] sm:$0xff]  ;;  %v1313_v51 = vld [vmem:[#allocation7 + $0xf98] sm:$0xff] }
 0x2da   :  { %v1317_v52 = vld [vmem:[#allocation7 + $0xfb8] sm:$0xff] }
 0x2db   :  { %3162 = vmatpush1.bf16.msra.mxu0 %v3161_v7  ;;  %3290 = vmatpush1.bf16.msra.mxu1 %v3289_v8  ;;  %v3177_v7 = vpack.c.bf16 %v1282_v55, %v1278_v54  ;;  %v3305_v8 = vpack.c.bf16 %v1284_v3, %v1280_v2  ;;  %v1310_v54 = vld [vmem:[#allocation7 + $0xf80] sm:$0xff]  ;;  %v1312_v2 = vld [vmem:[#allocation7 + $0xf90] sm:$0xff] }
 0x2dc   :  { %3164 = vmatprep.subr.bf16.mxu0 %v3163_v17  ;;  %3292 = vmatprep.subr.bf16.mxu1 %v3291_v18  ;;  %v3179_v17 = vpack.c.bf16 %v1291_v10, %v1287_v4  ;;  %v3307_v18 = vpack.c.bf16 %v1293_v6, %v1289_v5  ;;  %v1314_v55 = vld [vmem:[#allocation7 + $0xfa0] sm:$0xff]  ;;  %v1316_v3 = vld [vmem:[#allocation7 + $0xfb0] sm:$0xff]  ;;  %v1319_v4 = vld [vmem:[#allocation7 + $0xfc8] sm:$0xff] }
 0x2dd   :  { %v1323_v10 = vld [vmem:[#allocation7 + $0xfe8] sm:$0xff]  ;;  %v1321_v5 = vld [vmem:[#allocation7 + $0xfd8] sm:$0xff] }
 0x2de   :  { %v1325_v6 = vld [vmem:[#allocation7 + $0xff8] sm:$0xff] }
 0x2df   :  { %3166 = vmatpush1.bf16.msra.mxu0 %v3165_v28  ;;  %3294 = vmatpush1.bf16.msra.mxu1 %v3293_v29  ;;  %v3181_v28 = vpack.c.bf16 %v1290_v16, %v1286_v9  ;;  %v3309_v29 = vpack.c.bf16 %v1292_v22, %v1288_v21  ;;  %v1318_v9 = vld [vmem:[#allocation7 + $0xfc0] sm:$0xff]  ;;  %v3195_v16 = vpack.c.bf16 %v1323_v10, %v1319_v4  ;;  %v1320_v21 = vld [vmem:[#allocation7 + $0xfd0] sm:$0xff] }
 0x2e0   :  { %3168 = vmatprep.subr.bf16.mxu0 %v3167_v33  ;;  %3296 = vmatprep.subr.bf16.mxu1 %v3295_v34  ;;  %v3183_v33 = vpack.c.bf16 %v1299_v24, %v1295_v23  ;;  %v3311_v34 = vpack.c.bf16 %v1301_v27, %v1297_v26  ;;  %v1324_v22 = vld [vmem:[#allocation7 + $0xff0] sm:$0xff]  ;;  %v1631_v23 = vpop.xlane.xlu1 %1630  ;;  %v1626_v24 = vpop.xlane.xlu0 %1625  ;;  %v1792_v26 = vld [vmem:[#allocation7 + $0x1018] sm:$0xff]  ;;  %v1797_v4 = vld [vmem:[#allocation7 + $0x1040] sm:$0xff] }
 0x2e1   :  { %v1796_v27 = vld [vmem:[#allocation7 + $0x1038] sm:$0xff]  ;;  %v1801_v10 = vld [vmem:[#allocation7 + $0x1060] sm:$0xff] }
 0x2e3   :  { %3170 = vmatpush1.bf16.msra.mxu0 %v3169_v40  ;;  %3298 = vmatpush1.bf16.msra.mxu1 %v3297_v41  ;;  %v3185_v40 = vpack.c.bf16 %v1298_v32, %v1294_v30  ;;  %v3313_v41 = vpack.c.bf16 %v1300_v19, %v1296_v36  ;;  %v1633_v30 = vmul.f32 0.00390625, %v1631_v23  ;;  %v1632_v32 = vmul.f32 0.00390625, %v1626_v24  ;;  %v1795_v36 = vld [vmem:[#allocation7 + $0x1030] sm:$0xff]  ;;  %v1800_v19 = vld [vmem:[#allocation7 + $0x1058] sm:$0xff]  ;;  %v1809_v23 = vld [vmem:[#allocation7 + $0x10a0] sm:$0xff] }
 0x2e4   :  { %3172 = vmatprep.subr.bf16.mxu0 %v3171_v44  ;;  %3300 = vmatprep.subr.bf16.mxu1 %v3299_v45  ;;  %v3187_v44 = vpack.c.bf16 %v1307_v31, %v1303_v37  ;;  %v3315_v45 = vpack.c.bf16 %v1309_v39, %v1305_v38  ;;  %v1804_v37 = vld [vmem:[#allocation7 + $0x1078] sm:$0xff]  ;;  %v1066_v39 = vadd.f32 %v4233_v47, %v4190_v20  ;;  %v1789_v47 = vld [vmem:[#allocation7 + $0x1000] sm:$0xff]  ;;  %v1814_v24 = vld [vmem:[#allocation7 + $0x10c8] sm:$0xff] }
 0x2e5   :  { %v1643_v31 = vrot.slane %v1633_v30, %v4154_v60  ;;  %v1639_v38 = vrot.slane %v1632_v32, %v4154_v60  ;;  %v1827_v30 = vld [vmem:[#allocation7 + $0x1130] sm:$0xff]  ;;  %v1832_v32 = vld [vmem:[#allocation7 + $0x1158] sm:$0xff] }
 0x2e7   :  { %3174 = vmatpush1.bf16.msra.mxu0 %v3173_v35  ;;  %3302 = vmatpush1.bf16.msra.mxu1 %v3301_v53  ;;  %v3189_v35 = vpack.c.bf16 %v1306_v43, %v1302_v42  ;;  %v3317_v53 = vpack.c.bf16 %v1308_v48, %v1304_v46  ;;  %v1794_v42 = vld [vmem:[#allocation7 + $0x1028] sm:$0xff]  ;;  %v3459_v43 = vpack.c.bf16 %v1804_v37, %v1800_v19  ;;  %v1808_v46 = vld [vmem:[#allocation7 + $0x1098] sm:$0xff]  ;;  %v1813_v19 = vld [vmem:[#allocation7 + $0x10c0] sm:$0xff] }
 0x2e8   :  { %3176 = vmatprep.subr.bf16.mxu0 %v3175_v58  ;;  %3304 = vmatprep.subr.bf16.mxu1 %v3303_v59  ;;  %v3191_v58 = vpack.c.bf16 %v1315_v50, %v1311_v49  ;;  %v3319_v59 = vpack.c.bf16 %v1317_v52, %v1313_v51  ;;  %v1812_v48 = vld [vmem:[#allocation7 + $0x10b8] sm:$0xff]  ;;  %v3795_v49 = vld [vmem:[#allocation2] sm:$0x77]  ;;  %v1644_v60 = vsel %vm171_vm1, %v1643_v31, %v1639_v38  ;;  %v1793_v50 = vld [vmem:[#allocation7 + $0x1020] sm:$0xff] }
 0x2e9   :  { %v1798_v51 = vld [vmem:[#allocation7 + $0x1048] sm:$0xff]  ;;  %v1817_v37 = vld [vmem:[#allocation7 + $0x10e0] sm:$0xff] }
 0x2ea   :  { %v1822_v31 = vld [vmem:[#allocation7 + $0x1108] sm:$0xff] }
 0x2eb   :  { %3178 = vmatpush1.bf16.msra.mxu0 %v3177_v7  ;;  %3306 = vmatpush1.bf16.msra.mxu1 %v3305_v8  ;;  %v3193_v7 = vpack.c.bf16 %v1314_v55, %v1310_v54  ;;  %v3321_v8 = vpack.c.bf16 %v1316_v3, %v1312_v2  ;;  %v1807_v54 = vld [vmem:[#allocation7 + $0x1090] sm:$0xff] }
 0x2ec   :  { %3180 = vmatprep.subr.bf16.mxu0 %v3179_v17  ;;  %3308 = vmatprep.subr.bf16.mxu1 %v3307_v18  ;;  %v3323_v17 = vpack.c.bf16 %v1325_v6, %v1321_v5  ;;  %v1322_v18 = vld [vmem:[#allocation7 + $0xfe0] sm:$0xff]  ;;  %v1811_v55 = vld [vmem:[#allocation7 + $0x10b0] sm:$0xff]  ;;  %v1806_v5 = vld [vmem:[#allocation7 + $0x1088] sm:$0xff] }
 0x2ed   :  { %v3796_v2 = vld [vmem:[#allocation2 + $0x8] sm:$0x77]  ;;  %v3465_v6 = vpack.c.bf16 %v1811_v55, %v1807_v54 }
 0x2ef   :  { %3182 = vmatpush1.bf16.msra.mxu0 %v3181_v28  ;;  %3310 = vmatpush1.bf16.msra.mxu1 %v3309_v29  ;;  %v3197_v28 = vpack.c.bf16 %v1322_v18, %v1318_v9  ;;  %v3325_v29 = vpack.c.bf16 %v1324_v22, %v1320_v21  ;;  %v1815_v9 = vld [vmem:[#allocation7 + $0x10d0] sm:$0xff]  ;;  %v1828_v18 = vld [vmem:[#allocation7 + $0x1138] sm:$0xff]  ;;  %v3333_v21 = vpack.c.bf16 %v1801_v10, %v1797_v4  ;;  %v1805_v22 = vld [vmem:[#allocation7 + $0x1080] sm:$0xff] }
 0x2f0   :  { %3184 = vmatprep.subr.bf16.mxu0 %v3183_v33  ;;  %3312 = vmatprep.subr.bf16.mxu1 %v3311_v34  ;;  %v3455_v33 = vpack.c.bf16 %v1796_v27, %v1792_v26  ;;  %v1791_v34 = vld [vmem:[#allocation7 + $0x1010] sm:$0xff]  ;;  %v1818_v27 = vld [vmem:[#allocation7 + $0x10e8] sm:$0xff] }
 0x2f1   :  { %v1847_v10 = vld [vmem:[#allocation7 + $0x11d0] sm:$0xff] }
 0x2f3   :  { %3186 = vmatpush1.bf16.msra.mxu0 %v3185_v40  ;;  %3314 = vmatpush1.bf16.msra.mxu1 %v3313_v41  ;;  %v1790_v40 = vld [vmem:[#allocation7 + $0x1008] sm:$0xff]  ;;  %v3457_v41 = vpack.c.bf16 %v1795_v36, %v1791_v34  ;;  %v3337_v34 = vpack.c.bf16 %v1809_v23, %v1805_v22  ;;  %v3339_v36 = vpack.c.bf16 %v1818_v27, %v1814_v24  ;;  %v1855_v23 = vld [vmem:[#allocation7 + $0x1210] sm:$0xff]  ;;  %v1868_v27 = vld [vmem:[#allocation7 + $0x1278] sm:$0xff] }
 0x2f4   :  { %3188 = vmatprep.subr.bf16.mxu0 %v3187_v44  ;;  %3316 = vmatprep.subr.bf16.mxu1 %v3315_v45  ;;  %v1799_v44 = vld [vmem:[#allocation7 + $0x1050] sm:$0xff] }
 0x2f5   :  { %v1803_v45 = vld [vmem:[#allocation7 + $0x1070] sm:$0xff] }
 0x2f6   :  { %v3461_v52 = vpack.c.bf16 %v1803_v45, %v1799_v44  ;;  %v1844_v44 = vld [vmem:[#allocation7 + $0x11b8] sm:$0xff]  ;;  %v3341_v45 = vpack.c.bf16 %v1817_v37, %v1813_v19  ;;  %v1859_v24 = vld [vmem:[#allocation7 + $0x1230] sm:$0xff] }
 0x2f7   :  { %3190 = vmatpush1.bf16.msra.mxu0 %v3189_v35  ;;  %3318 = vmatpush1.bf16.msra.mxu1 %v3317_v53  ;;  %v1802_v35 = vld [vmem:[#allocation7 + $0x1068] sm:$0xff]  ;;  %v3463_v53 = vpack.c.bf16 %v1812_v48, %v1808_v46  ;;  %v1821_v48 = vld [vmem:[#allocation7 + $0x1100] sm:$0xff]  ;;  %v1863_v37 = vld [vmem:[#allocation7 + $0x1250] sm:$0xff] }
 0x2f8   :  { %3192 = vmatprep.subr.bf16.mxu0 %v3191_v58  ;;  %3320 = vmatprep.subr.bf16.mxu1 %v3319_v59  ;;  %v1816_v58 = vld [vmem:[#allocation7 + $0x10d8] sm:$0xff]  ;;  %v3331_v3 = vpack.c.bf16 %v1802_v35, %v1798_v51  ;;  %v1839_v51 = vld [vmem:[#allocation7 + $0x1190] sm:$0xff] }
 0x2f9   :  { %v1820_v59 = vld [vmem:[#allocation7 + $0x10f8] sm:$0xff] }
 0x2fa   :  { %v1848_v35 = vld [vmem:[#allocation7 + $0x11d8] sm:$0xff] }
 0x2fb   :  { %3194 = vmatpush1.bf16.msra.mxu0 %v3193_v7  ;;  %3322 = vmatpush1.bf16.msra.mxu1 %v3321_v8  ;;  %v1810_v7 = vld [vmem:[#allocation7 + $0x10a8] sm:$0xff]  ;;  %v3467_v8 = vpack.c.bf16 %v1820_v59, %v1816_v58  ;;  %v1829_v58 = vld [vmem:[#allocation7 + $0x1140] sm:$0xff] }
 0x2fc   :  { %3196 = vmatprep.subr.bf16.mxu0 %v3195_v16  ;;  %3324 = vmatprep.subr.bf16.mxu1 %v3323_v17  ;;  %v1819_v16 = vld [vmem:[#allocation7 + $0x10f0] sm:$0xff]  ;;  %v1824_v17 = vld [vmem:[#allocation7 + $0x1118] sm:$0xff]  ;;  %v1833_v59 = vld [vmem:[#allocation7 + $0x1160] sm:$0xff] }
 0x2fd   :  { %v3469_v26 = vpack.c.bf16 %v1819_v16, %v1815_v9  ;;  %v1837_v16 = vld [vmem:[#allocation7 + $0x1180] sm:$0xff] }
 0x2ff   :  { %3198 = vmatpush1.bf16.msra.mxu0 %v3197_v28  ;;  %3326 = vmatpush1.bf16.msra.mxu1 %v3325_v29  ;;  %v3471_v28 = vpack.c.bf16 %v1828_v18, %v1824_v17  ;;  %v1823_v29 = vld [vmem:[#allocation7 + $0x1110] sm:$0xff]  ;;  %v1841_v17 = vld [vmem:[#allocation7 + $0x11a0] sm:$0xff]  ;;  %v1846_v18 = vld [vmem:[#allocation7 + $0x11c8] sm:$0xff] }
 0x300   :  { %2773 = vmatprep.subr.msk.mxu0 %vm122_vm0, %v4126_v11  ;;  %3456 = vmatprep.subr.bf16.mxu1 %v3455_v33  ;;  %v3327_v11 = vpack.c.bf16 %v1794_v42, %v1790_v40  ;;  %v1836_v33 = vld [vmem:[#allocation7 + $0x1178] sm:$0xff]  ;;  %v3473_v38 = vpack.c.bf16 %v1827_v30, %v1823_v29  ;;  %v1835_v42 = vld [vmem:[#allocation7 + $0x1170] sm:$0xff]  ;;  %v1845_v30 = vld [vmem:[#allocation7 + $0x11c0] sm:$0xff] }
 0x301   :  { %v3475_v40 = vpack.c.bf16 %v1836_v33, %v1832_v32  ;;  %v1849_v32 = vld [vmem:[#allocation7 + $0x11e0] sm:$0xff]  ;;  %v1854_v33 = vld [vmem:[#allocation7 + $0x1208] sm:$0xff] }
 0x302   :  { %1462 = vmatmul.mubr.f32.vlgmr.msra.gmra.mrb[4].mxu0 %v1066_v39  ;;  %1604 = vmatmul.mubr.f32.vlgmr.msra.gmra.mrb[2].mxu1 %v1066_v39  ;;  %v1826_v39 = vld [vmem:[#allocation7 + $0x1128] sm:$0xff] }
 0x303   :  { %2774 = vmatpush1.msk.msra.mxu0 %vm122_vm0, %v3795_v49  ;;  %1711 = vmatprep.mubr.f32.mxu0 %v3971_v12  ;;  %v3343_v46 = vpack.c.bf16 %v1826_v39, %v1822_v31  ;;  %v1825_v49 = vld [vmem:[#allocation7 + $0x1120] sm:$0xff]  ;;  %v1867_v31 = vld [vmem:[#allocation7 + $0x1270] sm:$0xff]  ;;  %v1876_v39 = vld [vmem:[#allocation7 + $0x12b8] sm:$0xff] }
 0x304   :  { %2776 = vmatprep.subr.msk.mxu0 %vm122_vm0, %v4137_v14  ;;  %3458 = vmatpush1.bf16.msra.mxu1 %v3457_v41  ;;  %v3329_v14 = vpack.c.bf16 %v1793_v50, %v1789_v47  ;;  %v1831_v41 = vld [vmem:[#allocation7 + $0x1150] sm:$0xff]  ;;  %v1834_v47 = vld [vmem:[#allocation7 + $0x1168] sm:$0xff]  ;;  %v3345_v54 = vpack.c.bf16 %v1825_v49, %v1821_v48 }
 0x305   :  { %3460 = vmatprep.subr.bf16.mxu1 %v3459_v43  ;;  %v1840_v43 = vld [vmem:[#allocation7 + $0x1198] sm:$0xff]  ;;  %v1871_v49 = vld [vmem:[#allocation7 + $0x1290] sm:$0xff] }
 0x306   :  { %2775 = vmatmul.mubr.msk.f32.vlgmr.msra.gmra.mrb[10].mxu0 %vm177_vm2, %v1644_v60  ;;  %v3479_v50 = vpack.c.bf16 %v1844_v44, %v1840_v43  ;;  %v1857_v43 = vld [vmem:[#allocation7 + $0x1220] sm:$0xff]  ;;  %v1862_v44 = vld [vmem:[#allocation7 + $0x1248] sm:$0xff] }
 0x307   :  { %2777 = vmatpush1.msk.msra.mxu0 %vm122_vm0, %v3796_v2  ;;  %1782 = vmatprep.mubr.f32.mxu0 %v3971_v12  ;;  %v3335_v12 = vpack.c.bf16 %v1810_v7, %v1806_v5  ;;  %v1838_v2 = vld [vmem:[#allocation7 + $0x1188] sm:$0xff]  ;;  %v1851_v5 = vld [vmem:[#allocation7 + $0x11f0] sm:$0xff]  ;;  %v1860_v7 = vld [vmem:[#allocation7 + $0x1238] sm:$0xff] }
 0x308   :  { %3328 = vmatprep.subr.bf16.mxu0 %v3327_v11  ;;  %3462 = vmatpush1.bf16.msra.mxu1 %v3461_v52  ;;  %v3477_v11 = vpack.c.bf16 %v1835_v42, %v1831_v41  ;;  %v1843_v52 = vld [vmem:[#allocation7 + $0x11b0] sm:$0xff]  ;;  %v1853_v42 = vld [vmem:[#allocation7 + $0x1200] sm:$0xff] }
 0x309   :  { %3464 = vmatprep.subr.bf16.mxu1 %v3463_v53  ;;  %v1852_v53 = vld [vmem:[#allocation7 + $0x11f8] sm:$0xff] }
 0x30a   :  { %2778 = vmatmul.mubr.msk.f32.vlgmr.msra.gmra.mrb[12].mxu0 %vm177_vm2, %v1644_v60  ;;  %v1830_v60 = vld [vmem:[#allocation7 + $0x1148] sm:$0xff]  ;;  %v3483_v4 = vpack.c.bf16 %v1852_v53, %v1848_v35  ;;  %v1865_v35 = vld [vmem:[#allocation7 + $0x1260] sm:$0xff] }
 0x30b   :  { %3330 = vmatpush1.bf16.msra.mxu0 %v3329_v14  ;;  %v3347_v55 = vpack.c.bf16 %v1834_v47, %v1830_v60  ;;  %v3481_v14 = vpack.c.bf16 %v1843_v52, %v1839_v51  ;;  %v1875_v60 = vld [vmem:[#allocation7 + $0x12b0] sm:$0xff]  ;;  %v1884_v47 = vld [vmem:[#allocation7 + $0x12f8] sm:$0xff]  ;;  %v1861_v52 = vld [vmem:[#allocation7 + $0x1240] sm:$0xff] }
 0x30c   :  { %3332 = vmatprep.subr.bf16.mxu0 %v3331_v3  ;;  %3466 = vmatpush1.bf16.msra.mxu1 %v3465_v6  ;;  %v1842_v3 = vld [vmem:[#allocation7 + $0x11a8] sm:$0xff]  ;;  %v1856_v6 = vld [vmem:[#allocation7 + $0x1218] sm:$0xff] }
 0x30d   :  { %3468 = vmatprep.subr.bf16.mxu1 %v3467_v8  ;;  %v3349_v8 = vpack.c.bf16 %v1833_v59, %v1829_v58  ;;  %v3351_v9 = vpack.c.bf16 %v1842_v3, %v1838_v2  ;;  %v3487_v22 = vpack.c.bf16 %v1860_v7, %v1856_v6  ;;  %v1870_v53 = vld [vmem:[#allocation7 + $0x1288] sm:$0xff]  ;;  %v1879_v59 = vld [vmem:[#allocation7 + $0x12d0] sm:$0xff]  ;;  %v1892_v3 = vld [vmem:[#allocation7 + $0x1338] sm:$0xff] }
 0x30e   :  { %v1883_v2 = vld [vmem:[#allocation7 + $0x12f0] sm:$0xff]  ;;  %v1873_v6 = vld [vmem:[#allocation7 + $0x12a0] sm:$0xff]  ;;  %v1878_v7 = vld [vmem:[#allocation7 + $0x12c8] sm:$0xff] }
 0x30f   :  { %3334 = vmatpush1.bf16.msra.mxu0 %v3333_v21  ;;  %v3485_v21 = vpack.c.bf16 %v1851_v5, %v1847_v10  ;;  %v1869_v5 = vld [vmem:[#allocation7 + $0x1280] sm:$0xff] }
 0x310   :  { %3336 = vmatprep.subr.bf16.mxu0 %v3335_v12  ;;  %3470 = vmatpush1.bf16.msra.mxu1 %v3469_v26  ;;  %v1850_v12 = vld [vmem:[#allocation7 + $0x11e8] sm:$0xff]  ;;  %v1864_v26 = vld [vmem:[#allocation7 + $0x1258] sm:$0xff] }
 0x311   :  { %3472 = vmatprep.subr.bf16.mxu1 %v3471_v28  ;;  %v3353_v28 = vpack.c.bf16 %v1841_v17, %v1837_v16  ;;  %v3355_v29 = vpack.c.bf16 %v1850_v12, %v1846_v18  ;;  %v3491_v19 = vpack.c.bf16 %v1868_v27, %v1864_v26  ;;  %v1887_v17 = vld [vmem:[#allocation7 + $0x1310] sm:$0xff]  ;;  %v1900_v12 = vld [vmem:[#allocation7 + $0x1378] sm:$0xff]  ;;  %v1881_v26 = vld [vmem:[#allocation7 + $0x12e0] sm:$0xff] }
 0x312   :  { %v1891_v18 = vld [vmem:[#allocation7 + $0x1330] sm:$0xff]  ;;  %v1886_v27 = vld [vmem:[#allocation7 + $0x1308] sm:$0xff] }
 0x313   :  { %3338 = vmatpush1.bf16.msra.mxu0 %v3337_v34  ;;  %v3489_v34 = vpack.c.bf16 %v1859_v24, %v1855_v23  ;;  %v1877_v24 = vld [vmem:[#allocation7 + $0x12c0] sm:$0xff] }
 0x314   :  { %3340 = vmatprep.subr.bf16.mxu0 %v3339_v36  ;;  %3474 = vmatpush1.bf16.msra.mxu1 %v3473_v38  ;;  %v1858_v36 = vld [vmem:[#allocation7 + $0x1228] sm:$0xff]  ;;  %v1872_v38 = vld [vmem:[#allocation7 + $0x1298] sm:$0xff] }
 0x315   :  { %3476 = vmatprep.subr.bf16.mxu1 %v3475_v40  ;;  %v3357_v40 = vpack.c.bf16 %v1849_v32, %v1845_v30  ;;  %v3359_v41 = vpack.c.bf16 %v1858_v36, %v1854_v33  ;;  %v3495_v48 = vpack.c.bf16 %v1876_v39, %v1872_v38  ;;  %v1895_v32 = vld [vmem:[#allocation7 + $0x1350] sm:$0xff]  ;;  %v1908_v36 = vld [vmem:[#allocation7 + $0x13b8] sm:$0xff]  ;;  %v1889_v38 = vld [vmem:[#allocation7 + $0x1320] sm:$0xff] }
 0x316   :  { %v1899_v33 = vld [vmem:[#allocation7 + $0x1370] sm:$0xff]  ;;  %v1894_v39 = vld [vmem:[#allocation7 + $0x1348] sm:$0xff] }
 0x317   :  { %3342 = vmatpush1.bf16.msra.mxu0 %v3341_v45  ;;  %v3493_v45 = vpack.c.bf16 %v1867_v31, %v1863_v37  ;;  %v1885_v31 = vld [vmem:[#allocation7 + $0x1300] sm:$0xff] }
 0x318   :  { %3344 = vmatprep.subr.bf16.mxu0 %v3343_v46  ;;  %3478 = vmatpush1.bf16.msra.mxu1 %v3477_v11  ;;  %v1866_v46 = vld [vmem:[#allocation7 + $0x1268] sm:$0xff]  ;;  %v1880_v11 = vld [vmem:[#allocation7 + $0x12d8] sm:$0xff] }
 0x319   :  { %3480 = vmatprep.subr.bf16.mxu1 %v3479_v50  ;;  %v3361_v50 = vpack.c.bf16 %v1857_v43, %v1853_v42  ;;  %v3363_v51 = vpack.c.bf16 %v1866_v46, %v1862_v44  ;;  %v3499_v58 = vpack.c.bf16 %v1884_v47, %v1880_v11  ;;  %v1903_v43 = vld [vmem:[#allocation7 + $0x1390] sm:$0xff]  ;;  %v1902_v11 = vld [vmem:[#allocation7 + $0x1388] sm:$0xff] }
 0x31a   :  { %v1907_v44 = vld [vmem:[#allocation7 + $0x13b0] sm:$0xff]  ;;  %v1906_v47 = vld [vmem:[#allocation7 + $0x13a8] sm:$0xff] }
 0x31b   :  { %3346 = vmatpush1.bf16.msra.mxu0 %v3345_v54  ;;  %v3497_v54 = vpack.c.bf16 %v1875_v60, %v1871_v49  ;;  %v1897_v49 = vld [vmem:[#allocation7 + $0x1360] sm:$0xff]  ;;  %v3513_v60 = vpack.c.bf16 %v1907_v44, %v1903_v43  ;;  %v1938_v44 = vld [vmem:[#allocation7 + $0x14a8] sm:$0xff] }
 0x31c   :  { %3348 = vmatprep.subr.bf16.mxu0 %v3347_v55  ;;  %3482 = vmatpush1.bf16.msra.mxu1 %v3481_v14  ;;  %v1874_v55 = vld [vmem:[#allocation7 + $0x12a8] sm:$0xff]  ;;  %v1888_v14 = vld [vmem:[#allocation7 + $0x1318] sm:$0xff] }
 0x31d   :  { %3484 = vmatprep.subr.bf16.mxu1 %v3483_v4  ;;  %v3365_v4 = vpack.c.bf16 %v1865_v35, %v1861_v52  ;;  %v3367_v10 = vpack.c.bf16 %v1874_v55, %v1870_v53  ;;  %v3503_v16 = vpack.c.bf16 %v1892_v3, %v1888_v14  ;;  %v1901_v52 = vld [vmem:[#allocation7 + $0x1380] sm:$0xff]  ;;  %v1914_v55 = vld [vmem:[#allocation7 + $0x13e8] sm:$0xff] }
 0x31e   :  { %v1905_v35 = vld [vmem:[#allocation7 + $0x13a0] sm:$0xff] }
 0x31f   :  { %3350 = vmatpush1.bf16.msra.mxu0 %v3349_v8  ;;  %v3501_v8 = vpack.c.bf16 %v1883_v2, %v1879_v59  ;;  %v3385_v53 = vpack.c.bf16 %v1905_v35, %v1901_v52  ;;  %v1916_v2 = vld [vmem:[#allocation7 + $0x13f8] sm:$0xff]  ;;  %v1909_v14 = vld [vmem:[#allocation7 + $0x13c0] sm:$0xff]  ;;  %v1939_v52 = vld [vmem:[#allocation7 + $0x14b0] sm:$0xff] }
 0x320   :  { %3352 = vmatprep.subr.bf16.mxu0 %v3351_v9  ;;  %3486 = vmatpush1.bf16.msra.mxu1 %v3485_v21  ;;  %v1882_v9 = vld [vmem:[#allocation7 + $0x12e8] sm:$0xff]  ;;  %v1896_v21 = vld [vmem:[#allocation7 + $0x1358] sm:$0xff]  ;;  %v1913_v3 = vld [vmem:[#allocation7 + $0x13e0] sm:$0xff] }
 0x321   :  { %3488 = vmatprep.subr.bf16.mxu1 %v3487_v22  ;;  %v3369_v22 = vpack.c.bf16 %v1873_v6, %v1869_v5  ;;  %v3371_v23 = vpack.c.bf16 %v1882_v9, %v1878_v7  ;;  %v3507_v30 = vpack.c.bf16 %v1900_v12, %v1896_v21  ;;  %v1911_v5 = vld [vmem:[#allocation7 + $0x13d0] sm:$0xff]  ;;  %v1922_v9 = vld [vmem:[#allocation7 + $0x1428] sm:$0xff]  ;;  %v1917_v12 = vld [vmem:[#allocation7 + $0x1400] sm:$0xff] }
 0x322   :  { %v1915_v6 = vld [vmem:[#allocation7 + $0x13f0] sm:$0xff]  ;;  %v1942_v35 = vld [vmem:[#allocation7 + $0x14c8] sm:$0xff] }
 0x323   :  { %3354 = vmatpush1.bf16.msra.mxu0 %v3353_v28  ;;  %v3505_v28 = vpack.c.bf16 %v1891_v18, %v1887_v17  ;;  %v3517_v7 = vpack.c.bf16 %v1915_v6, %v1911_v5  ;;  %v1924_v18 = vld [vmem:[#allocation7 + $0x1438] sm:$0xff]  ;;  %v1950_v5 = vld [vmem:[#allocation7 + $0x1508] sm:$0xff] }
 0x324   :  { %3356 = vmatprep.subr.bf16.mxu0 %v3355_v29  ;;  %3490 = vmatpush1.bf16.msra.mxu1 %v3489_v34  ;;  %v1890_v29 = vld [vmem:[#allocation7 + $0x1328] sm:$0xff]  ;;  %v1904_v34 = vld [vmem:[#allocation7 + $0x1398] sm:$0xff] }
 0x325   :  { %3492 = vmatprep.subr.bf16.mxu1 %v3491_v19  ;;  %v3373_v19 = vpack.c.bf16 %v1881_v26, %v1877_v24  ;;  %v3375_v37 = vpack.c.bf16 %v1890_v29, %v1886_v27  ;;  %v3511_v42 = vpack.c.bf16 %v1908_v36, %v1904_v34  ;;  %v1923_v24 = vld [vmem:[#allocation7 + $0x1430] sm:$0xff]  ;;  %v1926_v26 = vld [vmem:[#allocation7 + $0x1448] sm:$0xff]  ;;  %v1928_v29 = vld [vmem:[#allocation7 + $0x1458] sm:$0xff] }
 0x326   :  { %v1954_v6 = vld [vmem:[#allocation7 + $0x1528] sm:$0xff] }
 0x327   :  { %3358 = vmatpush1.bf16.msra.mxu0 %v3357_v40  ;;  %v3509_v40 = vpack.c.bf16 %v1899_v33, %v1895_v32 }
 0x328   :  { %3360 = vmatprep.subr.bf16.mxu0 %v3359_v41  ;;  %3494 = vmatpush1.bf16.msra.mxu1 %v3493_v45  ;;  %v1898_v41 = vld [vmem:[#allocation7 + $0x1368] sm:$0xff]  ;;  %v3377_v45 = vpack.c.bf16 %v1889_v38, %v1885_v31 }
 0x329   :  { %3496 = vmatprep.subr.bf16.mxu1 %v3495_v48  ;;  %v3379_v46 = vpack.c.bf16 %v1898_v41, %v1894_v39  ;;  %v1893_v48 = vld [vmem:[#allocation7 + $0x1340] sm:$0xff]  ;;  %v1931_v41 = vld [vmem:[#allocation7 + $0x1470] sm:$0xff] }
 0x32b   :  { %3362 = vmatpush1.bf16.msra.mxu0 %v3361_v50  ;;  %v3381_v50 = vpack.c.bf16 %v1897_v49, %v1893_v48 }
 0x32c   :  { %3364 = vmatprep.subr.bf16.mxu0 %v3363_v51  ;;  %3498 = vmatpush1.bf16.msra.mxu1 %v3497_v54  ;;  %v3383_v51 = vpack.c.bf16 %v1906_v47, %v1902_v11  ;;  %v1910_v54 = vld [vmem:[#allocation7 + $0x13c8] sm:$0xff]  ;;  %v1937_v11 = vld [vmem:[#allocation7 + $0x14a0] sm:$0xff] }
 0x32d   :  { %3500 = vmatprep.subr.bf16.mxu1 %v3499_v58  ;;  %v1912_v58 = vld [vmem:[#allocation7 + $0x13d8] sm:$0xff]  ;;  %v3387_v59 = vpack.c.bf16 %v1914_v55, %v1910_v54 }
 0x32e   :  { %v1944_v54 = vld [vmem:[#allocation7 + $0x14d8] sm:$0xff] }
 0x32f   :  { %3366 = vmatpush1.bf16.msra.mxu0 %v3365_v4  ;;  %v3515_v4 = vpack.c.bf16 %v1916_v2, %v1912_v58  ;;  %v1948_v55 = vld [vmem:[#allocation7 + $0x14f8] sm:$0xff]  ;;  %v1945_v2 = vld [vmem:[#allocation7 + $0x14e0] sm:$0xff] }
 0x330   :  { %3368 = vmatprep.subr.bf16.mxu0 %v3367_v10  ;;  %3502 = vmatpush1.bf16.msra.mxu1 %v3501_v8  ;;  %v3389_v10 = vpack.c.bf16 %v1913_v3, %v1909_v14  ;;  %v1918_v8 = vld [vmem:[#allocation7 + $0x1408] sm:$0xff]  ;;  %v3531_v3 = vpack.c.bf16 %v1948_v55, %v1944_v54  ;;  %v1975_v55 = vld [vmem:[#allocation7 + $0x15d0] sm:$0xff] }
 0x331   :  { %3504 = vmatprep.subr.bf16.mxu1 %v3503_v16  ;;  %v1920_v16 = vld [vmem:[#allocation7 + $0x1418] sm:$0xff]  ;;  %v3391_v17 = vpack.c.bf16 %v1922_v9, %v1918_v8 }
 0x332   :  { %v3519_v21 = vpack.c.bf16 %v1924_v18, %v1920_v16  ;;  %v1956_v8 = vld [vmem:[#allocation7 + $0x1538] sm:$0xff]  ;;  %v1953_v18 = vld [vmem:[#allocation7 + $0x1520] sm:$0xff] }
 0x333   :  { %3370 = vmatpush1.bf16.msra.mxu0 %v3369_v22  ;;  %v1921_v22 = vld [vmem:[#allocation7 + $0x1420] sm:$0xff] }
 0x334   :  { %3372 = vmatprep.subr.bf16.mxu0 %v3371_v23  ;;  %3506 = vmatpush1.bf16.msra.mxu1 %v3505_v28  ;;  %v1919_v23 = vld [vmem:[#allocation7 + $0x1410] sm:$0xff]  ;;  %v1930_v28 = vld [vmem:[#allocation7 + $0x1468] sm:$0xff]  ;;  %v3393_v34 = vpack.c.bf16 %v1921_v22, %v1917_v12 }
 0x335   :  { %3508 = vmatprep.subr.bf16.mxu1 %v3507_v30  ;;  %v1932_v30 = vld [vmem:[#allocation7 + $0x1478] sm:$0xff]  ;;  %v3521_v36 = vpack.c.bf16 %v1923_v24, %v1919_v23  ;;  %v3395_v38 = vpack.c.bf16 %v1930_v28, %v1926_v26  ;;  %v1951_v22 = vld [vmem:[#allocation7 + $0x1510] sm:$0xff]  ;;  %v1958_v24 = vld [vmem:[#allocation7 + $0x1548] sm:$0xff] }
 0x336   :  { %v3523_v39 = vpack.c.bf16 %v1932_v30, %v1928_v29  ;;  %v1955_v23 = vld [vmem:[#allocation7 + $0x1530] sm:$0xff]  ;;  %v1962_v26 = vld [vmem:[#allocation7 + $0x1568] sm:$0xff]  ;;  %v1964_v28 = vld [vmem:[#allocation7 + $0x1578] sm:$0xff] }
 0x337   :  { %3374 = vmatpush1.bf16.msra.mxu0 %v3373_v19  ;;  %v1925_v19 = vld [vmem:[#allocation7 + $0x1440] sm:$0xff]  ;;  %v3537_v30 = vpack.c.bf16 %v1955_v23, %v1951_v22 }
 0x338   :  { %3376 = vmatprep.subr.bf16.mxu0 %v3375_v37  ;;  %3510 = vmatpush1.bf16.msra.mxu1 %v3509_v40  ;;  %v1929_v37 = vld [vmem:[#allocation7 + $0x1460] sm:$0xff]  ;;  %v1927_v40 = vld [vmem:[#allocation7 + $0x1450] sm:$0xff] }
 0x339   :  { %3512 = vmatprep.subr.bf16.mxu1 %v3511_v42  ;;  %v1934_v42 = vld [vmem:[#allocation7 + $0x1488] sm:$0xff]  ;;  %v3525_v49 = vpack.c.bf16 %v1931_v41, %v1927_v40  ;;  %v1972_v40 = vld [vmem:[#allocation7 + $0x15b8] sm:$0xff]  ;;  %v1989_v23 = vld [vmem:[#allocation7 + $0x1640] sm:$0xff] }
 0x33a   :  { %v3399_v47 = vpack.c.bf16 %v1938_v44, %v1934_v42  ;;  %v1965_v44 = vld [vmem:[#allocation7 + $0x1580] sm:$0xff] }
 0x33b   :  { %3378 = vmatpush1.bf16.msra.mxu0 %v3377_v45  ;;  %v1936_v45 = vld [vmem:[#allocation7 + $0x1498] sm:$0xff] }
 0x33c   :  { %3380 = vmatprep.subr.bf16.mxu0 %v3379_v46  ;;  %3514 = vmatpush1.bf16.msra.mxu1 %v3513_v60  ;;  %v1940_v46 = vld [vmem:[#allocation7 + $0x14b8] sm:$0xff]  ;;  %v1933_v60 = vld [vmem:[#allocation7 + $0x1480] sm:$0xff] }
 0x33d   :  { %3516 = vmatprep.subr.bf16.mxu1 %v3515_v4  ;;  %v1943_v4 = vld [vmem:[#allocation7 + $0x14d0] sm:$0xff] }
 0x33f   :  { %3382 = vmatpush1.bf16.msra.mxu0 %v3381_v50  ;;  %v3527_v50 = vpack.c.bf16 %v1940_v46, %v1936_v45  ;;  %v1969_v45 = vld [vmem:[#allocation7 + $0x15a0] sm:$0xff] }
 0x340   :  { %3384 = vmatprep.subr.bf16.mxu0 %v3383_v51  ;;  %3518 = vmatpush1.bf16.msra.mxu1 %v3517_v7  ;;  %v1935_v51 = vld [vmem:[#allocation7 + $0x1490] sm:$0xff]  ;;  %v1952_v7 = vld [vmem:[#allocation7 + $0x1518] sm:$0xff] }
 0x341   :  { %3520 = vmatprep.subr.bf16.mxu1 %v3519_v21  ;;  %v3529_v58 = vpack.c.bf16 %v1939_v52, %v1935_v51  ;;  %v3407_v21 = vpack.c.bf16 %v1954_v6, %v1950_v5  ;;  %v3535_v12 = vpack.c.bf16 %v1956_v8, %v1952_v7  ;;  %v1973_v52 = vld [vmem:[#allocation7 + $0x15c0] sm:$0xff]  ;;  %v1983_v8 = vld [vmem:[#allocation7 + $0x1610] sm:$0xff] }
 0x342   :  { %v1985_v5 = vld [vmem:[#allocation7 + $0x1620] sm:$0xff] }
 0x343   :  { %3386 = vmatpush1.bf16.msra.mxu0 %v3385_v53  ;;  %v1946_v53 = vld [vmem:[#allocation7 + $0x14e8] sm:$0xff] }
 0x344   :  { %3388 = vmatprep.subr.bf16.mxu0 %v3387_v59  ;;  %v1941_v59 = vld [vmem:[#allocation7 + $0x14c0] sm:$0xff]  ;;  %v3403_v14 = vpack.c.bf16 %v1946_v53, %v1942_v35 }
 0x345   :  { %v3405_v9 = vpack.c.bf16 %v1945_v2, %v1941_v59  ;;  %v1977_v35 = vld [vmem:[#allocation7 + $0x15e0] sm:$0xff]  ;;  %v1986_v59 = vld [vmem:[#allocation7 + $0x1628] sm:$0xff]  ;;  %v1984_v2 = vld [vmem:[#allocation7 + $0x1618] sm:$0xff] }
 0x347   :  { %3390 = vmatpush1.bf16.msra.mxu0 %v3389_v10  ;;  %v1947_v10 = vld [vmem:[#allocation7 + $0x14f0] sm:$0xff] }
 0x348   :  { %3392 = vmatprep.subr.bf16.mxu0 %v3391_v17  ;;  %v3533_v16 = vpack.c.bf16 %v1947_v10, %v1943_v4  ;;  %v1949_v17 = vld [vmem:[#allocation7 + $0x1500] sm:$0xff] }
 0x349   :  { %v3409_v29 = vpack.c.bf16 %v1953_v18, %v1949_v17  ;;  %v1981_v10 = vld [vmem:[#allocation7 + $0x1600] sm:$0xff]  ;;  %v1994_v17 = vld [vmem:[#allocation7 + $0x1668] sm:$0xff]  ;;  %v1992_v18 = vld [vmem:[#allocation7 + $0x1658] sm:$0xff] }
 0x3d9   :  { %v1713_v27 = vpop.f32.mrb[10].mxu0 }
 0x3da   :  { %v1715_v32 = vpop.f32.mrb[11].mxu0  ;;  %v1714_v31 = vadd.f32 %v1713_v27, %v4177_v0  ;;  %v3397_v0 = vpack.c.bf16 %v1929_v37, %v1925_v19  ;;  %v1960_v27 = vld [vmem:[#allocation7 + $0x1558] sm:$0xff]  ;;  %v1959_v19 = vld [vmem:[#allocation7 + $0x1550] sm:$0xff] }
 0x3db   :  { %v1716_v33 = vadd.f32 %v1715_v32, %v4173_v62  ;;  %v1957_v32 = vld [vmem:[#allocation7 + $0x1540] sm:$0xff]  ;;  %v1963_v37 = vld [vmem:[#allocation7 + $0x1570] sm:$0xff] }
 0x3dc   :  { %v3541_v42 = vpack.c.bf16 %v1963_v37, %v1959_v19  ;;  %v1997_v37 = vld [vmem:[#allocation7 + $0x1680] sm:$0xff] }
 0x3dd   :  { %v4253_v43 = vpop.f32.mrb[12].mxu0  ;;  %2109 = vmatprep.mubr.f32.mxu0 %v1716_v33  ;;  %2251 = vmatprep.mubr.f32.mxu1 %v1716_v33  ;;  %v1961_v33 = vld [vmem:[#allocation7 + $0x1560] sm:$0xff] }
 0x3de   :  { %v1786_v48 = vpop.f32.mrb[13].mxu0  ;;  %2110 = vmatmul.mubr.f32.vlgmr.msra.gmra.mrb[4].mxu0 %v1714_v31  ;;  %2252 = vmatmul.mubr.f32.vlgmr.msra.gmra.mrb[2].mxu1 %v1714_v31  ;;  %v1966_v31 = vld [vmem:[#allocation7 + $0x1588] sm:$0xff]  ;;  %v3413_v41 = vpack.c.bf16 %v1961_v33, %v1957_v32  ;;  %v2000_v33 = vld [vmem:[#allocation7 + $0x1698] sm:$0xff] }
 0x3df   :  { %v1787_v62 = vadd.f32 %v1786_v48, %v4183_v15  ;;  %3394 = vmatpush1.bf16.msra.mxu0 %v3393_v34  ;;  %3522 = vmatpush1.bf16.msra.mxu1 %v3521_v36  ;;  %v3401_v15 = vpack.c.bf16 %v1937_v11, %v1933_v60  ;;  %v3411_v34 = vpack.c.bf16 %v1962_v26, %v1958_v24  ;;  %v1978_v60 = vld [vmem:[#allocation7 + $0x15e8] sm:$0xff]  ;;  %v1976_v11 = vld [vmem:[#allocation7 + $0x15d8] sm:$0xff]  ;;  %v1993_v24 = vld [vmem:[#allocation7 + $0x1660] sm:$0xff] }
 0x3e0   :  { %3396 = vmatprep.subr.bf16.mxu0 %v3395_v38  ;;  %3524 = vmatprep.subr.bf16.mxu1 %v3523_v39  ;;  %v3539_v36 = vpack.c.bf16 %v1964_v28, %v1960_v27  ;;  %v1970_v38 = vld [vmem:[#allocation7 + $0x15a8] sm:$0xff]  ;;  %v1968_v39 = vld [vmem:[#allocation7 + $0x1598] sm:$0xff]  ;;  %v1991_v28 = vld [vmem:[#allocation7 + $0x1650] sm:$0xff] }
 0x3e1   :  { %2180 = vmatprep.mubr.f32.mxu0 %v1787_v62  ;;  %2322 = vmatprep.mubr.f32.mxu1 %v1787_v62  ;;  %v3415_v46 = vpack.c.bf16 %v1970_v38, %v1966_v31  ;;  %v3543_v48 = vpack.c.bf16 %v1972_v40, %v1968_v39  ;;  %v1967_v62 = vld [vmem:[#allocation7 + $0x1590] sm:$0xff]  ;;  %v2002_v32 = vld [vmem:[#allocation7 + $0x16a8] sm:$0xff]  ;;  %v2001_v31 = vld [vmem:[#allocation7 + $0x16a0] sm:$0xff] }
 0x3e2   :  { %v1999_v40 = vld [vmem:[#allocation7 + $0x1690] sm:$0xff] }
 0x3e3   :  { %3398 = vmatpush1.bf16.msra.mxu0 %v3397_v0  ;;  %3526 = vmatpush1.bf16.msra.mxu1 %v3525_v49  ;;  %v1971_v0 = vld [vmem:[#allocation7 + $0x15b0] sm:$0xff]  ;;  %v1974_v49 = vld [vmem:[#allocation7 + $0x15c8] sm:$0xff] }
 0x3e4   :  { %3400 = vmatprep.subr.bf16.mxu0 %v3399_v47  ;;  %3528 = vmatprep.subr.bf16.mxu1 %v3527_v50  ;;  %v1980_v47 = vld [vmem:[#allocation7 + $0x15f8] sm:$0xff]  ;;  %v3417_v50 = vpack.c.bf16 %v1969_v45, %v1965_v44  ;;  %v3545_v51 = vpack.c.bf16 %v1971_v0, %v1967_v62  ;;  %v3419_v53 = vpack.c.bf16 %v1978_v60, %v1974_v49  ;;  %v2010_v44 = vld [vmem:[#allocation7 + $0x16e8] sm:$0xff]  ;;  %v2005_v0 = vld [vmem:[#allocation7 + $0x16c0] sm:$0xff] }
 0x3e5   :  { %v3547_v54 = vpack.c.bf16 %v1980_v47, %v1976_v11  ;;  %v2008_v45 = vld [vmem:[#allocation7 + $0x16d8] sm:$0xff]  ;;  %v2009_v49 = vld [vmem:[#allocation7 + $0x16e0] sm:$0xff]  ;;  %v2007_v47 = vld [vmem:[#allocation7 + $0x16d0] sm:$0xff] }
 0x3e7   :  { %3402 = vmatpush1.bf16.msra.mxu0 %v3401_v15  ;;  %3530 = vmatpush1.bf16.msra.mxu1 %v3529_v58  ;;  %v1979_v15 = vld [vmem:[#allocation7 + $0x15f0] sm:$0xff]  ;;  %v1982_v58 = vld [vmem:[#allocation7 + $0x1608] sm:$0xff] }
 0x3e8   :  { %3404 = vmatprep.subr.bf16.mxu0 %v3403_v14  ;;  %3532 = vmatprep.subr.bf16.mxu1 %v3531_v3  ;;  %v1988_v14 = vld [vmem:[#allocation7 + $0x1638] sm:$0xff]  ;;  %v3421_v3 = vpack.c.bf16 %v1977_v35, %v1973_v52  ;;  %v3549_v4 = vpack.c.bf16 %v1979_v15, %v1975_v55  ;;  %v3423_v6 = vpack.c.bf16 %v1986_v59, %v1982_v58  ;;  %v2018_v52 = vld [vmem:[#allocation7 + $0x1728] sm:$0xff]  ;;  %v2013_v15 = vld [vmem:[#allocation7 + $0x1700] sm:$0xff] }
 0x3e9   :  { %v3551_v7 = vpack.c.bf16 %v1988_v14, %v1984_v2  ;;  %v2016_v35 = vld [vmem:[#allocation7 + $0x1718] sm:$0xff]  ;;  %v2017_v58 = vld [vmem:[#allocation7 + $0x1720] sm:$0xff]  ;;  %v2015_v14 = vld [vmem:[#allocation7 + $0x1710] sm:$0xff] }
 0x3eb   :  { %3406 = vmatpush1.bf16.msra.mxu0 %v3405_v9  ;;  %3534 = vmatpush1.bf16.msra.mxu1 %v3533_v16  ;;  %v1987_v9 = vld [vmem:[#allocation7 + $0x1630] sm:$0xff]  ;;  %v1990_v16 = vld [vmem:[#allocation7 + $0x1648] sm:$0xff] }
 0x3ec   :  { %3408 = vmatprep.subr.bf16.mxu0 %v3407_v21  ;;  %3536 = vmatprep.subr.bf16.mxu1 %v3535_v12  ;;  %v1996_v21 = vld [vmem:[#allocation7 + $0x1678] sm:$0xff]  ;;  %v3425_v12 = vpack.c.bf16 %v1985_v5, %v1981_v10  ;;  %v3553_v22 = vpack.c.bf16 %v1987_v9, %v1983_v8  ;;  %v3427_v26 = vpack.c.bf16 %v1994_v17, %v1990_v16  ;;  %v2026_v10 = vld [vmem:[#allocation7 + $0x1768] sm:$0xff]  ;;  %v2021_v9 = vld [vmem:[#allocation7 + $0x1740] sm:$0xff] }
 0x3ed   :  { %v3555_v27 = vpack.c.bf16 %v1996_v21, %v1992_v18  ;;  %v2024_v5 = vld [vmem:[#allocation7 + $0x1758] sm:$0xff]  ;;  %v2025_v16 = vld [vmem:[#allocation7 + $0x1760] sm:$0xff]  ;;  %v2023_v21 = vld [vmem:[#allocation7 + $0x1750] sm:$0xff] }
 0x3ef   :  { %3410 = vmatpush1.bf16.msra.mxu0 %v3409_v29  ;;  %3538 = vmatpush1.bf16.msra.mxu1 %v3537_v30  ;;  %v1995_v29 = vld [vmem:[#allocation7 + $0x1670] sm:$0xff]  ;;  %v1998_v30 = vld [vmem:[#allocation7 + $0x1688] sm:$0xff] }
 0x3f0   :  { %3412 = vmatprep.subr.bf16.mxu0 %v3411_v34  ;;  %3540 = vmatprep.subr.bf16.mxu1 %v3539_v36  ;;  %v2004_v34 = vld [vmem:[#allocation7 + $0x16b8] sm:$0xff]  ;;  %v3429_v36 = vpack.c.bf16 %v1993_v24, %v1989_v23  ;;  %v3557_v19 = vpack.c.bf16 %v1995_v29, %v1991_v28  ;;  %v3431_v38 = vpack.c.bf16 %v2002_v32, %v1998_v30  ;;  %v2034_v23 = vld [vmem:[#allocation7 + $0x17a8] sm:$0xff]  ;;  %v2029_v29 = vld [vmem:[#allocation7 + $0x1780] sm:$0xff] }
 0x3f1   :  { %v3559_v39 = vpack.c.bf16 %v2004_v34, %v2000_v33  ;;  %v2032_v24 = vld [vmem:[#allocation7 + $0x1798] sm:$0xff]  ;;  %v2033_v30 = vld [vmem:[#allocation7 + $0x17a0] sm:$0xff]  ;;  %v2031_v34 = vld [vmem:[#allocation7 + $0x1790] sm:$0xff] }
 0x3f3   :  { %3414 = vmatpush1.bf16.msra.mxu0 %v3413_v41  ;;  %3542 = vmatpush1.bf16.msra.mxu1 %v3541_v42  ;;  %v2003_v41 = vld [vmem:[#allocation7 + $0x16b0] sm:$0xff]  ;;  %v2006_v42 = vld [vmem:[#allocation7 + $0x16c8] sm:$0xff] }
 0x3f4   :  { %3416 = vmatprep.subr.bf16.mxu0 %v3415_v46  ;;  %3544 = vmatprep.subr.bf16.mxu1 %v3543_v48  ;;  %v2012_v46 = vld [vmem:[#allocation7 + $0x16f8] sm:$0xff]  ;;  %v3433_v48 = vpack.c.bf16 %v2001_v31, %v1997_v37  ;;  %v3561_v62 = vpack.c.bf16 %v2003_v41, %v1999_v40  ;;  %v3435_v60 = vpack.c.bf16 %v2010_v44, %v2006_v42  ;;  %v2042_v37 = vld [vmem:[#allocation7 + $0x17e8] sm:$0xff]  ;;  %v2037_v41 = vld [vmem:[#allocation7 + $0x17c0] sm:$0xff] }
 0x3f5   :  { %v3563_v11 = vpack.c.bf16 %v2012_v46, %v2008_v45  ;;  %v2040_v31 = vld [vmem:[#allocation7 + $0x17d8] sm:$0xff]  ;;  %v2041_v45 = vld [vmem:[#allocation7 + $0x17e0] sm:$0xff]  ;;  %v2039_v46 = vld [vmem:[#allocation7 + $0x17d0] sm:$0xff] }
 0x3f7   :  { %3418 = vmatpush1.bf16.msra.mxu0 %v3417_v50  ;;  %3546 = vmatpush1.bf16.msra.mxu1 %v3545_v51  ;;  %v2011_v50 = vld [vmem:[#allocation7 + $0x16f0] sm:$0xff]  ;;  %v2014_v51 = vld [vmem:[#allocation7 + $0x1708] sm:$0xff] }
 0x3f8   :  { %3420 = vmatprep.subr.bf16.mxu0 %v3419_v53  ;;  %3548 = vmatprep.subr.bf16.mxu1 %v3547_v54  ;;  %v2020_v53 = vld [vmem:[#allocation7 + $0x1738] sm:$0xff]  ;;  %v3437_v54 = vpack.c.bf16 %v2009_v49, %v2005_v0  ;;  %v3565_v55 = vpack.c.bf16 %v2011_v50, %v2007_v47  ;;  %v3439_v59 = vpack.c.bf16 %v2018_v52, %v2014_v51  ;;  %v2337_v47 = vld [vmem:[#allocation10] sm:$0xff]  ;;  %v2342_v51 = vld [vmem:[#allocation10 + $0x28] sm:$0xff] }
 0x3f9   :  { %v3567_v2 = vpack.c.bf16 %v2020_v53, %v2016_v35  ;;  %v2340_v0 = vld [vmem:[#allocation10 + $0x18] sm:$0xff]  ;;  %v3453_v49 = vpack.c.bf16 %v2041_v45, %v2037_v41  ;;  %v2339_v50 = vld [vmem:[#allocation10 + $0x10] sm:$0xff]  ;;  %v1785_v53 = vadd.f32 %v4253_v43, %v4190_v20  ;;  %v2349_v43 = vld [vmem:[#allocation10 + $0x60] sm:$0xff] }
 0x3fa   :  { %v2344_v52 = vld [vmem:[#allocation10 + $0x38] sm:$0xff]  ;;  %v3585_v35 = vpack.c.bf16 %v2339_v50, %v2337_v47  ;;  %v2369_v45 = vld [vmem:[#allocation10 + $0x100] sm:$0xff]  ;;  %v2378_v47 = vld [vmem:[#allocation10 + $0x148] sm:$0xff] }
 0x3fb   :  { %3422 = vmatpush1.bf16.msra.mxu0 %v3421_v3  ;;  %3550 = vmatpush1.bf16.msra.mxu1 %v3549_v4  ;;  %v2019_v3 = vld [vmem:[#allocation7 + $0x1730] sm:$0xff]  ;;  %v2022_v4 = vld [vmem:[#allocation7 + $0x1748] sm:$0xff]  ;;  %v2372_v41 = vld [vmem:[#allocation10 + $0x118] sm:$0xff] }
 0x3fc   :  { %3424 = vmatprep.subr.bf16.mxu0 %v3423_v6  ;;  %3552 = vmatprep.subr.bf16.mxu1 %v3551_v7  ;;  %v2028_v6 = vld [vmem:[#allocation7 + $0x1778] sm:$0xff]  ;;  %v3441_v7 = vpack.c.bf16 %v2017_v58, %v2013_v15  ;;  %v3569_v8 = vpack.c.bf16 %v2019_v3, %v2015_v14  ;;  %v3443_v17 = vpack.c.bf16 %v2026_v10, %v2022_v4  ;;  %v2346_v58 = vld [vmem:[#allocation10 + $0x48] sm:$0xff]  ;;  %v2345_v3 = vld [vmem:[#allocation10 + $0x40] sm:$0xff] }
 0x3fd   :  { %v3571_v18 = vpack.c.bf16 %v2028_v6, %v2024_v5  ;;  %v2343_v15 = vld [vmem:[#allocation10 + $0x30] sm:$0xff]  ;;  %v2350_v10 = vld [vmem:[#allocation10 + $0x68] sm:$0xff]  ;;  %v2352_v5 = vld [vmem:[#allocation10 + $0x78] sm:$0xff] }
 0x3fe   :  { %v2347_v4 = vld [vmem:[#allocation10 + $0x50] sm:$0xff]  ;;  %v3595_v20 = vpack.c.bf16 %v2352_v5, %v2350_v10  ;;  %v2380_v50 = vld [vmem:[#allocation10 + $0x158] sm:$0xff]  ;;  %v2385_v5 = vld [vmem:[#allocation10 + $0x180] sm:$0xff] }
 0x3ff   :  { %3426 = vmatpush1.bf16.msra.mxu0 %v3425_v12  ;;  %3554 = vmatpush1.bf16.msra.mxu1 %v3553_v22  ;;  %v2027_v12 = vld [vmem:[#allocation7 + $0x1770] sm:$0xff]  ;;  %v2030_v22 = vld [vmem:[#allocation7 + $0x1788] sm:$0xff]  ;;  %v3593_v6 = vpack.c.bf16 %v2347_v4, %v2345_v3  ;;  %v2388_v3 = vld [vmem:[#allocation10 + $0x198] sm:$0xff] }
 0x400   :  { %3428 = vmatprep.subr.bf16.mxu0 %v3427_v26  ;;  %3556 = vmatprep.subr.bf16.mxu1 %v3555_v27  ;;  %v2036_v26 = vld [vmem:[#allocation7 + $0x17b8] sm:$0xff]  ;;  %v3445_v27 = vpack.c.bf16 %v2025_v16, %v2021_v9  ;;  %v3573_v28 = vpack.c.bf16 %v2027_v12, %v2023_v21  ;;  %v3447_v32 = vpack.c.bf16 %v2034_v23, %v2030_v22  ;;  %v2358_v12 = vld [vmem:[#allocation10 + $0xa8] sm:$0xff] }
 0x401   :  { %v3575_v33 = vpack.c.bf16 %v2036_v26, %v2032_v24  ;;  %v2356_v9 = vld [vmem:[#allocation10 + $0x98] sm:$0xff]  ;;  %v2355_v21 = vld [vmem:[#allocation10 + $0x90] sm:$0xff]  ;;  %v2357_v26 = vld [vmem:[#allocation10 + $0xa0] sm:$0xff] }
 0x402   :  { %v2360_v22 = vld [vmem:[#allocation10 + $0xb8] sm:$0xff] }
 0x403   :  { %3430 = vmatpush1.bf16.msra.mxu0 %v3429_v36  ;;  %3558 = vmatpush1.bf16.msra.mxu1 %v3557_v19  ;;  %v2035_v36 = vld [vmem:[#allocation7 + $0x17b0] sm:$0xff]  ;;  %v2038_v19 = vld [vmem:[#allocation7 + $0x17c8] sm:$0xff]  ;;  %v3603_v24 = vpack.c.bf16 %v2360_v22, %v2358_v12 }
 0x404   :  { %3432 = vmatprep.subr.bf16.mxu0 %v3431_v38  ;;  %3560 = vmatprep.subr.bf16.mxu1 %v3559_v39  ;;  %v2044_v38 = vld [vmem:[#allocation7 + $0x17f8] sm:$0xff]  ;;  %v3449_v39 = vpack.c.bf16 %v2033_v30, %v2029_v29  ;;  %v3577_v40 = vpack.c.bf16 %v2035_v36, %v2031_v34  ;;  %v3451_v42 = vpack.c.bf16 %v2042_v37, %v2038_v19  ;;  %v2366_v36 = vld [vmem:[#allocation10 + $0xe8] sm:$0xff]  ;;  %v2393_v22 = vld [vmem:[#allocation10 + $0x1c0] sm:$0xff] }
 0x405   :  { %v3579_v44 = vpack.c.bf16 %v2044_v38, %v2040_v31  ;;  %v2364_v29 = vld [vmem:[#allocation10 + $0xd8] sm:$0xff]  ;;  %v2363_v34 = vld [vmem:[#allocation10 + $0xd0] sm:$0xff]  ;;  %v2365_v38 = vld [vmem:[#allocation10 + $0xe0] sm:$0xff] }
 0x406   :  { %v2368_v19 = vld [vmem:[#allocation10 + $0xf8] sm:$0xff] }
 0x407   :  { %3434 = vmatpush1.bf16.msra.mxu0 %v3433_v48  ;;  %3562 = vmatpush1.bf16.msra.mxu1 %v3561_v62  ;;  %v2043_v48 = vld [vmem:[#allocation7 + $0x17f0] sm:$0xff]  ;;  %v3611_v31 = vpack.c.bf16 %v2368_v19, %v2366_v36 }
 0x408   :  { %3436 = vmatprep.subr.bf16.mxu0 %v3435_v60  ;;  %3564 = vmatprep.subr.bf16.mxu1 %v3563_v11  ;;  %v2338_v62 = vld [vmem:[#allocation10 + $0x8] sm:$0xff]  ;;  %v3581_v60 = vpack.c.bf16 %v2043_v48, %v2039_v46  ;;  %v2371_v46 = vld [vmem:[#allocation10 + $0x110] sm:$0xff] }
 0x409   :  { %v3583_v11 = vpack.c.bf16 %v2340_v0, %v2338_v62  ;;  %v2374_v48 = vld [vmem:[#allocation10 + $0x128] sm:$0xff]  ;;  %v2376_v62 = vld [vmem:[#allocation10 + $0x138] sm:$0xff]  ;;  %v3617_v0 = vpack.c.bf16 %v2371_v46, %v2369_v45  ;;  %v2624_v46 = vld [vmem:[%s4397_s9 + $0x18] sm:$0xff] }
 0x40a   :  { %v2637_v19 = vld [vmem:[%s4397_s9 + $0x80] sm:$0xff]  ;;  %v2623_v45 = vld [vmem:[%s4397_s9 + $0x10] sm:$0xff] }
 0x40b   :  { %3438 = vmatpush1.bf16.msra.mxu0 %v3437_v54  ;;  %3566 = vmatpush1.bf16.msra.mxu1 %v3565_v55  ;;  %v3587_v54 = vpack.c.bf16 %v2344_v52, %v2342_v51  ;;  %v2341_v55 = vld [vmem:[#allocation10 + $0x20] sm:$0xff]  ;;  %v3623_v52 = vpack.c.bf16 %v2380_v50, %v2378_v47  ;;  %v2643_v47 = vld [vmem:[%s4397_s9 + $0xb0] sm:$0xff] }
 0x40c   :  { %3440 = vmatprep.subr.bf16.mxu0 %v3439_v59  ;;  %3568 = vmatprep.subr.bf16.mxu1 %v3567_v2  ;;  %v2348_v59 = vld [vmem:[#allocation10 + $0x58] sm:$0xff]  ;;  %v3589_v2 = vpack.c.bf16 %v2343_v15, %v2341_v55  ;;  %v2644_v50 = vld [vmem:[%s4397_s9 + $0xb8] sm:$0xff] }
 0x40d   :  { %v3591_v14 = vpack.c.bf16 %v2348_v59, %v2346_v58  ;;  %v2384_v55 = vld [vmem:[#allocation10 + $0x178] sm:$0xff]  ;;  %v2381_v59 = vld [vmem:[#allocation10 + $0x160] sm:$0xff] }
 0x40f   :  { %3442 = vmatpush1.bf16.msra.mxu0 %v3441_v7  ;;  %3570 = vmatpush1.bf16.msra.mxu1 %v3569_v8  ;;  %v2351_v7 = vld [vmem:[#allocation10 + $0x70] sm:$0xff]  ;;  %v2354_v8 = vld [vmem:[#allocation10 + $0x88] sm:$0xff] }
 0x410   :  { %3444 = vmatprep.subr.bf16.mxu0 %v3443_v17  ;;  %3572 = vmatprep.subr.bf16.mxu1 %v3571_v18  ;;  %v3597_v16 = vpack.c.bf16 %v2351_v7, %v2349_v43  ;;  %v3599_v17 = vpack.c.bf16 %v2356_v9, %v2354_v8  ;;  %v2353_v18 = vld [vmem:[#allocation10 + $0x80] sm:$0xff]  ;;  %v2392_v43 = vld [vmem:[#allocation10 + $0x1b8] sm:$0xff] }
 0x411   :  { %v3601_v23 = vpack.c.bf16 %v2355_v21, %v2353_v18  ;;  %v2389_v9 = vld [vmem:[#allocation10 + $0x1a0] sm:$0xff]  ;;  %v2396_v18 = vld [vmem:[#allocation10 + $0x1d8] sm:$0xff] }
 0x413   :  { %3446 = vmatpush1.bf16.msra.mxu0 %v3445_v27  ;;  %3574 = vmatpush1.bf16.msra.mxu1 %v3573_v28  ;;  %v2359_v27 = vld [vmem:[#allocation10 + $0xb0] sm:$0xff]  ;;  %v2362_v28 = vld [vmem:[#allocation10 + $0xc8] sm:$0xff] }
 0x414   :  { %3448 = vmatprep.subr.bf16.mxu0 %v3447_v32  ;;  %3576 = vmatprep.subr.bf16.mxu1 %v3575_v33  ;;  %v3605_v30 = vpack.c.bf16 %v2359_v27, %v2357_v26  ;;  %v3607_v32 = vpack.c.bf16 %v2364_v29, %v2362_v28  ;;  %v2361_v33 = vld [vmem:[#allocation10 + $0xc0] sm:$0xff]  ;;  %v2398_v26 = vld [vmem:[#allocation10 + $0x1e8] sm:$0xff]  ;;  %v2400_v27 = vld [vmem:[#allocation10 + $0x1f8] sm:$0xff] }
 0x415   :  { %v3609_v37 = vpack.c.bf16 %v2363_v34, %v2361_v33  ;;  %v3643_v28 = vpack.c.bf16 %v2400_v27, %v2398_v26  ;;  %v2397_v29 = vld [vmem:[#allocation10 + $0x1e0] sm:$0xff]  ;;  %v2402_v33 = vld [vmem:[#allocation10 + $0x208] sm:$0xff]  ;;  %v2404_v34 = vld [vmem:[#allocation10 + $0x218] sm:$0xff] }
 0x416   :  { %v3647_v36 = vpack.c.bf16 %v2404_v34, %v2402_v33  ;;  %v2406_v33 = vld [vmem:[#allocation10 + $0x228] sm:$0xff]  ;;  %v2408_v34 = vld [vmem:[#allocation10 + $0x238] sm:$0xff] }
 0x417   :  { %3450 = vmatpush1.bf16.msra.mxu0 %v3449_v39  ;;  %3578 = vmatpush1.bf16.msra.mxu1 %v3577_v40  ;;  %v2367_v39 = vld [vmem:[#allocation10 + $0xf0] sm:$0xff]  ;;  %v2370_v40 = vld [vmem:[#allocation10 + $0x108] sm:$0xff] }
 0x418   :  { %3452 = vmatprep.subr.bf16.mxu0 %v3451_v42  ;;  %3580 = vmatprep.subr.bf16.mxu1 %v3579_v44  ;;  %v3613_v42 = vpack.c.bf16 %v2367_v39, %v2365_v38  ;;  %v3615_v44 = vpack.c.bf16 %v2372_v41, %v2370_v40  ;;  %v2622_v39 = vld [vmem:[%s4397_s9 + $0x8] sm:$0xff]  ;;  %v2639_v40 = vld [vmem:[%s4397_s9 + $0x90] sm:$0xff]  ;;  %v2640_v41 = vld [vmem:[%s4397_s9 + $0x98] sm:$0xff] }
 0x41b   :  { %3454 = vmatpush1.bf16.msra.mxu0 %v3453_v49  ;;  %3582 = vmatpush1.bf16.msra.mxu1 %v3581_v60  ;;  %v3619_v49 = vpack.c.bf16 %v2376_v62, %v2374_v48  ;;  %v2373_v60 = vld [vmem:[#allocation10 + $0x120] sm:$0xff]  ;;  %v2641_v48 = vld [vmem:[%s4397_s9 + $0xa0] sm:$0xff]  ;;  %v2642_v62 = vld [vmem:[%s4397_s9 + $0xa8] sm:$0xff] }
 0x41c   :  { %3584 = vmatprep.subr.bf16.mxu0 %v3583_v11  ;;  %v2375_v11 = vld [vmem:[#allocation10 + $0x130] sm:$0xff] }
 0x41d   :  { %v3621_v51 = vpack.c.bf16 %v2375_v11, %v2373_v60  ;;  %v2625_v60 = vld [vmem:[%s4397_s9 + $0x20] sm:$0xff]  ;;  %v2626_v11 = vld [vmem:[%s4397_s9 + $0x28] sm:$0xff] }
 0x41e   :  { %2181 = vmatmul.mubr.f32.vlgmr.msra.gmra.mrb[4].mxu0 %v1785_v53  ;;  %2323 = vmatmul.mubr.f32.vlgmr.msra.gmra.mrb[2].mxu1 %v1785_v53  ;;  %v2379_v53 = vld [vmem:[#allocation10 + $0x150] sm:$0xff] }
 0x41f   :  { %3586 = vmatpush1.bf16.msra.mxu0 %v3585_v35  ;;  %v2377_v35 = vld [vmem:[#allocation10 + $0x140] sm:$0xff] }
 0x420   :  { %3588 = vmatprep.subr.bf16.mxu0 %v3587_v54  ;;  %v2382_v54 = vld [vmem:[#allocation10 + $0x168] sm:$0xff]  ;;  %v3625_v15 = vpack.c.bf16 %v2379_v53, %v2377_v35  ;;  %v2627_v35 = vld [vmem:[%s4397_s9 + $0x30] sm:$0xff]  ;;  %v2628_v53 = vld [vmem:[%s4397_s9 + $0x38] sm:$0xff] }
 0x421   :  { %v3627_v58 = vpack.c.bf16 %v2384_v55, %v2382_v54  ;;  %v2645_v54 = vld [vmem:[%s4397_s9 + $0xc0] sm:$0xff]  ;;  %v2646_v55 = vld [vmem:[%s4397_s9 + $0xc8] sm:$0xff] }
 0x423   :  { %3590 = vmatpush1.bf16.msra.mxu0 %v3589_v2  ;;  %v2383_v2 = vld [vmem:[#allocation10 + $0x170] sm:$0xff] }
 0x424   :  { %3592 = vmatprep.subr.bf16.mxu0 %v3591_v14  ;;  %v2386_v14 = vld [vmem:[#allocation10 + $0x188] sm:$0xff]  ;;  %v3629_v4 = vpack.c.bf16 %v2383_v2, %v2381_v59  ;;  %v2630_v2 = vld [vmem:[%s4397_s9 + $0x48] sm:$0xff] }
 0x425   :  { %v3631_v10 = vpack.c.bf16 %v2388_v3, %v2386_v14  ;;  %v2629_v59 = vld [vmem:[%s4397_s9 + $0x40] sm:$0xff]  ;;  %v2647_v14 = vld [vmem:[%s4397_s9 + $0xd0] sm:$0xff]  ;;  %v2648_v3 = vld [vmem:[%s4397_s9 + $0xd8] sm:$0xff] }
 0x427   :  { %3594 = vmatpush1.bf16.msra.mxu0 %v3593_v6  ;;  %v2387_v6 = vld [vmem:[#allocation10 + $0x190] sm:$0xff] }
 0x428   :  { %3596 = vmatprep.subr.bf16.mxu0 %v3595_v20  ;;  %v2390_v20 = vld [vmem:[#allocation10 + $0x1a8] sm:$0xff]  ;;  %v3633_v7 = vpack.c.bf16 %v2387_v6, %v2385_v5  ;;  %v2631_v5 = vld [vmem:[%s4397_s9 + $0x50] sm:$0xff]  ;;  %v2632_v6 = vld [vmem:[%s4397_s9 + $0x58] sm:$0xff] }
 0x429   :  { %v3635_v8 = vpack.c.bf16 %v2392_v43, %v2390_v20  ;;  %v2649_v20 = vld [vmem:[%s4397_s9 + $0xe0] sm:$0xff]  ;;  %v2650_v43 = vld [vmem:[%s4397_s9 + $0xe8] sm:$0xff] }
 0x42b   :  { %3598 = vmatpush1.bf16.msra.mxu0 %v3597_v16  ;;  %v2391_v16 = vld [vmem:[#allocation10 + $0x1b0] sm:$0xff] }
 0x42c   :  { %3600 = vmatprep.subr.bf16.mxu0 %v3599_v17  ;;  %v2394_v17 = vld [vmem:[#allocation10 + $0x1c8] sm:$0xff]  ;;  %v3637_v21 = vpack.c.bf16 %v2391_v16, %v2389_v9  ;;  %v4336_v9 = vld [vmem:[#allocation8] sm:$0xf] }
 0x42d   :  { %v3639_v12 = vpack.c.bf16 %v2396_v18, %v2394_v17  ;;  %v874_v16 = vrot.slane %v4336_v9, %v4170_v61  ;;  %v878_v17 = vrot.slane %v4336_v9, %v4167_v56  ;;  %v886_v18 = vrot.slane %v4336_v9, %v153_v63 }
 0x42e   :  { %v3651_v63 = vpack.c.bf16 %v2408_v34, %v2406_v33  ;;  %v2444_v33 = vld [vmem:[#allocation10 + $0x358] sm:$0xff] }
 0x42f   :  { %3602 = vmatpush1.bf16.msra.mxu0 %v3601_v23  ;;  %v2395_v23 = vld [vmem:[#allocation10 + $0x1d0] sm:$0xff] }
 0x430   :  { %3604 = vmatprep.subr.bf16.mxu0 %v3603_v24  ;;  %v3641_v24 = vpack.c.bf16 %v2395_v23, %v2393_v22 }
 0x433   :  { %3606 = vmatpush1.bf16.msra.mxu0 %v3605_v30  ;;  %v2399_v30 = vld [vmem:[#allocation10 + $0x1f0] sm:$0xff] }
 0x434   :  { %3608 = vmatprep.subr.bf16.mxu0 %v3607_v32  ;;  %v3645_v32 = vpack.c.bf16 %v2399_v30, %v2397_v29  ;;  %v2403_v29 = vld [vmem:[#allocation10 + $0x210] sm:$0xff] }
 0x437   :  { %3610 = vmatpush1.bf16.msra.mxu0 %v3609_v37  ;;  %v2638_v37 = vld [vmem:[%s4397_s9 + $0x88] sm:$0xff] }
 0x438   :  { %3612 = vmatprep.subr.bf16.mxu0 %v3611_v31  ;;  %v2621_v31 = vld [vmem:[%s4397_s9] sm:$0xff]  ;;  %v3711_v38 = vpack.c.bf16 %v2638_v37, %v2637_v19 }
 0x43a   :  { %3712 = vmatprep.subr.bf16.mxu1 %v3711_v38 }
 0x43b   :  { %3614 = vmatpush1.bf16.msra.mxu0 %v3613_v42  ;;  %v3713_v42 = vpack.c.bf16 %v2622_v39, %v2621_v31  ;;  %v2405_v31 = vld [vmem:[#allocation10 + $0x220] sm:$0xff]  ;;  %v2412_v39 = vld [vmem:[#allocation10 + $0x258] sm:$0xff] }
 0x43c   :  { %3616 = vmatprep.subr.bf16.mxu0 %v3615_v44  ;;  %v3715_v44 = vpack.c.bf16 %v2640_v41, %v2639_v40 }
 0x43d   :  { %3714 = vmatpush3.bf16.msra.mxu1 %v3713_v42  ;;  %v2409_v42 = vld [vmem:[#allocation10 + $0x240] sm:$0xff] }
 0x43e   :  { %3716 = vmatprep.subr.bf16.mxu1 %v3715_v44  ;;  %v2411_v44 = vld [vmem:[#allocation10 + $0x250] sm:$0xff] }
 0x43f   :  { %3618 = vmatpush1.bf16.msra.mxu0 %v3617_v0  ;;  %v3717_v0 = vpack.c.bf16 %v2624_v46, %v2623_v45  ;;  %v2414_v45 = vld [vmem:[#allocation10 + $0x268] sm:$0xff]  ;;  %v2416_v46 = vld [vmem:[#allocation10 + $0x278] sm:$0xff] }
 0x440   :  { %3620 = vmatprep.subr.bf16.mxu0 %v3619_v49  ;;  %v3719_v49 = vpack.c.bf16 %v2642_v62, %v2641_v48  ;;  %v3657_v48 = vpack.c.bf16 %v2411_v44, %v2409_v42  ;;  %v3659_v62 = vpack.c.bf16 %v2416_v46, %v2414_v45  ;;  %v2449_v45 = vld [vmem:[#allocation10 + $0x380] sm:$0xff]  ;;  %v2451_v46 = vld [vmem:[#allocation10 + $0x390] sm:$0xff] }
 0x441   :  { %3718 = vmatpush3.bf16.msra.mxu1 %v3717_v0  ;;  %v2413_v0 = vld [vmem:[#allocation10 + $0x260] sm:$0xff] }
 0x442   :  { %3720 = vmatprep.subr.bf16.mxu1 %v3719_v49  ;;  %v2415_v49 = vld [vmem:[#allocation10 + $0x270] sm:$0xff] }
 0x443   :  { %3622 = vmatpush1.bf16.msra.mxu0 %v3621_v51  ;;  %v3721_v51 = vpack.c.bf16 %v2626_v11, %v2625_v60  ;;  %v2418_v60 = vld [vmem:[#allocation10 + $0x288] sm:$0xff]  ;;  %v2420_v11 = vld [vmem:[#allocation10 + $0x298] sm:$0xff] }
 0x444   :  { %3624 = vmatprep.subr.bf16.mxu0 %v3623_v52  ;;  %v3723_v52 = vpack.c.bf16 %v2644_v50, %v2643_v47  ;;  %v3661_v47 = vpack.c.bf16 %v2415_v49, %v2413_v0  ;;  %v3663_v50 = vpack.c.bf16 %v2420_v11, %v2418_v60  ;;  %v3697_v0 = vpack.c.bf16 %v2451_v46, %v2449_v45  ;;  %v2453_v60 = vld [vmem:[#allocation10 + $0x3a0] sm:$0xff]  ;;  %v2455_v11 = vld [vmem:[#allocation10 + $0x3b0] sm:$0xff] }
 0x445   :  { %3722 = vmatpush3.bf16.msra.mxu1 %v3721_v51  ;;  %v2417_v51 = vld [vmem:[#allocation10 + $0x280] sm:$0xff] }
 0x446   :  { %3724 = vmatprep.subr.bf16.mxu1 %v3723_v52  ;;  %v2419_v52 = vld [vmem:[#allocation10 + $0x290] sm:$0xff] }
 0x447   :  { %3626 = vmatpush1.bf16.msra.mxu0 %v3625_v15  ;;  %v3725_v15 = vpack.c.bf16 %v2628_v53, %v2627_v35  ;;  %v2422_v35 = vld [vmem:[#allocation10 + $0x2a8] sm:$0xff]  ;;  %v2424_v53 = vld [vmem:[#allocation10 + $0x2b8] sm:$0xff] }
 0x448   :  { %3628 = vmatprep.subr.bf16.mxu0 %v3627_v58  ;;  %v3727_v58 = vpack.c.bf16 %v2646_v55, %v2645_v54  ;;  %v3665_v54 = vpack.c.bf16 %v2419_v52, %v2417_v51  ;;  %v3667_v55 = vpack.c.bf16 %v2424_v53, %v2422_v35  ;;  %v3701_v51 = vpack.c.bf16 %v2455_v11, %v2453_v60  ;;  %v2457_v35 = vld [vmem:[#allocation10 + $0x3c0] sm:$0xff]  ;;  %v2459_v53 = vld [vmem:[#allocation10 + $0x3d0] sm:$0xff] }
 0x449   :  { %3726 = vmatpush3.bf16.msra.mxu1 %v3725_v15  ;;  %v2421_v15 = vld [vmem:[#allocation10 + $0x2a0] sm:$0xff] }
 0x44a   :  { %3728 = vmatprep.subr.bf16.mxu1 %v3727_v58  ;;  %v2423_v58 = vld [vmem:[#allocation10 + $0x2b0] sm:$0xff] }
 0x44b   :  { %3630 = vmatpush1.bf16.msra.mxu0 %v3629_v4  ;;  %v3729_v4 = vpack.c.bf16 %v2630_v2, %v2629_v59  ;;  %v2426_v59 = vld [vmem:[#allocation10 + $0x2c8] sm:$0xff]  ;;  %v2428_v2 = vld [vmem:[#allocation10 + $0x2d8] sm:$0xff] }
 0x44c   :  { %3632 = vmatprep.subr.bf16.mxu0 %v3631_v10  ;;  %v3731_v10 = vpack.c.bf16 %v2648_v3, %v2647_v14  ;;  %v3669_v14 = vpack.c.bf16 %v2423_v58, %v2421_v15  ;;  %v3671_v3 = vpack.c.bf16 %v2428_v2, %v2426_v59  ;;  %v3705_v15 = vpack.c.bf16 %v2459_v53, %v2457_v35  ;;  %v2461_v2 = vld [vmem:[#allocation10 + $0x3e0] sm:$0xff] }
 0x44d   :  { %3730 = vmatpush3.bf16.msra.mxu1 %v3729_v4  ;;  %v2425_v4 = vld [vmem:[#allocation10 + $0x2c0] sm:$0xff]  ;;  %v882_v58 = vrot.slane %v4336_v9, %v149_v1  ;;  %v2651_v9 = vld [vmem:[%s4397_s9 + $0xf0] sm:$0xff] }
 0x44e   :  { %3732 = vmatprep.subr.bf16.mxu1 %v3731_v10  ;;  %v2427_v10 = vld [vmem:[#allocation10 + $0x2d0] sm:$0xff] }
 0x44f   :  { %3634 = vmatpush1.bf16.msra.mxu0 %v3633_v7  ;;  %v3733_v7 = vpack.c.bf16 %v2632_v6, %v2631_v5  ;;  %v2430_v5 = vld [vmem:[#allocation10 + $0x2e8] sm:$0xff]  ;;  %v2432_v6 = vld [vmem:[#allocation10 + $0x2f8] sm:$0xff] }
 0x450   :  { %3636 = vmatprep.subr.bf16.mxu0 %v3635_v8  ;;  %v3735_v8 = vpack.c.bf16 %v2650_v43, %v2649_v20  ;;  %v3673_v20 = vpack.c.bf16 %v2427_v10, %v2425_v4  ;;  %v3675_v43 = vpack.c.bf16 %v2432_v6, %v2430_v5  ;;  %v2633_v5 = vld [vmem:[%s4397_s9 + $0x60] sm:$0xff] }
 0x451   :  { %3734 = vmatpush3.bf16.msra.mxu1 %v3733_v7  ;;  %v2429_v7 = vld [vmem:[#allocation10 + $0x2e0] sm:$0xff]  ;;  %v3737_v1 = vpack.c.bf16 %v2634_v57, %v2633_v5 }
 0x452   :  { %3736 = vmatprep.subr.bf16.mxu1 %v3735_v8  ;;  %v2431_v8 = vld [vmem:[#allocation10 + $0x2f0] sm:$0xff] }
 0x453   :  { %3638 = vmatpush1.bf16.msra.mxu0 %v3637_v21  ;;  %v3743_v21 = vadd.f32 %v874_v16, %v4227_v13  ;;  %v2407_v13 = vld [vmem:[#allocation10 + $0x230] sm:$0xff]  ;;  %v2434_v16 = vld [vmem:[#allocation10 + $0x308] sm:$0xff] }
 0x454   :  { %3640 = vmatprep.subr.bf16.mxu0 %v3639_v12  ;;  %v3745_v12 = vadd.f32 %v878_v17, %v4229_v25  ;;  %v2410_v25 = vld [vmem:[#allocation10 + $0x248] sm:$0xff]  ;;  %v3653_v40 = vpack.c.bf16 %v2407_v13, %v2405_v31  ;;  %v2436_v17 = vld [vmem:[#allocation10 + $0x318] sm:$0xff] }
 0x455   :  { %v3655_v41 = vpack.c.bf16 %v2412_v39, %v2410_v25  ;;  %v2448_v31 = vld [vmem:[#allocation10 + $0x378] sm:$0xff]  ;;  %v2445_v25 = vld [vmem:[#allocation10 + $0x360] sm:$0xff]  ;;  %v2447_v39 = vld [vmem:[#allocation10 + $0x370] sm:$0xff]  ;;  %3738 = vmatpush3.bf16.msra.mxu1 %v3737_v1 }
 0x456   :  { %v3693_v42 = vpack.c.bf16 %v2447_v39, %v2445_v25 }
 0x457   :  { %3642 = vmatpush1.bf16.msra.mxu0 %v3641_v24 }
 0x458   :  { %3644 = vmatprep.subr.bf16.mxu0 %v3643_v28  ;;  %v2401_v28 = vld [vmem:[#allocation10 + $0x200] sm:$0xff] }
 0x459   :  { %v3649_v19 = vpack.c.bf16 %v2403_v29, %v2401_v28  ;;  %v2437_v29 = vld [vmem:[#allocation10 + $0x320] sm:$0xff] }
 0x45b   :  { %3646 = vmatpush1.bf16.msra.mxu0 %v3645_v32 }
 0x45c   :  { %3648 = vmatprep.subr.bf16.mxu0 %v3647_v36 }
 0x4f1   :  { %v2182_v22 = vpop.f32.mrb[4].mxu0  ;;  %v4347_v23 = vpop.f32.mrb[2].mxu1 }
 0x4f2   :  { %v3744_v24 = vadd.f32 %v3743_v21, %v2182_v22  ;;  %v2184_v26 = vpop.f32.mrb[5].mxu0  ;;  %v2326_v27 = vpop.f32.mrb[3].mxu1  ;;  %v3679_v21 = vpack.c.bf16 %v2436_v17, %v2434_v16  ;;  %v2435_v22 = vld [vmem:[#allocation10 + $0x310] sm:$0xff]  ;;  %v3747_v4 = vadd.f32 %v4347_v23, %v882_v58  ;;  %v2652_v23 = vld [vmem:[%s4397_s9 + $0xf8] sm:$0xff] }
 0x4f3   :  { %v3746_v30 = vadd.f32 %v3745_v12, %v2184_v26  ;;  %v3748_v32 = vadd.f32 %v2326_v27, %v886_v18  ;;  %v3677_v18 = vpack.c.bf16 %v2431_v8, %v2429_v7  ;;  %v2433_v12 = vld [vmem:[#allocation10 + $0x300] sm:$0xff]  ;;  %v2440_v26 = vld [vmem:[#allocation10 + $0x338] sm:$0xff]  ;;  %v3739_v6 = vpack.c.bf16 %v2652_v23, %v2651_v9 }
 0x4f4   :  { %v2333_v37 = vmax.f32 %v3744_v24, 0.0  ;;  %v2438_v24 = vld [vmem:[#allocation10 + $0x328] sm:$0xff]  ;;  %v3681_v27 = vpack.c.bf16 %v2435_v22, %v2433_v12  ;;  %v2335_v10 = vmax.f32 %v3747_v4, 0.0  ;;  %v2465_v8 = vld [vmem:[#allocation11] sm:$0x3] }
 0x4f5   :  { %v2334_v36 = vmax.f32 %v3746_v30, 0.0  ;;  %v2336_v38 = vmax.f32 %v3748_v32, 0.0  ;;  %v3683_v28 = vpack.c.bf16 %v2440_v26, %v2438_v24  ;;  %v2439_v30 = vld [vmem:[#allocation10 + $0x330] sm:$0xff]  ;;  %v2442_v32 = vld [vmem:[#allocation10 + $0x348] sm:$0xff]  ;;  %3740 = vmatprep.subr.bf16.mxu1 %v3739_v6  ;;  %v2470_v16 = vrot.slane %v2465_v8, %v4170_v61 }
 0x4f6   :  { %v3685_v34 = vpack.c.bf16 %v2439_v30, %v2437_v29  ;;  %v2474_v17 = vrot.slane %v2465_v8, %v4167_v56  ;;  %v2779_v29 = vld [vmem:[%s4398_s10] ss:$0 sm:$0xff]  ;;  %s3929_s10 = scalar_lea.vmem %s2750_s23, 32 }
 0x4f7   :  { %2541 = vmatprep.mubr.f32.mxu0 %v2334_v36  ;;  %v3687_v36 = vpack.c.bf16 %v2444_v33, %v2442_v32  ;;  %p3930_p6 = scmp.ne.s32.totalorder %s2750_s23, %s3929_s10  ;;  %p3935_p8 = scmp.lt.s32.totalorder %s3929_s10, %s3929_s10 }
 0x4f8   :  { %2542 = vmatmul.mubr.f32.vlgmr.msra.gmra.mrb[14].mxu0 %v2333_v37  ;;  %v2443_v37 = vld [vmem:[#allocation10 + $0x350] sm:$0xff] }
 0x4f9   :  { %3650 = vmatpush1.bf16.msra.mxu0 %v3649_v19  ;;  %2612 = vmatprep.mubr.f32.mxu0 %v2336_v38  ;;  %v2441_v19 = vld [vmem:[#allocation10 + $0x340] sm:$0xff]  ;;  %p3936_p9 = por %p3935_p8, %p3934_p7 }
 0x4fa   :  { %3652 = vmatprep.subr.bf16.mxu0 %v3651_v63  ;;  %v2446_v63 = vld [vmem:[#allocation10 + $0x368] sm:$0xff]  ;;  %v3689_v13 = vpack.c.bf16 %v2443_v37, %v2441_v19 }
 0x4fb   :  { %v3691_v38 = vpack.c.bf16 %v2448_v31, %v2446_v63  ;;  %p3937_p10 = pnand %p3936_p9, %p3930_p6 }
 0x4fd   :  { %3654 = vmatpush1.bf16.msra.mxu0 %v3653_v40  ;;  %v2450_v40 = vld [vmem:[#allocation10 + $0x388] sm:$0xff] }
 0x4fe   :  { %3656 = vmatprep.subr.bf16.mxu0 %v3655_v41  ;;  %v2452_v41 = vld [vmem:[#allocation10 + $0x398] sm:$0xff] }
 0x4ff   :  { %v3695_v44 = vpack.c.bf16 %v2452_v41, %v2450_v40 }
 0x501   :  { %3658 = vmatpush1.bf16.msra.mxu0 %v3657_v48  ;;  %v2454_v48 = vld [vmem:[#allocation10 + $0x3a8] sm:$0xff] }
 0x502   :  { %3660 = vmatprep.subr.bf16.mxu0 %v3659_v62  ;;  %v2456_v62 = vld [vmem:[#allocation10 + $0x3b8] sm:$0xff] }
 0x503   :  { %v3699_v49 = vpack.c.bf16 %v2456_v62, %v2454_v48 }
 0x505   :  { %3662 = vmatpush1.bf16.msra.mxu0 %v3661_v47  ;;  %v2458_v47 = vld [vmem:[#allocation10 + $0x3c8] sm:$0xff] }
 0x506   :  { %3664 = vmatprep.subr.bf16.mxu0 %v3663_v50  ;;  %v2460_v50 = vld [vmem:[#allocation10 + $0x3d8] sm:$0xff] }
 0x507   :  { %v3703_v52 = vpack.c.bf16 %v2460_v50, %v2458_v47 }
 0x509   :  { %3666 = vmatpush1.bf16.msra.mxu0 %v3665_v54  ;;  %v2462_v54 = vld [vmem:[#allocation10 + $0x3e8] sm:$0xff] }
 0x50a   :  { %3668 = vmatprep.subr.bf16.mxu0 %v3667_v55  ;;  %v2464_v55 = vld [vmem:[#allocation10 + $0x3f8] sm:$0xff] }
 0x50b   :  { %v3707_v59 = vpack.c.bf16 %v2464_v55, %v2462_v54 }
 0x50d   :  { %3670 = vmatpush1.bf16.msra.mxu0 %v3669_v14  ;;  %v2463_v14 = vld [vmem:[#allocation10 + $0x3f0] sm:$0xff] }
 0x50e   :  { %3672 = vmatprep.subr.bf16.mxu0 %v3671_v3  ;;  %v3709_v3 = vpack.c.bf16 %v2463_v14, %v2461_v2 }
 0x511   :  { %3674 = vmatpush1.bf16.msra.mxu0 %v3673_v20  ;;  %v2635_v20 = vld [vmem:[%s4397_s9 + $0x70] sm:$0xff] }
 0x512   :  { %3676 = vmatprep.subr.bf16.mxu0 %v3675_v43  ;;  %v2636_v43 = vld [vmem:[%s4397_s9 + $0x78] sm:$0xff] }
 0x513   :  { %v3741_v7 = vpack.c.bf16 %v2636_v43, %v2635_v20 }
 0x515   :  { %3678 = vmatpush1.bf16.msra.mxu0 %v3677_v18  ;;  %3742 = vmatpush3.bf16.msra.mxu1 %v3741_v7 }
 0x516   :  { %3680 = vmatprep.subr.bf16.mxu0 %v3679_v21 }
 0x519   :  { %3682 = vmatpush1.bf16.msra.mxu0 %v3681_v27 }
 0x51a   :  { %3684 = vmatprep.subr.bf16.mxu0 %v3683_v28 }
 0x51d   :  { %3686 = vmatpush1.bf16.msra.mxu0 %v3685_v34 }
 0x51e   :  { %3688 = vmatprep.subr.bf16.mxu0 %v3687_v36 }
 0x521   :  { %3690 = vmatpush1.bf16.msra.mxu0 %v3689_v13 }
 0x522   :  { %3692 = vmatprep.subr.bf16.mxu0 %v3691_v38 }
 0x525   :  { %3694 = vmatpush1.bf16.msra.mxu0 %v3693_v42 }
 0x526   :  { %3696 = vmatprep.subr.bf16.mxu0 %v3695_v44 }
 0x529   :  { %3698 = vmatpush1.bf16.msra.mxu0 %v3697_v0 }
 0x52a   :  { %3700 = vmatprep.subr.bf16.mxu0 %v3699_v49 }
 0x52d   :  { %3702 = vmatpush1.bf16.msra.mxu0 %v3701_v51 }
 0x52e   :  { %3704 = vmatprep.subr.bf16.mxu0 %v3703_v52 }
 0x531   :  { %3706 = vmatpush1.bf16.msra.mxu0 %v3705_v15 }
 0x532   :  { %3708 = vmatprep.subr.bf16.mxu0 %v3707_v59 }
 0x535   :  { %3710 = vmatpush1.bf16.msra.mxu0 %v3709_v3 }
 0x538   :  { %2613 = vmatmul.mubr.f32.vlgmr.msra.gmra.mrb[14].mxu0 %v2335_v10 }
 0x60b   :  { %v2614_v18 = vpop.f32.mrb[14].mxu0 }
 0x60c   :  { %v3749_v21 = vadd.f32 %v2614_v18, %v2470_v16  ;;  %v2616_v12 = vpop.f32.mrb[15].mxu0 }
 0x60d   :  { %v3750_v22 = vadd.f32 %v2616_v12, %v2474_v17 }
 0x60e   :  { %v2619_v26 = vmax.f32 %v3749_v21, 0.0 }
 0x60f   :  { %v2620_v24 = vmax.f32 %v3750_v22, 0.0 }
 0x611   :  { %2724 = vmatprep.mubr.f32.mxu1 %v2620_v24 }
 0x612   :  { %2725 = vmatmul.mubr.f32.vlgmr.msra.gmra.mrb[4].mxu1 %v2619_v26 }
 0x6e5   :  { %v2812_v27 = vpop.f32.mrb[4].mxu1 }
 0x6e6   :  { %v2813_v28 = vpop.f32.mrb[5].mxu1 }
 0x6e7   :  { %v2814_v30 = vadd.f32 %v2813_v28, %v2812_v27 }
 0x6e9   :  { %v2727_v32 = vadd.f32 %v2814_v30, %v2779_v29 }
 0x6eb   :  { %v2731_v61 = vsel %vm2730_vm3, %v2727_v32, -inf }
 0x6ec   :  { %2732 = vmax.xlane.f32.xlu0 %v2731_v61 }
 0x779   :  { %v2733_v56 = vpop.xlane.xlu0 %2732 }
 0x77a   :  { %v2734_v33 = vsub.f32 %v2727_v32, %v2733_v56 }
 0x77c   :  { %v2735_v34 = vmul.f32 1.442695, %v2734_v33 }
 0x77e   :  { %3791 = vpow2.f32 %v2735_v34 }
 0x788   :  { %v3792_v36 = vpop.eup %3791 }
 0x789   :  { %v2737_v19 = vsel %vm2730_vm3, %v3792_v36, 0.0 }
 0x78a   :  { %2738 = vadd.xlane.f32.xlu1 %v2737_v19 }
 0x817   :  { %v2739_v37 = vpop.xlane.xlu1 %2738 }
 0x818   :  { %3793 = vrcp.f32 %v2739_v37 }
 0x822   :  { %v3794_v63 = vpop.eup %3793 }
 0x823   :  { %v2741_v31 = vmul.f32 %v3794_v63, %v3792_v36 }
 0x825   :  { %2742 = vst [vmem:[#allocation13] sm:$0x3] %v2741_v31 }
 0x826   :  { %3940 = shalt.err (!%p3937_p10)
}
 0x827   :  { %s3941_s27 = scalar_lea.hbm %s4399_s11, 32 }
 0x828   :  { %p3942_p11 = scmp.ne.s32.totalorder %s4399_s11, %s3941_s27  ;;  %p3945_p12 = scmp.lt.u32.totalorder %s3941_s27, %s4399_s11 }
 0x82a   :  { %p3947_p13 = pnand %p3945_p12, %p3942_p11 }
 0x82c   :  { %3950 = shalt.err (!%p3947_p13)
}
 0x82d   :  { %2752 = dma.vmem_to_hbm [thread:$0]  %s2750_s23, 32, %s4399_s11, [#allocation4]  }
 0x82e   :  { %3959 = dma.done.wait [#allocation4], 32  }
 0x82f   :  { %3960 = vsyncadd [#allocation4], 4294967264 }
 0x830   :  { %2756 = vsyncpa [#allocation3], 1 }
 0x831   :  { %2757 = vsyncpa [#allocation6], 1 }
 0x832   :  { %2758 = vsyncpa [#allocation9], 1 }
 0x833   :  { %2759 = vsyncpa [#allocation12], 1 }
 0x834   :  { %2760 = vsyncpa [#allocation4], 1 }

</bundles_post_ra>
